<compile_context>
chip_gen: v5e
topology: v5e:2x2
jax: 0.10.0
libtpu: 0.0.40
codegen_flags: <defaults>
</compile_context>

<pallas_src>
import math
import numpy as np
import jax
import jax.numpy as jnp
from jax import lax
from jax.experimental import pallas as pl
from jax.experimental.pallas import tpu as pltpu

_MM_DTYPE = jnp.bfloat16      # MXU operand dtype (f32 accumulation everywhere)
_LN_EPS = 1e-6                # attention-is-all-you-need EncoderLayer LayerNorm eps


def _dot(a, b):
    return jnp.dot(a, b, preferred_element_type=jnp.float32)


# ----------------------------------------------------------------------------
# Fused kernel: input projection (layer step 0) + one encoder layer per grid
# step; activation resident in VMEM scratch across the layer axis; Bb
# sequences per step (matmul M = Bb*S).
# ----------------------------------------------------------------------------
def _make_fused_encoder_kernel(n_head, d_k, attn_4d):
    inv_temp = 1.0 / math.sqrt(d_k)

    def kernel(pos_ref, idf_ref, mask_ref,
               wp_ref, bp_ref, wfcp_ref, wfci_ref, bfc_ref, post_ref,
               wqkv_ref, bqkv_ref, wo_ref, bo_ref, ln1g_ref, ln1b_ref,
               w1_ref, b1_ref, w2_ref, b2_ref, ln2g_ref, ln2b_ref,
               out_ref, attn_ref, x_ref, ctx_ref):
        li = pl.program_id(1)
        last = pl.num_programs(1) - 1
        Bb, S, _ = pos_ref.shape
        D = x_ref.shape[-1]
        BS = Bb * S

        # ---- input projection, once per batch block (layer step 0) ---------
        #   fc(concat(relu(pos @ Wp + bp), relu(id_emb))) + pos_table
        # The 3-wide position projection runs on the VPU as 3 FMAs.
        @pl.when(li == 0)
        def _():
            pos = pos_ref[...].reshape(BS, 3)                       # (BS, 3)
            p = jnp.zeros((BS, D), jnp.float32) + bp_ref[...]
            for c in range(3):
                p = p + pos[:, c:c + 1] * wp_ref[c:c + 1, :]
            p = jnp.maximum(p, 0.0)
            idf = idf_ref[...].reshape(BS, D)           # relu applied in wrapper
            x0 = (_dot(p.astype(_MM_DTYPE), wfcp_ref[...])
                  + _dot(idf.astype(_MM_DTYPE), wfci_ref[...])
                  + bfc_ref[...])
            x0 = (x0.reshape(Bb, S, D) + post_ref[...]).reshape(BS, D)
            x_ref[...] = x0            # nn.Dropout is identity in eval mode

        x = x_ref[...]                                              # (BS, D) f32
        xb = x.astype(_MM_DTYPE)                                    # cast once
        mask_add = mask_ref[...]                                    # (Bb, 1, S)

        # ---- multi-head self-attention (fused QKV projection) --------------
        qkv = _dot(xb, wqkv_ref[0]) + bqkv_ref[0]                   # (BS, 3D)
        qkv = qkv.reshape(Bb, S, 3 * D)
        for h in range(n_head):
            q = qkv[:, :, h * d_k:(h + 1) * d_k].astype(_MM_DTYPE)
            k = qkv[:, :, D + h * d_k:D + (h + 1) * d_k].astype(_MM_DTYPE)
            v = qkv[:, :, 2 * D + h * d_k:2 * D + (h + 1) * d_k].astype(_MM_DTYPE)
            s = jnp.einsum('bqd,bkd->bqk', q, k,
                           preferred_element_type=jnp.float32) * inv_temp
            s = s + mask_add
            m = jnp.max(s, axis=-1, keepdims=True)
            e = jnp.exp(s - m)
            p = e * pl.reciprocal(jnp.sum(e, axis=-1, keepdims=True),
                                  approx=True)
            # attention dropout is identity in eval mode

            # Store this head's probabilities immediately (last layer only) so
            # no (S,S) prob tile stays live through the FFN / LayerNorms.
            @pl.when(li == last)
            def _(p=p, h=h):
                if attn_4d:
                    attn_ref[:, h, :, :] = p                        # (B,H,S,S)
                else:
                    attn_ref[:, :, h * S:(h + 1) * S] = p           # lane-dense

            ctx_h = jnp.einsum('bqk,bkd->bqd', p.astype(_MM_DTYPE), v,
                               preferred_element_type=jnp.float32)  # (Bb,S,dk)
            ctx_ref[:, h * d_k:(h + 1) * d_k] = ctx_h.reshape(BS, d_k)

        attn_out = _dot(ctx_ref[...].astype(_MM_DTYPE), wo_ref[0]) + bo_ref[0]

        # ---- residual + LayerNorm 1 -----------------------------------------
        h1 = attn_out + x
        mu = jnp.mean(h1, axis=-1, keepdims=True)
        var = jnp.mean(jnp.square(h1 - mu), axis=-1, keepdims=True)
        h1n = (h1 - mu) * lax.rsqrt(var + _LN_EPS) * ln1g_ref[0] + ln1b_ref[0]

        # ---- position-wise FFN ------------------------------------------------
        h1nb = h1n.astype(_MM_DTYPE)
        f = jnp.maximum(_dot(h1nb, w1_ref[0]) + b1_ref[0], 0.0)
        f2 = _dot(f.astype(_MM_DTYPE), w2_ref[0]) + b2_ref[0]

        # ---- residual + LayerNorm 2 -------------------------------------------
        h2 = f2 + h1n
        mu2 = jnp.mean(h2, axis=-1, keepdims=True)
        var2 = jnp.mean(jnp.square(h2 - mu2), axis=-1, keepdims=True)
        x_new = (h2 - mu2) * lax.rsqrt(var2 + _LN_EPS) * ln2g_ref[0] + ln2b_ref[0]

        x_ref[...] = x_new             # activation stays resident across layers

        # Only row 0 of the final activation is consumed downstream.
        @pl.when(li == last)
        def _():
            out_ref[...] = x_new.reshape(Bb, S, D)[:, 0:1, :]

    return kernel


# ----------------------------------------------------------------------------
# VMEM budget helpers + block-batch chooser.
# ----------------------------------------------------------------------------
def _pick_vmem_limit():
    """Scoped-VMEM budget: ~85% of physical VMEM, capped at 112 MiB."""
    try:
        cap = getattr(pltpu.get_tpu_info(), "vmem_capacity_bytes", None)
        if cap:
            return int(min(int(cap * 0.85), 112 * 1024 * 1024))
    except Exception:
        pass
    return 64 * 1024 * 1024


def _vmem_bytes_estimate(bb, S, D, Di, H):
    f32, bf16 = 4, 2
    scratch = 2 * bb * S * D * f32                                 # x + ctx
    act_in = 2 * (bb * S * 3 * f32 + bb * S * D * f32 + bb * S * f32)
    outs = 2 * (bb * D * f32 + bb * H * S * S * f32)
    layer_w = 2 * ((3 * D * D + D * D + D * Di + Di * D) * bf16
                   + (3 * D + D + 4 * D + Di) * f32)               # dbl-buffered
    invariant = (3 * D + 2 * D) * f32 + 2 * D * D * bf16 + S * D * f32
    return scratch + act_in + outs + layer_w + invariant


def _pick_block_batch(B, S, D, Di, H, vmem_limit):
    budget = int(vmem_limit * 0.75)
    divisors = [d for d in range(1, B + 1) if B % d == 0]
    fits = [d for d in divisors if _vmem_bytes_estimate(d, S, D, Di, H) <= budget]
    if not fits:
        return 1
    # Prefer >= 2 parallel grid steps so both v7x TensorCores get work.
    parallel_ok = [d for d in fits if B // d >= 2]
    return (parallel_ok or fits)[-1]


# ----------------------------------------------------------------------------
# Sinusoid positional table + synthetic parameter init (per-layer weights are
# stacked along a leading L axis so one pallas_call covers the whole stack).
# ----------------------------------------------------------------------------
def sinusoid_table(seq_length, d_hid):
    pos = np.arange(seq_length)[:, None].astype(np.float64)
    hid = np.arange(d_hid)
    angle = pos / np.power(10000.0, 2.0 * (hid // 2) / float(d_hid))
    table = np.zeros((seq_length, d_hid), dtype=np.float64)
    table[:, 0::2] = np.sin(angle[:, 0::2])
    table[:, 1::2] = np.cos(angle[:, 1::2])
    return jnp.asarray(table, dtype=jnp.float32)


def init_params(key, n_layer, d_model, n_head):
    d_inner = d_model                       # module passes d_inner = d_model
    scale = 0.1
    ks = jax.random.split(key, 13)

    def w(k, shape, dtype=_MM_DTYPE):
        return (jax.random.normal(k, shape, jnp.float32) * scale).astype(dtype)

    return dict(
        n_head=n_head,
        # input projection / embedding (wp is VPU-only -> keep f32)
        wp=w(ks[0], (3, d_model), jnp.float32),
        bp=w(ks[1], (d_model,), jnp.float32),
        emb_table=w(ks[2], (300, d_model), jnp.float32),
        wfc=w(ks[3], (2 * d_model, d_model)),
        bfc=w(ks[4], (d_model,), jnp.float32),
        pos_table=sinusoid_table(4000, d_model),
        # per-layer weights stacked on a leading L axis
        wqkv=w(ks[5], (n_layer, d_model, 3 * d_model)),
        bqkv=w(ks[6], (n_layer, 1, 3 * d_model), jnp.float32),
        wo=w(ks[7], (n_layer, d_model, d_model)),
        bo=w(ks[8], (n_layer, 1, d_model), jnp.float32),
        ln1g=jnp.ones((n_layer, 1, d_model), jnp.float32),
        ln1b=jnp.zeros((n_layer, 1, d_model), jnp.float32),
        w1=w(ks[9], (n_layer, d_model, d_inner)),
        b1=w(ks[10], (n_layer, 1, d_inner), jnp.float32),
        w2=w(ks[11], (n_layer, d_inner, d_model)),
        b2=w(ks[12], (n_layer, 1, d_model), jnp.float32),
        ln2g=jnp.ones((n_layer, 1, d_model), jnp.float32),
        ln2b=jnp.zeros((n_layer, 1, d_model), jnp.float32),
    )


# ----------------------------------------------------------------------------
# Full forward pass: one pallas_call for the entire encoder.
# ----------------------------------------------------------------------------
def transformer_encoder_forward(params, position_features, id_features, pad_mask,
                                block_batch=None):
    B, S0, _ = position_features.shape
    D = params["emb_table"].shape[1]
    H = params["n_head"]
    L = params["wqkv"].shape[0]
    Di = params["w1"].shape[-1]
    assert D % H == 0
    d_k = D // H

    # Pad the sequence axis to a multiple of 8 (sublane) so in-kernel reshapes
    # between (Bb, S, .) and (Bb*S, .) stay tile-preserving; padded keys are
    # masked out of the softmax and padded rows are sliced off below.
    S = ((S0 + 7) // 8) * 8
    pad = S - S0
    if pad:
        position_features = jnp.pad(position_features, ((0, 0), (0, pad), (0, 0)))
        id_features = jnp.pad(id_features, ((0, 0), (0, pad)))
        pad_mask = jnp.pad(pad_mask, ((0, 0), (0, pad)))

    # plain-JAX glue: embedding gather (+relu), positional-table slice,
    # additive mask, fc-weight split (avoids a wrapper-side concat).
    id_feat = jnp.maximum(params["emb_table"][id_features], 0.0)    # (B,S,D) f32
    pos_table = params["pos_table"][:S]                             # (S, D)
    mask_add = ((pad_mask.astype(jnp.float32) - 1.0) * 1e9).reshape(B, 1, S)
    wfc_p, wfc_i = params["wfc"][:D], params["wfc"][D:]

    attn_4d = S >= 128          # lane-dense flat layout only for small S
    vmem_limit = _pick_vmem_limit()
    Bb = int(block_batch) if block_batch else _pick_block_batch(
        B, S, D, Di, H, vmem_limit)
    assert B % Bb == 0

    kernel = _make_fused_encoder_kernel(H, d_k, attn_4d)

    if attn_4d:
        attn_shape, attn_block = (B, H, S, S), (Bb, H, S, S)
    else:
        attn_shape, attn_block = (B, S, H * S), (Bb, S, H * S)

    def batch_spec(block):
        n = len(block)
        return pl.BlockSpec(block, lambda b, l: (b,) + (0,) * (n - 1))

    def layer_spec(shape):
        n = len(shape)
        return pl.BlockSpec((1,) + tuple(shape[1:]),
                            lambda b, l: (l,) + (0,) * (n - 1))

    def build(single_buffer_invariants):
        def const_spec(shape):
            n = len(shape)
            idx = lambda b, l: (0,) * n
            if single_buffer_invariants:
                # grid-invariant -> second pipeline buffer is pure VMEM waste
                return pl.BlockSpec(shape, idx, pipeline_mode=pl.Buffered(1))
            return pl.BlockSpec(shape, idx)

        in_specs = [
            batch_spec((Bb, S, 3)),                               # position feats
            batch_spec((Bb, S, D)),                               # relu(id emb)
            batch_spec((Bb, 1, S)),                               # additive mask
            const_spec((3, D)), const_spec((1, D)),               # wp, bp
            const_spec((D, D)), const_spec((D, D)),               # wfc_p, wfc_i
            const_spec((1, D)), const_spec((S, D)),               # bfc, pos table
            layer_spec((L, D, 3 * D)), layer_spec((L, 1, 3 * D)), # wqkv, bqkv
            layer_spec((L, D, D)), layer_spec((L, 1, D)),         # wo, bo
            layer_spec((L, 1, D)), layer_spec((L, 1, D)),         # ln1 g/b
            layer_spec((L, D, Di)), layer_spec((L, 1, Di)),       # w1, b1
            layer_spec((L, Di, D)), layer_spec((L, 1, D)),        # w2, b2
            layer_spec((L, 1, D)), layer_spec((L, 1, D)),         # ln2 g/b
        ]
        out_specs = [
            batch_spec((Bb, 1, D)),          # row 0 of the encoder output only
            batch_spec(attn_block),          # last layer attention probs
        ]
        out_shape = (jax.ShapeDtypeStruct((B, 1, D), jnp.float32),
                     jax.ShapeDtypeStruct(attn_shape, jnp.float32))
        return pl.pallas_call(
            kernel,
            out_shape=out_shape,
            grid_spec=pltpu.PrefetchScalarGridSpec(
                num_scalar_prefetch=0,
                grid=(B // Bb, L),            # layer axis innermost / sequential
                in_specs=in_specs,
                out_specs=out_specs,
                scratch_shapes=[pltpu.VMEM((Bb * S, D), jnp.float32),   # activation
                                pltpu.VMEM((Bb * S, D), jnp.float32)]), # attn ctx
            compiler_params=pltpu.CompilerParams(
                dimension_semantics=("parallel", "arbitrary"),
                vmem_limit_bytes=vmem_limit),
        )

    args = (position_features, id_feat, mask_add,
            params["wp"], params["bp"].reshape(1, D), wfc_p, wfc_i,
            params["bfc"].reshape(1, D), pos_table,
            params["wqkv"], params["bqkv"], params["wo"], params["bo"],
            params["ln1g"], params["ln1b"], params["w1"], params["b1"],
            params["w2"], params["b2"], params["ln2g"], params["ln2b"])

    outs = None
    options = (True, False) if hasattr(pl, "Buffered") else (False,)
    for single_buffer in options:
        try:
            outs = jax.block_until_ready(build(single_buffer)(*args))
            break
        except Exception:
            if not single_buffer:         # no fallback left -> real error
                raise
    enc, attn_raw = outs

    if attn_4d:
        attn = attn_raw                                           # (B, H, S, S)
    else:
        attn = attn_raw.reshape(B, S, H, S).transpose(0, 2, 1, 3)
    if pad:
        attn = attn[:, :, :S0, :S0]
    return enc[:, 0], attn


if __name__ == "__main__":
    B, S, D, H, L = 4, 8, 32, 4, 2
    key = jax.random.PRNGKey(0)
    k_pos, k_id, k_par = jax.random.split(key, 3)

    position_features = jax.random.normal(k_pos, (B, S, 3), dtype=jnp.float32)
    id_features = jax.random.randint(k_id, (B, S), 0, 300)
    pad_mask = jnp.ones((B, S), dtype=jnp.float32).at[:, -2:].set(0.0)

    params = init_params(k_par, n_layer=L, d_model=D, n_head=H)

    out, attn = transformer_encoder_forward(
        params, position_features, id_features, pad_mask)
    jax.block_until_ready((out, attn))

    assert out.shape == (B, D)
    assert attn.shape == (B, H, S, S)
    print("KERNEL_OK")
</pallas_src>

<mosaic_0001>
module attributes {stable_mosaic.version = 11 : i64} {
  func.func @kernel(%arg0: i32, %arg1: i32, %arg2: memref<2x8x3xf32, #tpu.memory_space<vmem>>, %arg3: memref<2x8x32xf32, #tpu.memory_space<vmem>>, %arg4: memref<2x1x8xf32, #tpu.memory_space<vmem>>, %arg5: memref<3x32xf32, #tpu.memory_space<vmem>>, %arg6: memref<1x32xf32, #tpu.memory_space<vmem>>, %arg7: memref<32x32xbf16, #tpu.memory_space<vmem>>, %arg8: memref<32x32xbf16, #tpu.memory_space<vmem>>, %arg9: memref<1x32xf32, #tpu.memory_space<vmem>>, %arg10: memref<8x32xf32, #tpu.memory_space<vmem>>, %arg11: memref<1x32x96xbf16, #tpu.memory_space<vmem>>, %arg12: memref<1x1x96xf32, #tpu.memory_space<vmem>>, %arg13: memref<1x32x32xbf16, #tpu.memory_space<vmem>>, %arg14: memref<1x1x32xf32, #tpu.memory_space<vmem>>, %arg15: memref<1x1x32xf32, #tpu.memory_space<vmem>>, %arg16: memref<1x1x32xf32, #tpu.memory_space<vmem>>, %arg17: memref<1x32x32xbf16, #tpu.memory_space<vmem>>, %arg18: memref<1x1x32xf32, #tpu.memory_space<vmem>>, %arg19: memref<1x32x32xbf16, #tpu.memory_space<vmem>>, %arg20: memref<1x1x32xf32, #tpu.memory_space<vmem>>, %arg21: memref<1x1x32xf32, #tpu.memory_space<vmem>>, %arg22: memref<1x1x32xf32, #tpu.memory_space<vmem>>, %arg23: memref<2x1x32xf32, #tpu.memory_space<vmem>>, %arg24: memref<2x8x32xf32, #tpu.memory_space<vmem>>, %arg25: memref<16x32xf32, #tpu.memory_space<vmem>>, %arg26: memref<16x32xf32, #tpu.memory_space<vmem>>) attributes {dimension_semantics = [#tpu.dimension_semantics<parallel>, #tpu.dimension_semantics<arbitrary>], iteration_bounds = array<i64: 2, 2>, scalar_prefetch = 0 : i64, scratch_operands = 2 : i64, tpu.core_type = #tpu.core_type<tc>, window_params = [{transform_indices = @transform_0, window_bounds = array<i64: 2, 8, 3>}, {transform_indices = @transform_1, window_bounds = array<i64: 2, 8, 32>}, {transform_indices = @transform_2, window_bounds = array<i64: 2, 1, 8>}, {pipeline_mode = #tpu.pipeline_mode<synchronous>, transform_indices = @transform_3, window_bounds = array<i64: 3, 32>}, {pipeline_mode = #tpu.pipeline_mode<synchronous>, transform_indices = @transform_4, window_bounds = array<i64: 1, 32>}, {pipeline_mode = #tpu.pipeline_mode<synchronous>, transform_indices = @transform_5, window_bounds = array<i64: 32, 32>}, {pipeline_mode = #tpu.pipeline_mode<synchronous>, transform_indices = @transform_6, window_bounds = array<i64: 32, 32>}, {pipeline_mode = #tpu.pipeline_mode<synchronous>, transform_indices = @transform_7, window_bounds = array<i64: 1, 32>}, {pipeline_mode = #tpu.pipeline_mode<synchronous>, transform_indices = @transform_8, window_bounds = array<i64: 8, 32>}, {transform_indices = @transform_9, window_bounds = array<i64: 1, 32, 96>}, {transform_indices = @transform_10, window_bounds = array<i64: 1, 1, 96>}, {transform_indices = @transform_11, window_bounds = array<i64: 1, 32, 32>}, {transform_indices = @transform_12, window_bounds = array<i64: 1, 1, 32>}, {transform_indices = @transform_13, window_bounds = array<i64: 1, 1, 32>}, {transform_indices = @transform_14, window_bounds = array<i64: 1, 1, 32>}, {transform_indices = @transform_15, window_bounds = array<i64: 1, 32, 32>}, {transform_indices = @transform_16, window_bounds = array<i64: 1, 1, 32>}, {transform_indices = @transform_17, window_bounds = array<i64: 1, 32, 32>}, {transform_indices = @transform_18, window_bounds = array<i64: 1, 1, 32>}, {transform_indices = @transform_19, window_bounds = array<i64: 1, 1, 32>}, {transform_indices = @transform_20, window_bounds = array<i64: 1, 1, 32>}, {transform_indices = @transform_21, window_bounds = array<i64: 2, 1, 32>}, {transform_indices = @transform_22, window_bounds = array<i64: 2, 8, 32>}]} {
    %c0_i32 = arith.constant 0 : i32
    %0 = arith.cmpi eq, %arg1, %c0_i32 : i32
    %1 = arith.extui %0 : i1 to i32
    %c0_i32_0 = arith.constant 0 : i32
    %2 = arith.cmpi ne, %1, %c0_i32_0 : i32
    scf.if %2 {
      %c0_93 = arith.constant 0 : index
      %c0_94 = arith.constant 0 : index
      %c0_95 = arith.constant 0 : index
      %211 = vector.load %arg2[%c0_93, %c0_94, %c0_95] : memref<2x8x3xf32, #tpu.memory_space<vmem>>, vector<2x8x3xf32>
      %212 = vector.shape_cast %211 : vector<2x8x3xf32> to vector<16x3xf32>
      %cst_96 = arith.constant 0.000000e+00 : f32
      %213 = vector.broadcast %cst_96 : f32 to vector<16x32xf32>
      %c0_97 = arith.constant 0 : index
      %c0_98 = arith.constant 0 : index
      %214 = vector.load %arg6[%c0_97, %c0_98] : memref<1x32xf32, #tpu.memory_space<vmem>>, vector<1x32xf32>
      %215 = vector.broadcast %214 : vector<1x32xf32> to vector<16x32xf32>
      %216 = arith.addf %213, %215 : vector<16x32xf32>
      %217 = vector.extract_strided_slice %212 {offsets = [0, 0], sizes = [16, 1], strides = [1, 1]} : vector<16x3xf32> to vector<16x1xf32>
      %c0_99 = arith.constant 0 : index
      %c0_100 = arith.constant 0 : index
      %218 = vector.load %arg5[%c0_99, %c0_100] : memref<3x32xf32, #tpu.memory_space<vmem>>, vector<1x32xf32>
      %219 = vector.broadcast %217 : vector<16x1xf32> to vector<16x32xf32>
      %220 = vector.broadcast %218 : vector<1x32xf32> to vector<16x32xf32>
      %221 = arith.mulf %219, %220 : vector<16x32xf32>
      %222 = arith.addf %216, %221 : vector<16x32xf32>
      %223 = vector.extract_strided_slice %212 {offsets = [0, 1], sizes = [16, 1], strides = [1, 1]} : vector<16x3xf32> to vector<16x1xf32>
      %c1 = arith.constant 1 : index
      %c0_101 = arith.constant 0 : index
      %224 = vector.load %arg5[%c1, %c0_101] : memref<3x32xf32, #tpu.memory_space<vmem>>, vector<1x32xf32>
      %225 = vector.broadcast %223 : vector<16x1xf32> to vector<16x32xf32>
      %226 = vector.broadcast %224 : vector<1x32xf32> to vector<16x32xf32>
      %227 = arith.mulf %225, %226 : vector<16x32xf32>
      %228 = arith.addf %222, %227 : vector<16x32xf32>
      %229 = vector.extract_strided_slice %212 {offsets = [0, 2], sizes = [16, 1], strides = [1, 1]} : vector<16x3xf32> to vector<16x1xf32>
      %c2 = arith.constant 2 : index
      %c0_102 = arith.constant 0 : index
      %230 = vector.load %arg5[%c2, %c0_102] : memref<3x32xf32, #tpu.memory_space<vmem>>, vector<1x32xf32>
      %231 = vector.broadcast %229 : vector<16x1xf32> to vector<16x32xf32>
      %232 = vector.broadcast %230 : vector<1x32xf32> to vector<16x32xf32>
      %233 = arith.mulf %231, %232 : vector<16x32xf32>
      %234 = arith.addf %228, %233 : vector<16x32xf32>
      %cst_103 = arith.constant 0.000000e+00 : f32
      %235 = vector.broadcast %cst_103 : f32 to vector<16x32xf32>
      %236 = arith.maximumf %234, %235 : vector<16x32xf32>
      %c0_104 = arith.constant 0 : index
      %c0_105 = arith.constant 0 : index
      %c0_106 = arith.constant 0 : index
      %237 = vector.load %arg3[%c0_104, %c0_105, %c0_106] : memref<2x8x32xf32, #tpu.memory_space<vmem>>, vector<2x8x32xf32>
      %238 = vector.shape_cast %237 : vector<2x8x32xf32> to vector<16x32xf32>
      %239 = arith.truncf %236 : vector<16x32xf32> to vector<16x32xbf16>
      %c0_107 = arith.constant 0 : index
      %c0_108 = arith.constant 0 : index
      %240 = vector.load %arg7[%c0_107, %c0_108] : memref<32x32xbf16, #tpu.memory_space<vmem>>, vector<32x32xbf16>
      %cst_109 = arith.constant dense<0.000000e+00> : vector<16x32xf32>
      %241 = tpu.matmul %239, %240, %cst_109 {dimension_numbers = #tpu.dot_dimension_numbers<[1], [0], [0], [1], [0, 0, 1, 1], [], []>} : vector<16x32xbf16>, vector<32x32xbf16>, vector<16x32xf32> -> vector<16x32xf32>
      %242 = arith.truncf %238 : vector<16x32xf32> to vector<16x32xbf16>
      %c0_110 = arith.constant 0 : index
      %c0_111 = arith.constant 0 : index
      %243 = vector.load %arg8[%c0_110, %c0_111] : memref<32x32xbf16, #tpu.memory_space<vmem>>, vector<32x32xbf16>
      %cst_112 = arith.constant dense<0.000000e+00> : vector<16x32xf32>
      %244 = tpu.matmul %242, %243, %cst_112 {dimension_numbers = #tpu.dot_dimension_numbers<[1], [0], [0], [1], [0, 0, 1, 1], [], []>} : vector<16x32xbf16>, vector<32x32xbf16>, vector<16x32xf32> -> vector<16x32xf32>
      %245 = arith.addf %241, %244 : vector<16x32xf32>
      %c0_113 = arith.constant 0 : index
      %c0_114 = arith.constant 0 : index
      %246 = vector.load %arg9[%c0_113, %c0_114] : memref<1x32xf32, #tpu.memory_space<vmem>>, vector<1x32xf32>
      %247 = vector.broadcast %246 : vector<1x32xf32> to vector<16x32xf32>
      %248 = arith.addf %245, %247 : vector<16x32xf32>
      %249 = vector.shape_cast %248 : vector<16x32xf32> to vector<2x8x32xf32>
      %c0_115 = arith.constant 0 : index
      %c0_116 = arith.constant 0 : index
      %250 = vector.load %arg10[%c0_115, %c0_116] : memref<8x32xf32, #tpu.memory_space<vmem>>, vector<8x32xf32>
      %251 = vector.shape_cast %250 : vector<8x32xf32> to vector<1x8x32xf32>
      %252 = vector.broadcast %251 : vector<1x8x32xf32> to vector<2x8x32xf32>
      %253 = arith.addf %249, %252 : vector<2x8x32xf32>
      %254 = vector.shape_cast %253 : vector<2x8x32xf32> to vector<16x32xf32>
      %c0_117 = arith.constant 0 : index
      %c0_118 = arith.constant 0 : index
      %255 = vector.load %arg25[%c0_117, %c0_118] : memref<16x32xf32, #tpu.memory_space<vmem>>, vector<16x32xf32>
      tpu.vector_store %arg25[%c0_117, %c0_118], %254 {strides = array<i32>} : memref<16x32xf32, #tpu.memory_space<vmem>>, vector<16x32xf32>,
    } else {
    }
    %c0 = arith.constant 0 : index
    %c0_1 = arith.constant 0 : index
    %3 = vector.load %arg25[%c0, %c0_1] : memref<16x32xf32, #tpu.memory_space<vmem>>, vector<16x32xf32>
    %4 = arith.truncf %3 : vector<16x32xf32> to vector<16x32xbf16>
    %c0_2 = arith.constant 0 : index
    %c0_3 = arith.constant 0 : index
    %c0_4 = arith.constant 0 : index
    %5 = vector.load %arg4[%c0_2, %c0_3, %c0_4] : memref<2x1x8xf32, #tpu.memory_space<vmem>>, vector<2x1x8xf32>
    %c0_5 = arith.constant 0 : index
    %c0_6 = arith.constant 0 : index
    %c0_7 = arith.constant 0 : index
    %6 = vector.load %arg11[%c0_5, %c0_6, %c0_7] : memref<1x32x96xbf16, #tpu.memory_space<vmem>>, vector<1x32x96xbf16>
    %7 = vector.shape_cast %6 : vector<1x32x96xbf16> to vector<32x96xbf16>
    %cst = arith.constant dense<0.000000e+00> : vector<16x96xf32>
    %8 = tpu.matmul %4, %7, %cst {dimension_numbers = #tpu.dot_dimension_numbers<[1], [0], [0], [1], [0, 0, 1, 1], [], []>} : vector<16x32xbf16>, vector<32x96xbf16>, vector<16x96xf32> -> vector<16x96xf32>
    %c0_8 = arith.constant 0 : index
    %c0_9 = arith.constant 0 : index
    %c0_10 = arith.constant 0 : index
    %9 = vector.load %arg12[%c0_8, %c0_9, %c0_10] : memref<1x1x96xf32, #tpu.memory_space<vmem>>, vector<1x1x96xf32>
    %10 = vector.shape_cast %9 : vector<1x1x96xf32> to vector<1x96xf32>
    %11 = vector.broadcast %10 : vector<1x96xf32> to vector<16x96xf32>
    %12 = arith.addf %8, %11 : vector<16x96xf32>
    %13 = vector.shape_cast %12 : vector<16x96xf32> to vector<2x8x96xf32>
    %14 = vector.extract_strided_slice %13 {offsets = [0, 0, 0], sizes = [2, 8, 8], strides = [1, 1, 1]} : vector<2x8x96xf32> to vector<2x8x8xf32>
    %15 = arith.truncf %14 : vector<2x8x8xf32> to vector<2x8x8xbf16>
    %16 = vector.extract_strided_slice %13 {offsets = [0, 0, 32], sizes = [2, 8, 8], strides = [1, 1, 1]} : vector<2x8x96xf32> to vector<2x8x8xf32>
    %17 = arith.truncf %16 : vector<2x8x8xf32> to vector<2x8x8xbf16>
    %18 = vector.extract_strided_slice %13 {offsets = [0, 0, 64], sizes = [2, 8, 8], strides = [1, 1, 1]} : vector<2x8x96xf32> to vector<2x8x8xf32>
    %19 = arith.truncf %18 : vector<2x8x8xf32> to vector<2x8x8xbf16>
    "tpu.trace_start"() <{level = 10 : i32, message = "bqd,bkd->bqk"}> : () -> ()
    %cst_11 = arith.constant dense<0.000000e+00> : vector<2x8x8xf32>
    %20 = tpu.matmul %15, %17, %cst_11 {dimension_numbers = #tpu.dot_dimension_numbers<[2], [2], [1], [1], [0, 0, 0, 1, 1, 1], [0], [0]>} : vector<2x8x8xbf16>, vector<2x8x8xbf16>, vector<2x8x8xf32> -> vector<2x8x8xf32>
    "tpu.trace_stop"() : () -> ()
    %cst_12 = arith.constant 0.353553385 : f32
    %21 = vector.broadcast %cst_12 : f32 to vector<2x8x8xf32>
    %22 = arith.mulf %20, %21 : vector<2x8x8xf32>
    %23 = vector.broadcast %5 : vector<2x1x8xf32> to vector<2x8x8xf32>
    %24 = arith.addf %22, %23 : vector<2x8x8xf32>
    %cst_13 = arith.constant dense<0xFF800000> : vector<2x8xf32>
    %25 = vector.multi_reduction <maximumf>, %24, %cst_13 [2] : vector<2x8x8xf32> to vector<2x8xf32>
    %26 = vector.shape_cast %25 : vector<2x8xf32> to vector<2x8x1xf32>
    %27 = vector.broadcast %26 : vector<2x8x1xf32> to vector<2x8x8xf32>
    %28 = arith.subf %24, %27 : vector<2x8x8xf32>
    %29 = math.exp %28 : vector<2x8x8xf32>
    %cst_14 = arith.constant dense<0.000000e+00> : vector<2x8xf32>
    %30 = vector.multi_reduction <add>, %29, %cst_14 [2] : vector<2x8x8xf32> to vector<2x8xf32>
    %31 = vector.shape_cast %30 : vector<2x8xf32> to vector<2x8x1xf32>
    %32 = tpu.reciprocal %31 {approx = true} : vector<2x8x1xf32> -> vector<2x8x1xf32>
    %33 = vector.broadcast %32 : vector<2x8x1xf32> to vector<2x8x8xf32>
    %34 = arith.mulf %29, %33 : vector<2x8x8xf32>
    %c1_i32 = arith.constant 1 : i32
    %35 = arith.cmpi eq, %arg1, %c1_i32 : i32
    %36 = arith.extui %35 : i1 to i32
    %c0_i32_15 = arith.constant 0 : i32
    %37 = arith.cmpi ne, %36, %c0_i32_15 : i32
    scf.if %37 {
      %c0_93 = arith.constant 0 : index
      %c0_94 = arith.constant 0 : index
      %c0_95 = arith.constant 0 : index
      %211 = vector.load %arg24[%c0_93, %c0_94, %c0_95] : memref<2x8x32xf32, #tpu.memory_space<vmem>>, vector<2x8x8xf32>
      tpu.vector_store %arg24[%c0_93, %c0_94, %c0_95], %34 {strides = array<i32>} : memref<2x8x32xf32, #tpu.memory_space<vmem>>, vector<2x8x8xf32>,
    } else {
    }
    %38 = arith.truncf %34 : vector<2x8x8xf32> to vector<2x8x8xbf16>
    "tpu.trace_start"() <{level = 10 : i32, message = "bqk,bkd->bqd"}> : () -> ()
    %cst_16 = arith.constant dense<0.000000e+00> : vector<2x8x8xf32>
    %39 = tpu.matmul %38, %19, %cst_16 {dimension_numbers = #tpu.dot_dimension_numbers<[2], [1], [1], [2], [0, 0, 0, 1, 1, 2], [0], [0]>} : vector<2x8x8xbf16>, vector<2x8x8xbf16>, vector<2x8x8xf32> -> vector<2x8x8xf32>
    "tpu.trace_stop"() : () -> ()
    %40 = vector.shape_cast %39 : vector<2x8x8xf32> to vector<16x8xf32>
    %c0_17 = arith.constant 0 : index
    %c0_18 = arith.constant 0 : index
    %41 = vector.load %arg26[%c0_17, %c0_18] : memref<16x32xf32, #tpu.memory_space<vmem>>, vector<16x8xf32>
    tpu.vector_store %arg26[%c0_17, %c0_18], %40 {strides = array<i32>} : memref<16x32xf32, #tpu.memory_space<vmem>>, vector<16x8xf32>,
    %42 = vector.extract_strided_slice %13 {offsets = [0, 0, 8], sizes = [2, 8, 8], strides = [1, 1, 1]} : vector<2x8x96xf32> to vector<2x8x8xf32>
    %43 = arith.truncf %42 : vector<2x8x8xf32> to vector<2x8x8xbf16>
    %44 = vector.extract_strided_slice %13 {offsets = [0, 0, 40], sizes = [2, 8, 8], strides = [1, 1, 1]} : vector<2x8x96xf32> to vector<2x8x8xf32>
    %45 = arith.truncf %44 : vector<2x8x8xf32> to vector<2x8x8xbf16>
    %46 = vector.extract_strided_slice %13 {offsets = [0, 0, 72], sizes = [2, 8, 8], strides = [1, 1, 1]} : vector<2x8x96xf32> to vector<2x8x8xf32>
    %47 = arith.truncf %46 : vector<2x8x8xf32> to vector<2x8x8xbf16>
    "tpu.trace_start"() <{level = 10 : i32, message = "bqd,bkd->bqk"}> : () -> ()
    %cst_19 = arith.constant dense<0.000000e+00> : vector<2x8x8xf32>
    %48 = tpu.matmul %43, %45, %cst_19 {dimension_numbers = #tpu.dot_dimension_numbers<[2], [2], [1], [1], [0, 0, 0, 1, 1, 1], [0], [0]>} : vector<2x8x8xbf16>, vector<2x8x8xbf16>, vector<2x8x8xf32> -> vector<2x8x8xf32>
    "tpu.trace_stop"() : () -> ()
    %cst_20 = arith.constant 0.353553385 : f32
    %49 = vector.broadcast %cst_20 : f32 to vector<2x8x8xf32>
    %50 = arith.mulf %48, %49 : vector<2x8x8xf32>
    %51 = vector.broadcast %5 : vector<2x1x8xf32> to vector<2x8x8xf32>
    %52 = arith.addf %50, %51 : vector<2x8x8xf32>
    %cst_21 = arith.constant dense<0xFF800000> : vector<2x8xf32>
    %53 = vector.multi_reduction <maximumf>, %52, %cst_21 [2] : vector<2x8x8xf32> to vector<2x8xf32>
    %54 = vector.shape_cast %53 : vector<2x8xf32> to vector<2x8x1xf32>
    %55 = vector.broadcast %54 : vector<2x8x1xf32> to vector<2x8x8xf32>
    %56 = arith.subf %52, %55 : vector<2x8x8xf32>
    %57 = math.exp %56 : vector<2x8x8xf32>
    %cst_22 = arith.constant dense<0.000000e+00> : vector<2x8xf32>
    %58 = vector.multi_reduction <add>, %57, %cst_22 [2] : vector<2x8x8xf32> to vector<2x8xf32>
    %59 = vector.shape_cast %58 : vector<2x8xf32> to vector<2x8x1xf32>
    %60 = tpu.reciprocal %59 {approx = true} : vector<2x8x1xf32> -> vector<2x8x1xf32>
    %61 = vector.broadcast %60 : vector<2x8x1xf32> to vector<2x8x8xf32>
    %62 = arith.mulf %57, %61 : vector<2x8x8xf32>
    %c1_i32_23 = arith.constant 1 : i32
    %63 = arith.cmpi eq, %arg1, %c1_i32_23 : i32
    %64 = arith.extui %63 : i1 to i32
    %c0_i32_24 = arith.constant 0 : i32
    %65 = arith.cmpi ne, %64, %c0_i32_24 : i32
    scf.if %65 {
      %c0_93 = arith.constant 0 : index
      %c0_94 = arith.constant 0 : index
      %c8_95 = arith.constant 8 : index
      %211 = vector.load %arg24[%c0_93, %c0_94, %c8_95] : memref<2x8x32xf32, #tpu.memory_space<vmem>>, vector<2x8x8xf32>
      tpu.vector_store %arg24[%c0_93, %c0_94, %c8_95], %62 {strides = array<i32>} : memref<2x8x32xf32, #tpu.memory_space<vmem>>, vector<2x8x8xf32>,
    } else {
    }
    %66 = arith.truncf %62 : vector<2x8x8xf32> to vector<2x8x8xbf16>
    "tpu.trace_start"() <{level = 10 : i32, message = "bqk,bkd->bqd"}> : () -> ()
    %cst_25 = arith.constant dense<0.000000e+00> : vector<2x8x8xf32>
    %67 = tpu.matmul %66, %47, %cst_25 {dimension_numbers = #tpu.dot_dimension_numbers<[2], [1], [1], [2], [0, 0, 0, 1, 1, 2], [0], [0]>} : vector<2x8x8xbf16>, vector<2x8x8xbf16>, vector<2x8x8xf32> -> vector<2x8x8xf32>
    "tpu.trace_stop"() : () -> ()
    %68 = vector.shape_cast %67 : vector<2x8x8xf32> to vector<16x8xf32>
    %c0_26 = arith.constant 0 : index
    %c8 = arith.constant 8 : index
    %69 = vector.load %arg26[%c0_26, %c8] : memref<16x32xf32, #tpu.memory_space<vmem>>, vector<16x8xf32>
    tpu.vector_store %arg26[%c0_26, %c8], %68 {strides = array<i32>} : memref<16x32xf32, #tpu.memory_space<vmem>>, vector<16x8xf32>,
    %70 = vector.extract_strided_slice %13 {offsets = [0, 0, 16], sizes = [2, 8, 8], strides = [1, 1, 1]} : vector<2x8x96xf32> to vector<2x8x8xf32>
    %71 = arith.truncf %70 : vector<2x8x8xf32> to vector<2x8x8xbf16>
    %72 = vector.extract_strided_slice %13 {offsets = [0, 0, 48], sizes = [2, 8, 8], strides = [1, 1, 1]} : vector<2x8x96xf32> to vector<2x8x8xf32>
    %73 = arith.truncf %72 : vector<2x8x8xf32> to vector<2x8x8xbf16>
    %74 = vector.extract_strided_slice %13 {offsets = [0, 0, 80], sizes = [2, 8, 8], strides = [1, 1, 1]} : vector<2x8x96xf32> to vector<2x8x8xf32>
    %75 = arith.truncf %74 : vector<2x8x8xf32> to vector<2x8x8xbf16>
    "tpu.trace_start"() <{level = 10 : i32, message = "bqd,bkd->bqk"}> : () -> ()
    %cst_27 = arith.constant dense<0.000000e+00> : vector<2x8x8xf32>
    %76 = tpu.matmul %71, %73, %cst_27 {dimension_numbers = #tpu.dot_dimension_numbers<[2], [2], [1], [1], [0, 0, 0, 1, 1, 1], [0], [0]>} : vector<2x8x8xbf16>, vector<2x8x8xbf16>, vector<2x8x8xf32> -> vector<2x8x8xf32>
    "tpu.trace_stop"() : () -> ()
    %cst_28 = arith.constant 0.353553385 : f32
    %77 = vector.broadcast %cst_28 : f32 to vector<2x8x8xf32>
    %78 = arith.mulf %76, %77 : vector<2x8x8xf32>
    %79 = vector.broadcast %5 : vector<2x1x8xf32> to vector<2x8x8xf32>
    %80 = arith.addf %78, %79 : vector<2x8x8xf32>
    %cst_29 = arith.constant dense<0xFF800000> : vector<2x8xf32>
    %81 = vector.multi_reduction <maximumf>, %80, %cst_29 [2] : vector<2x8x8xf32> to vector<2x8xf32>
    %82 = vector.shape_cast %81 : vector<2x8xf32> to vector<2x8x1xf32>
    %83 = vector.broadcast %82 : vector<2x8x1xf32> to vector<2x8x8xf32>
    %84 = arith.subf %80, %83 : vector<2x8x8xf32>
    %85 = math.exp %84 : vector<2x8x8xf32>
    %cst_30 = arith.constant dense<0.000000e+00> : vector<2x8xf32>
    %86 = vector.multi_reduction <add>, %85, %cst_30 [2] : vector<2x8x8xf32> to vector<2x8xf32>
    %87 = vector.shape_cast %86 : vector<2x8xf32> to vector<2x8x1xf32>
    %88 = tpu.reciprocal %87 {approx = true} : vector<2x8x1xf32> -> vector<2x8x1xf32>
    %89 = vector.broadcast %88 : vector<2x8x1xf32> to vector<2x8x8xf32>
    %90 = arith.mulf %85, %89 : vector<2x8x8xf32>
    %c1_i32_31 = arith.constant 1 : i32
    %91 = arith.cmpi eq, %arg1, %c1_i32_31 : i32
    %92 = arith.extui %91 : i1 to i32
    %c0_i32_32 = arith.constant 0 : i32
    %93 = arith.cmpi ne, %92, %c0_i32_32 : i32
    scf.if %93 {
      %c0_93 = arith.constant 0 : index
      %c0_94 = arith.constant 0 : index
      %c16_95 = arith.constant 16 : index
      %211 = vector.load %arg24[%c0_93, %c0_94, %c16_95] : memref<2x8x32xf32, #tpu.memory_space<vmem>>, vector<2x8x8xf32>
      tpu.vector_store %arg24[%c0_93, %c0_94, %c16_95], %90 {strides = array<i32>} : memref<2x8x32xf32, #tpu.memory_space<vmem>>, vector<2x8x8xf32>,
    } else {
    }
    %94 = arith.truncf %90 : vector<2x8x8xf32> to vector<2x8x8xbf16>
    "tpu.trace_start"() <{level = 10 : i32, message = "bqk,bkd->bqd"}> : () -> ()
    %cst_33 = arith.constant dense<0.000000e+00> : vector<2x8x8xf32>
    %95 = tpu.matmul %94, %75, %cst_33 {dimension_numbers = #tpu.dot_dimension_numbers<[2], [1], [1], [2], [0, 0, 0, 1, 1, 2], [0], [0]>} : vector<2x8x8xbf16>, vector<2x8x8xbf16>, vector<2x8x8xf32> -> vector<2x8x8xf32>
    "tpu.trace_stop"() : () -> ()
    %96 = vector.shape_cast %95 : vector<2x8x8xf32> to vector<16x8xf32>
    %c0_34 = arith.constant 0 : index
    %c16 = arith.constant 16 : index
    %97 = vector.load %arg26[%c0_34, %c16] : memref<16x32xf32, #tpu.memory_space<vmem>>, vector<16x8xf32>
    tpu.vector_store %arg26[%c0_34, %c16], %96 {strides = array<i32>} : memref<16x32xf32, #tpu.memory_space<vmem>>, vector<16x8xf32>,
    %98 = vector.extract_strided_slice %13 {offsets = [0, 0, 24], sizes = [2, 8, 8], strides = [1, 1, 1]} : vector<2x8x96xf32> to vector<2x8x8xf32>
    %99 = arith.truncf %98 : vector<2x8x8xf32> to vector<2x8x8xbf16>
    %100 = vector.extract_strided_slice %13 {offsets = [0, 0, 56], sizes = [2, 8, 8], strides = [1, 1, 1]} : vector<2x8x96xf32> to vector<2x8x8xf32>
    %101 = arith.truncf %100 : vector<2x8x8xf32> to vector<2x8x8xbf16>
    %102 = vector.extract_strided_slice %13 {offsets = [0, 0, 88], sizes = [2, 8, 8], strides = [1, 1, 1]} : vector<2x8x96xf32> to vector<2x8x8xf32>
    %103 = arith.truncf %102 : vector<2x8x8xf32> to vector<2x8x8xbf16>
    "tpu.trace_start"() <{level = 10 : i32, message = "bqd,bkd->bqk"}> : () -> ()
    %cst_35 = arith.constant dense<0.000000e+00> : vector<2x8x8xf32>
    %104 = tpu.matmul %99, %101, %cst_35 {dimension_numbers = #tpu.dot_dimension_numbers<[2], [2], [1], [1], [0, 0, 0, 1, 1, 1], [0], [0]>} : vector<2x8x8xbf16>, vector<2x8x8xbf16>, vector<2x8x8xf32> -> vector<2x8x8xf32>
    "tpu.trace_stop"() : () -> ()
    %cst_36 = arith.constant 0.353553385 : f32
    %105 = vector.broadcast %cst_36 : f32 to vector<2x8x8xf32>
    %106 = arith.mulf %104, %105 : vector<2x8x8xf32>
    %107 = vector.broadcast %5 : vector<2x1x8xf32> to vector<2x8x8xf32>
    %108 = arith.addf %106, %107 : vector<2x8x8xf32>
    %cst_37 = arith.constant dense<0xFF800000> : vector<2x8xf32>
    %109 = vector.multi_reduction <maximumf>, %108, %cst_37 [2] : vector<2x8x8xf32> to vector<2x8xf32>
    %110 = vector.shape_cast %109 : vector<2x8xf32> to vector<2x8x1xf32>
    %111 = vector.broadcast %110 : vector<2x8x1xf32> to vector<2x8x8xf32>
    %112 = arith.subf %108, %111 : vector<2x8x8xf32>
    %113 = math.exp %112 : vector<2x8x8xf32>
    %cst_38 = arith.constant dense<0.000000e+00> : vector<2x8xf32>
    %114 = vector.multi_reduction <add>, %113, %cst_38 [2] : vector<2x8x8xf32> to vector<2x8xf32>
    %115 = vector.shape_cast %114 : vector<2x8xf32> to vector<2x8x1xf32>
    %116 = tpu.reciprocal %115 {approx = true} : vector<2x8x1xf32> -> vector<2x8x1xf32>
    %117 = vector.broadcast %116 : vector<2x8x1xf32> to vector<2x8x8xf32>
    %118 = arith.mulf %113, %117 : vector<2x8x8xf32>
    %c1_i32_39 = arith.constant 1 : i32
    %119 = arith.cmpi eq, %arg1, %c1_i32_39 : i32
    %120 = arith.extui %119 : i1 to i32
    %c0_i32_40 = arith.constant 0 : i32
    %121 = arith.cmpi ne, %120, %c0_i32_40 : i32
    scf.if %121 {
      %c0_93 = arith.constant 0 : index
      %c0_94 = arith.constant 0 : index
      %c24_95 = arith.constant 24 : index
      %211 = vector.load %arg24[%c0_93, %c0_94, %c24_95] : memref<2x8x32xf32, #tpu.memory_space<vmem>>, vector<2x8x8xf32>
      tpu.vector_store %arg24[%c0_93, %c0_94, %c24_95], %118 {strides = array<i32>} : memref<2x8x32xf32, #tpu.memory_space<vmem>>, vector<2x8x8xf32>,
    } else {
    }
    %122 = arith.truncf %118 : vector<2x8x8xf32> to vector<2x8x8xbf16>
    "tpu.trace_start"() <{level = 10 : i32, message = "bqk,bkd->bqd"}> : () -> ()
    %cst_41 = arith.constant dense<0.000000e+00> : vector<2x8x8xf32>
    %123 = tpu.matmul %122, %103, %cst_41 {dimension_numbers = #tpu.dot_dimension_numbers<[2], [1], [1], [2], [0, 0, 0, 1, 1, 2], [0], [0]>} : vector<2x8x8xbf16>, vector<2x8x8xbf16>, vector<2x8x8xf32> -> vector<2x8x8xf32>
    "tpu.trace_stop"() : () -> ()
    %124 = vector.shape_cast %123 : vector<2x8x8xf32> to vector<16x8xf32>
    %c0_42 = arith.constant 0 : index
    %c24 = arith.constant 24 : index
    %125 = vector.load %arg26[%c0_42, %c24] : memref<16x32xf32, #tpu.memory_space<vmem>>, vector<16x8xf32>
    tpu.vector_store %arg26[%c0_42, %c24], %124 {strides = array<i32>} : memref<16x32xf32, #tpu.memory_space<vmem>>, vector<16x8xf32>,
    %c0_43 = arith.constant 0 : index
    %c0_44 = arith.constant 0 : index
    %126 = vector.load %arg26[%c0_43, %c0_44] : memref<16x32xf32, #tpu.memory_space<vmem>>, vector<16x32xf32>
    %127 = arith.truncf %126 : vector<16x32xf32> to vector<16x32xbf16>
    %c0_45 = arith.constant 0 : index
    %c0_46 = arith.constant 0 : index
    %c0_47 = arith.constant 0 : index
    %128 = vector.load %arg13[%c0_45, %c0_46, %c0_47] : memref<1x32x32xbf16, #tpu.memory_space<vmem>>, vector<1x32x32xbf16>
    %129 = vector.shape_cast %128 : vector<1x32x32xbf16> to vector<32x32xbf16>
    %cst_48 = arith.constant dense<0.000000e+00> : vector<16x32xf32>
    %130 = tpu.matmul %127, %129, %cst_48 {dimension_numbers = #tpu.dot_dimension_numbers<[1], [0], [0], [1], [0, 0, 1, 1], [], []>} : vector<16x32xbf16>, vector<32x32xbf16>, vector<16x32xf32> -> vector<16x32xf32>
    %c0_49 = arith.constant 0 : index
    %c0_50 = arith.constant 0 : index
    %c0_51 = arith.constant 0 : index
    %131 = vector.load %arg14[%c0_49, %c0_50, %c0_51] : memref<1x1x32xf32, #tpu.memory_space<vmem>>, vector<1x1x32xf32>
    %132 = vector.shape_cast %131 : vector<1x1x32xf32> to vector<1x32xf32>
    %133 = vector.broadcast %132 : vector<1x32xf32> to vector<16x32xf32>
    %134 = arith.addf %130, %133 : vector<16x32xf32>
    %135 = arith.addf %134, %3 : vector<16x32xf32>
    %cst_52 = arith.constant dense<0.000000e+00> : vector<16xf32>
    %136 = vector.multi_reduction <add>, %135, %cst_52 [1] : vector<16x32xf32> to vector<16xf32>
    %137 = vector.shape_cast %136 : vector<16xf32> to vector<16x1xf32>
    %cst_53 = arith.constant 3.200000e+01 : f32
    %138 = vector.broadcast %cst_53 : f32 to vector<16x1xf32>
    %139 = arith.divf %137, %138 : vector<16x1xf32>
    %140 = vector.broadcast %139 : vector<16x1xf32> to vector<16x32xf32>
    %141 = arith.subf %135, %140 : vector<16x32xf32>
    %142 = arith.mulf %141, %141 : vector<16x32xf32>
    %cst_54 = arith.constant dense<0.000000e+00> : vector<16xf32>
    %143 = vector.multi_reduction <add>, %142, %cst_54 [1] : vector<16x32xf32> to vector<16xf32>
    %144 = vector.shape_cast %143 : vector<16xf32> to vector<16x1xf32>
    %cst_55 = arith.constant 3.200000e+01 : f32
    %145 = vector.broadcast %cst_55 : f32 to vector<16x1xf32>
    %146 = arith.divf %144, %145 : vector<16x1xf32>
    %147 = vector.broadcast %139 : vector<16x1xf32> to vector<16x32xf32>
    %148 = arith.subf %135, %147 : vector<16x32xf32>
    %cst_56 = arith.constant 9.99999997E-7 : f32
    %149 = vector.broadcast %cst_56 : f32 to vector<16x1xf32>
    %150 = arith.addf %146, %149 : vector<16x1xf32>
    %151 = math.rsqrt %150 : vector<16x1xf32>
    %152 = vector.broadcast %151 : vector<16x1xf32> to vector<16x32xf32>
    %153 = arith.mulf %148, %152 : vector<16x32xf32>
    %c0_57 = arith.constant 0 : index
    %c0_58 = arith.constant 0 : index
    %c0_59 = arith.constant 0 : index
    %154 = vector.load %arg15[%c0_57, %c0_58, %c0_59] : memref<1x1x32xf32, #tpu.memory_space<vmem>>, vector<1x1x32xf32>
    %155 = vector.shape_cast %154 : vector<1x1x32xf32> to vector<1x32xf32>
    %156 = vector.broadcast %155 : vector<1x32xf32> to vector<16x32xf32>
    %157 = arith.mulf %153, %156 : vector<16x32xf32>
    %c0_60 = arith.constant 0 : index
    %c0_61 = arith.constant 0 : index
    %c0_62 = arith.constant 0 : index
    %158 = vector.load %arg16[%c0_60, %c0_61, %c0_62] : memref<1x1x32xf32, #tpu.memory_space<vmem>>, vector<1x1x32xf32>
    %159 = vector.shape_cast %158 : vector<1x1x32xf32> to vector<1x32xf32>
    %160 = vector.broadcast %159 : vector<1x32xf32> to vector<16x32xf32>
    %161 = arith.addf %157, %160 : vector<16x32xf32>
    %162 = arith.truncf %161 : vector<16x32xf32> to vector<16x32xbf16>
    %c0_63 = arith.constant 0 : index
    %c0_64 = arith.constant 0 : index
    %c0_65 = arith.constant 0 : index
    %163 = vector.load %arg17[%c0_63, %c0_64, %c0_65] : memref<1x32x32xbf16, #tpu.memory_space<vmem>>, vector<1x32x32xbf16>
    %164 = vector.shape_cast %163 : vector<1x32x32xbf16> to vector<32x32xbf16>
    %cst_66 = arith.constant dense<0.000000e+00> : vector<16x32xf32>
    %165 = tpu.matmul %162, %164, %cst_66 {dimension_numbers = #tpu.dot_dimension_numbers<[1], [0], [0], [1], [0, 0, 1, 1], [], []>} : vector<16x32xbf16>, vector<32x32xbf16>, vector<16x32xf32> -> vector<16x32xf32>
    %c0_67 = arith.constant 0 : index
    %c0_68 = arith.constant 0 : index
    %c0_69 = arith.constant 0 : index
    %166 = vector.load %arg18[%c0_67, %c0_68, %c0_69] : memref<1x1x32xf32, #tpu.memory_space<vmem>>, vector<1x1x32xf32>
    %167 = vector.shape_cast %166 : vector<1x1x32xf32> to vector<1x32xf32>
    %168 = vector.broadcast %167 : vector<1x32xf32> to vector<16x32xf32>
    %169 = arith.addf %165, %168 : vector<16x32xf32>
    %cst_70 = arith.constant 0.000000e+00 : f32
    %170 = vector.broadcast %cst_70 : f32 to vector<16x32xf32>
    %171 = arith.maximumf %169, %170 : vector<16x32xf32>
    %172 = arith.truncf %171 : vector<16x32xf32> to vector<16x32xbf16>
    %c0_71 = arith.constant 0 : index
    %c0_72 = arith.constant 0 : index
    %c0_73 = arith.constant 0 : index
    %173 = vector.load %arg19[%c0_71, %c0_72, %c0_73] : memref<1x32x32xbf16, #tpu.memory_space<vmem>>, vector<1x32x32xbf16>
    %174 = vector.shape_cast %173 : vector<1x32x32xbf16> to vector<32x32xbf16>
    %cst_74 = arith.constant dense<0.000000e+00> : vector<16x32xf32>
    %175 = tpu.matmul %172, %174, %cst_74 {dimension_numbers = #tpu.dot_dimension_numbers<[1], [0], [0], [1], [0, 0, 1, 1], [], []>} : vector<16x32xbf16>, vector<32x32xbf16>, vector<16x32xf32> -> vector<16x32xf32>
    %c0_75 = arith.constant 0 : index
    %c0_76 = arith.constant 0 : index
    %c0_77 = arith.constant 0 : index
    %176 = vector.load %arg20[%c0_75, %c0_76, %c0_77] : memref<1x1x32xf32, #tpu.memory_space<vmem>>, vector<1x1x32xf32>
    %177 = vector.shape_cast %176 : vector<1x1x32xf32> to vector<1x32xf32>
    %178 = vector.broadcast %177 : vector<1x32xf32> to vector<16x32xf32>
    %179 = arith.addf %175, %178 : vector<16x32xf32>
    %180 = arith.addf %179, %161 : vector<16x32xf32>
    %cst_78 = arith.constant dense<0.000000e+00> : vector<16xf32>
    %181 = vector.multi_reduction <add>, %180, %cst_78 [1] : vector<16x32xf32> to vector<16xf32>
    %182 = vector.shape_cast %181 : vector<16xf32> to vector<16x1xf32>
    %cst_79 = arith.constant 3.200000e+01 : f32
    %183 = vector.broadcast %cst_79 : f32 to vector<16x1xf32>
    %184 = arith.divf %182, %183 : vector<16x1xf32>
    %185 = vector.broadcast %184 : vector<16x1xf32> to vector<16x32xf32>
    %186 = arith.subf %180, %185 : vector<16x32xf32>
    %187 = arith.mulf %186, %186 : vector<16x32xf32>
    %cst_80 = arith.constant dense<0.000000e+00> : vector<16xf32>
    %188 = vector.multi_reduction <add>, %187, %cst_80 [1] : vector<16x32xf32> to vector<16xf32>
    %189 = vector.shape_cast %188 : vector<16xf32> to vector<16x1xf32>
    %cst_81 = arith.constant 3.200000e+01 : f32
    %190 = vector.broadcast %cst_81 : f32 to vector<16x1xf32>
    %191 = arith.divf %189, %190 : vector<16x1xf32>
    %192 = vector.broadcast %184 : vector<16x1xf32> to vector<16x32xf32>
    %193 = arith.subf %180, %192 : vector<16x32xf32>
    %cst_82 = arith.constant 9.99999997E-7 : f32
    %194 = vector.broadcast %cst_82 : f32 to vector<16x1xf32>
    %195 = arith.addf %191, %194 : vector<16x1xf32>
    %196 = math.rsqrt %195 : vector<16x1xf32>
    %197 = vector.broadcast %196 : vector<16x1xf32> to vector<16x32xf32>
    %198 = arith.mulf %193, %197 : vector<16x32xf32>
    %c0_83 = arith.constant 0 : index
    %c0_84 = arith.constant 0 : index
    %c0_85 = arith.constant 0 : index
    %199 = vector.load %arg21[%c0_83, %c0_84, %c0_85] : memref<1x1x32xf32, #tpu.memory_space<vmem>>, vector<1x1x32xf32>
    %200 = vector.shape_cast %199 : vector<1x1x32xf32> to vector<1x32xf32>
    %201 = vector.broadcast %200 : vector<1x32xf32> to vector<16x32xf32>
    %202 = arith.mulf %198, %201 : vector<16x32xf32>
    %c0_86 = arith.constant 0 : index
    %c0_87 = arith.constant 0 : index
    %c0_88 = arith.constant 0 : index
    %203 = vector.load %arg22[%c0_86, %c0_87, %c0_88] : memref<1x1x32xf32, #tpu.memory_space<vmem>>, vector<1x1x32xf32>
    %204 = vector.shape_cast %203 : vector<1x1x32xf32> to vector<1x32xf32>
    %205 = vector.broadcast %204 : vector<1x32xf32> to vector<16x32xf32>
    %206 = arith.addf %202, %205 : vector<16x32xf32>
    %c0_89 = arith.constant 0 : index
    %c0_90 = arith.constant 0 : index
    %207 = vector.load %arg25[%c0_89, %c0_90] : memref<16x32xf32, #tpu.memory_space<vmem>>, vector<16x32xf32>
    tpu.vector_store %arg25[%c0_89, %c0_90], %206 {strides = array<i32>} : memref<16x32xf32, #tpu.memory_space<vmem>>, vector<16x32xf32>,
    %c1_i32_91 = arith.constant 1 : i32
    %208 = arith.cmpi eq, %arg1, %c1_i32_91 : i32
    %209 = arith.extui %208 : i1 to i32
    %c0_i32_92 = arith.constant 0 : i32
    %210 = arith.cmpi ne, %209, %c0_i32_92 : i32
    scf.if %210 {
      %211 = vector.shape_cast %206 : vector<16x32xf32> to vector<2x8x32xf32>
      %212 = vector.extract_strided_slice %211 {offsets = [0, 0, 0], sizes = [2, 1, 32], strides = [1, 1, 1]} : vector<2x8x32xf32> to vector<2x1x32xf32>
      %c0_93 = arith.constant 0 : index
      %c0_94 = arith.constant 0 : index
      %c0_95 = arith.constant 0 : index
      %213 = vector.load %arg23[%c0_93, %c0_94, %c0_95] : memref<2x1x32xf32, #tpu.memory_space<vmem>>, vector<2x1x32xf32>
      tpu.vector_store %arg23[%c0_93, %c0_94, %c0_95], %212 {strides = array<i32>} : memref<2x1x32xf32, #tpu.memory_space<vmem>>, vector<2x1x32xf32>,
    } else {
    }
    return
  }
  func.func @transform_0(%arg0: i32, %arg1: i32) -> (i32, i32, i32) {
    %c0_i32 = arith.constant 0 : i32
    %c0_i32_0 = arith.constant 0 : i32
    %c0_i32_1 = arith.constant 0 : i32
    return %arg0, %c0_i32, %c0_i32_0 : i32, i32, i32
  }
  func.func @transform_1(%arg0: i32, %arg1: i32) -> (i32, i32, i32) {
    %c0_i32 = arith.constant 0 : i32
    %c0_i32_0 = arith.constant 0 : i32
    %c0_i32_1 = arith.constant 0 : i32
    return %arg0, %c0_i32, %c0_i32_0 : i32, i32, i32
  }
  func.func @transform_2(%arg0: i32, %arg1: i32) -> (i32, i32, i32) {
    %c0_i32 = arith.constant 0 : i32
    %c0_i32_0 = arith.constant 0 : i32
    %c0_i32_1 = arith.constant 0 : i32
    return %arg0, %c0_i32, %c0_i32_0 : i32, i32, i32
  }
  func.func @transform_3(%arg0: i32, %arg1: i32) -> (i32, i32) {
    %c0_i32 = arith.constant 0 : i32
    %c0_i32_0 = arith.constant 0 : i32
    %c0_i32_1 = arith.constant 0 : i32
    return %c0_i32, %c0_i32_0 : i32, i32
  }
  func.func @transform_4(%arg0: i32, %arg1: i32) -> (i32, i32) {
    %c0_i32 = arith.constant 0 : i32
    %c0_i32_0 = arith.constant 0 : i32
    %c0_i32_1 = arith.constant 0 : i32
    return %c0_i32, %c0_i32_0 : i32, i32
  }
  func.func @transform_5(%arg0: i32, %arg1: i32) -> (i32, i32) {
    %c0_i32 = arith.constant 0 : i32
    %c0_i32_0 = arith.constant 0 : i32
    %c0_i32_1 = arith.constant 0 : i32
    return %c0_i32, %c0_i32_0 : i32, i32
  }
  func.func @transform_6(%arg0: i32, %arg1: i32) -> (i32, i32) {
    %c0_i32 = arith.constant 0 : i32
    %c0_i32_0 = arith.constant 0 : i32
    %c0_i32_1 = arith.constant 0 : i32
    return %c0_i32, %c0_i32_0 : i32, i32
  }
  func.func @transform_7(%arg0: i32, %arg1: i32) -> (i32, i32) {
    %c0_i32 = arith.constant 0 : i32
    %c0_i32_0 = arith.constant 0 : i32
    %c0_i32_1 = arith.constant 0 : i32
    return %c0_i32, %c0_i32_0 : i32, i32
  }
  func.func @transform_8(%arg0: i32, %arg1: i32) -> (i32, i32) {
    %c0_i32 = arith.constant 0 : i32
    %c0_i32_0 = arith.constant 0 : i32
    %c0_i32_1 = arith.constant 0 : i32
    return %c0_i32, %c0_i32_0 : i32, i32
  }
  func.func @transform_9(%arg0: i32, %arg1: i32) -> (i32, i32, i32) {
    %c0_i32 = arith.constant 0 : i32
    %c0_i32_0 = arith.constant 0 : i32
    %c0_i32_1 = arith.constant 0 : i32
    return %arg1, %c0_i32, %c0_i32_0 : i32, i32, i32
  }
  func.func @transform_10(%arg0: i32, %arg1: i32) -> (i32, i32, i32) {
    %c0_i32 = arith.constant 0 : i32
    %c0_i32_0 = arith.constant 0 : i32
    %c0_i32_1 = arith.constant 0 : i32
    return %arg1, %c0_i32, %c0_i32_0 : i32, i32, i32
  }
  func.func @transform_11(%arg0: i32, %arg1: i32) -> (i32, i32, i32) {
    %c0_i32 = arith.constant 0 : i32
    %c0_i32_0 = arith.constant 0 : i32
    %c0_i32_1 = arith.constant 0 : i32
    return %arg1, %c0_i32, %c0_i32_0 : i32, i32, i32
  }
  func.func @transform_12(%arg0: i32, %arg1: i32) -> (i32, i32, i32) {
    %c0_i32 = arith.constant 0 : i32
    %c0_i32_0 = arith.constant 0 : i32
    %c0_i32_1 = arith.constant 0 : i32
    return %arg1, %c0_i32, %c0_i32_0 : i32, i32, i32
  }
  func.func @transform_13(%arg0: i32, %arg1: i32) -> (i32, i32, i32) {
    %c0_i32 = arith.constant 0 : i32
    %c0_i32_0 = arith.constant 0 : i32
    %c0_i32_1 = arith.constant 0 : i32
    return %arg1, %c0_i32, %c0_i32_0 : i32, i32, i32
  }
  func.func @transform_14(%arg0: i32, %arg1: i32) -> (i32, i32, i32) {
    %c0_i32 = arith.constant 0 : i32
    %c0_i32_0 = arith.constant 0 : i32
    %c0_i32_1 = arith.constant 0 : i32
    return %arg1, %c0_i32, %c0_i32_0 : i32, i32, i32
  }
  func.func @transform_15(%arg0: i32, %arg1: i32) -> (i32, i32, i32) {
    %c0_i32 = arith.constant 0 : i32
    %c0_i32_0 = arith.constant 0 : i32
    %c0_i32_1 = arith.constant 0 : i32
    return %arg1, %c0_i32, %c0_i32_0 : i32, i32, i32
  }
  func.func @transform_16(%arg0: i32, %arg1: i32) -> (i32, i32, i32) {
    %c0_i32 = arith.constant 0 : i32
    %c0_i32_0 = arith.constant 0 : i32
    %c0_i32_1 = arith.constant 0 : i32
    return %arg1, %c0_i32, %c0_i32_0 : i32, i32, i32
  }
  func.func @transform_17(%arg0: i32, %arg1: i32) -> (i32, i32, i32) {
    %c0_i32 = arith.constant 0 : i32
    %c0_i32_0 = arith.constant 0 : i32
    %c0_i32_1 = arith.constant 0 : i32
    return %arg1, %c0_i32, %c0_i32_0 : i32, i32, i32
  }
  func.func @transform_18(%arg0: i32, %arg1: i32) -> (i32, i32, i32) {
    %c0_i32 = arith.constant 0 : i32
    %c0_i32_0 = arith.constant 0 : i32
    %c0_i32_1 = arith.constant 0 : i32
    return %arg1, %c0_i32, %c0_i32_0 : i32, i32, i32
  }
  func.func @transform_19(%arg0: i32, %arg1: i32) -> (i32, i32, i32) {
    %c0_i32 = arith.constant 0 : i32
    %c0_i32_0 = arith.constant 0 : i32
    %c0_i32_1 = arith.constant 0 : i32
    return %arg1, %c0_i32, %c0_i32_0 : i32, i32, i32
  }
  func.func @transform_20(%arg0: i32, %arg1: i32) -> (i32, i32, i32) {
    %c0_i32 = arith.constant 0 : i32
    %c0_i32_0 = arith.constant 0 : i32
    %c0_i32_1 = arith.constant 0 : i32
    return %arg1, %c0_i32, %c0_i32_0 : i32, i32, i32
  }
  func.func @transform_21(%arg0: i32, %arg1: i32) -> (i32, i32, i32) {
    %c0_i32 = arith.constant 0 : i32
    %c0_i32_0 = arith.constant 0 : i32
    %c0_i32_1 = arith.constant 0 : i32
    return %arg0, %c0_i32, %c0_i32_0 : i32, i32, i32
  }
  func.func @transform_22(%arg0: i32, %arg1: i32) -> (i32, i32, i32) {
    %c0_i32 = arith.constant 0 : i32
    %c0_i32_0 = arith.constant 0 : i32
    %c0_i32_1 = arith.constant 0 : i32
    return %arg0, %c0_i32, %c0_i32_0 : i32, i32, i32
  }
}

module attributes {stable_mosaic.version = 11 : i64} {
  func.func @kernel(%arg0: i32, %arg1: i32, %arg2: memref<2x8x3xf32, #tpu.memory_space<vmem>>, %arg3: memref<2x8x32xf32, #tpu.memory_space<vmem>>, %arg4: memref<2x1x8xf32, #tpu.memory_space<vmem>>, %arg5: memref<3x32xf32, #tpu.memory_space<vmem>>, %arg6: memref<1x32xf32, #tpu.memory_space<vmem>>, %arg7: memref<32x32xbf16, #tpu.memory_space<vmem>>, %arg8: memref<32x32xbf16, #tpu.memory_space<vmem>>, %arg9: memref<1x32xf32, #tpu.memory_space<vmem>>, %arg10: memref<8x32xf32, #tpu.memory_space<vmem>>, %arg11: memref<1x32x96xbf16, #tpu.memory_space<vmem>>, %arg12: memref<1x1x96xf32, #tpu.memory_space<vmem>>, %arg13: memref<1x32x32xbf16, #tpu.memory_space<vmem>>, %arg14: memref<1x1x32xf32, #tpu.memory_space<vmem>>, %arg15: memref<1x1x32xf32, #tpu.memory_space<vmem>>, %arg16: memref<1x1x32xf32, #tpu.memory_space<vmem>>, %arg17: memref<1x32x32xbf16, #tpu.memory_space<vmem>>, %arg18: memref<1x1x32xf32, #tpu.memory_space<vmem>>, %arg19: memref<1x32x32xbf16, #tpu.memory_space<vmem>>, %arg20: memref<1x1x32xf32, #tpu.memory_space<vmem>>, %arg21: memref<1x1x32xf32, #tpu.memory_space<vmem>>, %arg22: memref<1x1x32xf32, #tpu.memory_space<vmem>>, %arg23: memref<2x1x32xf32, #tpu.memory_space<vmem>>, %arg24: memref<2x8x32xf32, #tpu.memory_space<vmem>>, %arg25: memref<16x32xf32, #tpu.memory_space<vmem>>, %arg26: memref<16x32xf32, #tpu.memory_space<vmem>>) attributes {dimension_semantics = [#tpu.dimension_semantics<parallel>, #tpu.dimension_semantics<arbitrary>], iteration_bounds = array<i64: 2, 2>, scalar_prefetch = 0 : i64, scratch_operands = 2 : i64, tpu.core_type = #tpu.core_type<tc>, window_params = [{transform_indices = @transform_0, window_bounds = array<i64: 2, 8, 3>}, {transform_indices = @transform_1, window_bounds = array<i64: 2, 8, 32>}, {transform_indices = @transform_2, window_bounds = array<i64: 2, 1, 8>}, {pipeline_mode = #tpu.pipeline_mode<synchronous>, transform_indices = @transform_3, window_bounds = array<i64: 3, 32>}, {pipeline_mode = #tpu.pipeline_mode<synchronous>, transform_indices = @transform_4, window_bounds = array<i64: 1, 32>}, {pipeline_mode = #tpu.pipeline_mode<synchronous>, transform_indices = @transform_5, window_bounds = array<i64: 32, 32>}, {pipeline_mode = #tpu.pipeline_mode<synchronous>, transform_indices = @transform_6, window_bounds = array<i64: 32, 32>}, {pipeline_mode = #tpu.pipeline_mode<synchronous>, transform_indices = @transform_7, window_bounds = array<i64: 1, 32>}, {pipeline_mode = #tpu.pipeline_mode<synchronous>, transform_indices = @transform_8, window_bounds = array<i64: 8, 32>}, {transform_indices = @transform_9, window_bounds = array<i64: 1, 32, 96>}, {transform_indices = @transform_10, window_bounds = array<i64: 1, 1, 96>}, {transform_indices = @transform_11, window_bounds = array<i64: 1, 32, 32>}, {transform_indices = @transform_12, window_bounds = array<i64: 1, 1, 32>}, {transform_indices = @transform_13, window_bounds = array<i64: 1, 1, 32>}, {transform_indices = @transform_14, window_bounds = array<i64: 1, 1, 32>}, {transform_indices = @transform_15, window_bounds = array<i64: 1, 32, 32>}, {transform_indices = @transform_16, window_bounds = array<i64: 1, 1, 32>}, {transform_indices = @transform_17, window_bounds = array<i64: 1, 32, 32>}, {transform_indices = @transform_18, window_bounds = array<i64: 1, 1, 32>}, {transform_indices = @transform_19, window_bounds = array<i64: 1, 1, 32>}, {transform_indices = @transform_20, window_bounds = array<i64: 1, 1, 32>}, {transform_indices = @transform_21, window_bounds = array<i64: 2, 1, 32>}, {transform_indices = @transform_22, window_bounds = array<i64: 2, 8, 32>}]} {
    %c0_i32 = arith.constant 0 : i32
    %0 = arith.cmpi eq, %arg1, %c0_i32 : i32
    %1 = arith.extui %0 : i1 to i32
    %c0_i32_0 = arith.constant 0 : i32
    %2 = arith.cmpi ne, %1, %c0_i32_0 : i32
    scf.if %2 {
      %c0_93 = arith.constant 0 : index
      %c0_94 = arith.constant 0 : index
      %c0_95 = arith.constant 0 : index
      %211 = vector.load %arg2[%c0_93, %c0_94, %c0_95] : memref<2x8x3xf32, #tpu.memory_space<vmem>>, vector<2x8x3xf32>
      %212 = vector.shape_cast %211 : vector<2x8x3xf32> to vector<16x3xf32>
      %cst_96 = arith.constant 0.000000e+00 : f32
      %213 = vector.broadcast %cst_96 : f32 to vector<16x32xf32>
      %c0_97 = arith.constant 0 : index
      %c0_98 = arith.constant 0 : index
      %214 = vector.load %arg6[%c0_97, %c0_98] : memref<1x32xf32, #tpu.memory_space<vmem>>, vector<1x32xf32>
      %215 = vector.broadcast %214 : vector<1x32xf32> to vector<16x32xf32>
      %216 = arith.addf %213, %215 : vector<16x32xf32>
      %217 = vector.extract_strided_slice %212 {offsets = [0, 0], sizes = [16, 1], strides = [1, 1]} : vector<16x3xf32> to vector<16x1xf32>
      %c0_99 = arith.constant 0 : index
      %c0_100 = arith.constant 0 : index
      %218 = vector.load %arg5[%c0_99, %c0_100] : memref<3x32xf32, #tpu.memory_space<vmem>>, vector<1x32xf32>
      %219 = vector.broadcast %217 : vector<16x1xf32> to vector<16x32xf32>
      %220 = vector.broadcast %218 : vector<1x32xf32> to vector<16x32xf32>
      %221 = arith.mulf %219, %220 : vector<16x32xf32>
      %222 = arith.addf %216, %221 : vector<16x32xf32>
      %223 = vector.extract_strided_slice %212 {offsets = [0, 1], sizes = [16, 1], strides = [1, 1]} : vector<16x3xf32> to vector<16x1xf32>
      %c1 = arith.constant 1 : index
      %c0_101 = arith.constant 0 : index
      %224 = vector.load %arg5[%c1, %c0_101] : memref<3x32xf32, #tpu.memory_space<vmem>>, vector<1x32xf32>
      %225 = vector.broadcast %223 : vector<16x1xf32> to vector<16x32xf32>
      %226 = vector.broadcast %224 : vector<1x32xf32> to vector<16x32xf32>
      %227 = arith.mulf %225, %226 : vector<16x32xf32>
      %228 = arith.addf %222, %227 : vector<16x32xf32>
      %229 = vector.extract_strided_slice %212 {offsets = [0, 2], sizes = [16, 1], strides = [1, 1]} : vector<16x3xf32> to vector<16x1xf32>
      %c2 = arith.constant 2 : index
      %c0_102 = arith.constant 0 : index
      %230 = vector.load %arg5[%c2, %c0_102] : memref<3x32xf32, #tpu.memory_space<vmem>>, vector<1x32xf32>
      %231 = vector.broadcast %229 : vector<16x1xf32> to vector<16x32xf32>
      %232 = vector.broadcast %230 : vector<1x32xf32> to vector<16x32xf32>
      %233 = arith.mulf %231, %232 : vector<16x32xf32>
      %234 = arith.addf %228, %233 : vector<16x32xf32>
      %cst_103 = arith.constant 0.000000e+00 : f32
      %235 = vector.broadcast %cst_103 : f32 to vector<16x32xf32>
      %236 = arith.maximumf %234, %235 : vector<16x32xf32>
      %c0_104 = arith.constant 0 : index
      %c0_105 = arith.constant 0 : index
      %c0_106 = arith.constant 0 : index
      %237 = vector.load %arg3[%c0_104, %c0_105, %c0_106] : memref<2x8x32xf32, #tpu.memory_space<vmem>>, vector<2x8x32xf32>
      %238 = vector.shape_cast %237 : vector<2x8x32xf32> to vector<16x32xf32>
      %239 = arith.truncf %236 : vector<16x32xf32> to vector<16x32xbf16>
      %c0_107 = arith.constant 0 : index
      %c0_108 = arith.constant 0 : index
      %240 = vector.load %arg7[%c0_107, %c0_108] : memref<32x32xbf16, #tpu.memory_space<vmem>>, vector<32x32xbf16>
      %cst_109 = arith.constant dense<0.000000e+00> : vector<16x32xf32>
      %241 = tpu.matmul %239, %240, %cst_109 {dimension_numbers = #tpu.dot_dimension_numbers<[1], [0], [0], [1], [0, 0, 1, 1], [], []>} : vector<16x32xbf16>, vector<32x32xbf16>, vector<16x32xf32> -> vector<16x32xf32>
      %242 = arith.truncf %238 : vector<16x32xf32> to vector<16x32xbf16>
      %c0_110 = arith.constant 0 : index
      %c0_111 = arith.constant 0 : index
      %243 = vector.load %arg8[%c0_110, %c0_111] : memref<32x32xbf16, #tpu.memory_space<vmem>>, vector<32x32xbf16>
      %cst_112 = arith.constant dense<0.000000e+00> : vector<16x32xf32>
      %244 = tpu.matmul %242, %243, %cst_112 {dimension_numbers = #tpu.dot_dimension_numbers<[1], [0], [0], [1], [0, 0, 1, 1], [], []>} : vector<16x32xbf16>, vector<32x32xbf16>, vector<16x32xf32> -> vector<16x32xf32>
      %245 = arith.addf %241, %244 : vector<16x32xf32>
      %c0_113 = arith.constant 0 : index
      %c0_114 = arith.constant 0 : index
      %246 = vector.load %arg9[%c0_113, %c0_114] : memref<1x32xf32, #tpu.memory_space<vmem>>, vector<1x32xf32>
      %247 = vector.broadcast %246 : vector<1x32xf32> to vector<16x32xf32>
      %248 = arith.addf %245, %247 : vector<16x32xf32>
      %249 = vector.shape_cast %248 : vector<16x32xf32> to vector<2x8x32xf32>
      %c0_115 = arith.constant 0 : index
      %c0_116 = arith.constant 0 : index
      %250 = vector.load %arg10[%c0_115, %c0_116] : memref<8x32xf32, #tpu.memory_space<vmem>>, vector<8x32xf32>
      %251 = vector.shape_cast %250 : vector<8x32xf32> to vector<1x8x32xf32>
      %252 = vector.broadcast %251 : vector<1x8x32xf32> to vector<2x8x32xf32>
      %253 = arith.addf %249, %252 : vector<2x8x32xf32>
      %254 = vector.shape_cast %253 : vector<2x8x32xf32> to vector<16x32xf32>
      %c0_117 = arith.constant 0 : index
      %c0_118 = arith.constant 0 : index
      %255 = vector.load %arg25[%c0_117, %c0_118] : memref<16x32xf32, #tpu.memory_space<vmem>>, vector<16x32xf32>
      tpu.vector_store %arg25[%c0_117, %c0_118], %254 {strides = array<i32>} : memref<16x32xf32, #tpu.memory_space<vmem>>, vector<16x32xf32>,
    } else {
    }
    %c0 = arith.constant 0 : index
    %c0_1 = arith.constant 0 : index
    %3 = vector.load %arg25[%c0, %c0_1] : memref<16x32xf32, #tpu.memory_space<vmem>>, vector<16x32xf32>
    %4 = arith.truncf %3 : vector<16x32xf32> to vector<16x32xbf16>
    %c0_2 = arith.constant 0 : index
    %c0_3 = arith.constant 0 : index
    %c0_4 = arith.constant 0 : index
    %5 = vector.load %arg4[%c0_2, %c0_3, %c0_4] : memref<2x1x8xf32, #tpu.memory_space<vmem>>, vector<2x1x8xf32>
    %c0_5 = arith.constant 0 : index
    %c0_6 = arith.constant 0 : index
    %c0_7 = arith.constant 0 : index
    %6 = vector.load %arg11[%c0_5, %c0_6, %c0_7] : memref<1x32x96xbf16, #tpu.memory_space<vmem>>, vector<1x32x96xbf16>
    %7 = vector.shape_cast %6 : vector<1x32x96xbf16> to vector<32x96xbf16>
    %cst = arith.constant dense<0.000000e+00> : vector<16x96xf32>
    %8 = tpu.matmul %4, %7, %cst {dimension_numbers = #tpu.dot_dimension_numbers<[1], [0], [0], [1], [0, 0, 1, 1], [], []>} : vector<16x32xbf16>, vector<32x96xbf16>, vector<16x96xf32> -> vector<16x96xf32>
    %c0_8 = arith.constant 0 : index
    %c0_9 = arith.constant 0 : index
    %c0_10 = arith.constant 0 : index
    %9 = vector.load %arg12[%c0_8, %c0_9, %c0_10] : memref<1x1x96xf32, #tpu.memory_space<vmem>>, vector<1x1x96xf32>
    %10 = vector.shape_cast %9 : vector<1x1x96xf32> to vector<1x96xf32>
    %11 = vector.broadcast %10 : vector<1x96xf32> to vector<16x96xf32>
    %12 = arith.addf %8, %11 : vector<16x96xf32>
    %13 = vector.shape_cast %12 : vector<16x96xf32> to vector<2x8x96xf32>
    %14 = vector.extract_strided_slice %13 {offsets = [0, 0, 0], sizes = [2, 8, 8], strides = [1, 1, 1]} : vector<2x8x96xf32> to vector<2x8x8xf32>
    %15 = arith.truncf %14 : vector<2x8x8xf32> to vector<2x8x8xbf16>
    %16 = vector.extract_strided_slice %13 {offsets = [0, 0, 32], sizes = [2, 8, 8], strides = [1, 1, 1]} : vector<2x8x96xf32> to vector<2x8x8xf32>
    %17 = arith.truncf %16 : vector<2x8x8xf32> to vector<2x8x8xbf16>
    %18 = vector.extract_strided_slice %13 {offsets = [0, 0, 64], sizes = [2, 8, 8], strides = [1, 1, 1]} : vector<2x8x96xf32> to vector<2x8x8xf32>
    %19 = arith.truncf %18 : vector<2x8x8xf32> to vector<2x8x8xbf16>
    "tpu.trace_start"() <{level = 10 : i32, message = "bqd,bkd->bqk"}> : () -> ()
    %cst_11 = arith.constant dense<0.000000e+00> : vector<2x8x8xf32>
    %20 = tpu.matmul %15, %17, %cst_11 {dimension_numbers = #tpu.dot_dimension_numbers<[2], [2], [1], [1], [0, 0, 0, 1, 1, 1], [0], [0]>} : vector<2x8x8xbf16>, vector<2x8x8xbf16>, vector<2x8x8xf32> -> vector<2x8x8xf32>
    "tpu.trace_stop"() : () -> ()
    %cst_12 = arith.constant 0.353553385 : f32
    %21 = vector.broadcast %cst_12 : f32 to vector<2x8x8xf32>
    %22 = arith.mulf %20, %21 : vector<2x8x8xf32>
    %23 = vector.broadcast %5 : vector<2x1x8xf32> to vector<2x8x8xf32>
    %24 = arith.addf %22, %23 : vector<2x8x8xf32>
    %cst_13 = arith.constant dense<0xFF800000> : vector<2x8xf32>
    %25 = vector.multi_reduction <maximumf>, %24, %cst_13 [2] : vector<2x8x8xf32> to vector<2x8xf32>
    %26 = vector.shape_cast %25 : vector<2x8xf32> to vector<2x8x1xf32>
    %27 = vector.broadcast %26 : vector<2x8x1xf32> to vector<2x8x8xf32>
    %28 = arith.subf %24, %27 : vector<2x8x8xf32>
    %29 = math.exp %28 : vector<2x8x8xf32>
    %cst_14 = arith.constant dense<0.000000e+00> : vector<2x8xf32>
    %30 = vector.multi_reduction <add>, %29, %cst_14 [2] : vector<2x8x8xf32> to vector<2x8xf32>
    %31 = vector.shape_cast %30 : vector<2x8xf32> to vector<2x8x1xf32>
    %32 = tpu.reciprocal %31 {approx = true} : vector<2x8x1xf32> -> vector<2x8x1xf32>
    %33 = vector.broadcast %32 : vector<2x8x1xf32> to vector<2x8x8xf32>
    %34 = arith.mulf %29, %33 : vector<2x8x8xf32>
    %c1_i32 = arith.constant 1 : i32
    %35 = arith.cmpi eq, %arg1, %c1_i32 : i32
    %36 = arith.extui %35 : i1 to i32
    %c0_i32_15 = arith.constant 0 : i32
    %37 = arith.cmpi ne, %36, %c0_i32_15 : i32
    scf.if %37 {
      %c0_93 = arith.constant 0 : index
      %c0_94 = arith.constant 0 : index
      %c0_95 = arith.constant 0 : index
      %211 = vector.load %arg24[%c0_93, %c0_94, %c0_95] : memref<2x8x32xf32, #tpu.memory_space<vmem>>, vector<2x8x8xf32>
      tpu.vector_store %arg24[%c0_93, %c0_94, %c0_95], %34 {strides = array<i32>} : memref<2x8x32xf32, #tpu.memory_space<vmem>>, vector<2x8x8xf32>,
    } else {
    }
    %38 = arith.truncf %34 : vector<2x8x8xf32> to vector<2x8x8xbf16>
    "tpu.trace_start"() <{level = 10 : i32, message = "bqk,bkd->bqd"}> : () -> ()
    %cst_16 = arith.constant dense<0.000000e+00> : vector<2x8x8xf32>
    %39 = tpu.matmul %38, %19, %cst_16 {dimension_numbers = #tpu.dot_dimension_numbers<[2], [1], [1], [2], [0, 0, 0, 1, 1, 2], [0], [0]>} : vector<2x8x8xbf16>, vector<2x8x8xbf16>, vector<2x8x8xf32> -> vector<2x8x8xf32>
    "tpu.trace_stop"() : () -> ()
    %40 = vector.shape_cast %39 : vector<2x8x8xf32> to vector<16x8xf32>
    %c0_17 = arith.constant 0 : index
    %c0_18 = arith.constant 0 : index
    %41 = vector.load %arg26[%c0_17, %c0_18] : memref<16x32xf32, #tpu.memory_space<vmem>>, vector<16x8xf32>
    tpu.vector_store %arg26[%c0_17, %c0_18], %40 {strides = array<i32>} : memref<16x32xf32, #tpu.memory_space<vmem>>, vector<16x8xf32>,
    %42 = vector.extract_strided_slice %13 {offsets = [0, 0, 8], sizes = [2, 8, 8], strides = [1, 1, 1]} : vector<2x8x96xf32> to vector<2x8x8xf32>
    %43 = arith.truncf %42 : vector<2x8x8xf32> to vector<2x8x8xbf16>
    %44 = vector.extract_strided_slice %13 {offsets = [0, 0, 40], sizes = [2, 8, 8], strides = [1, 1, 1]} : vector<2x8x96xf32> to vector<2x8x8xf32>
    %45 = arith.truncf %44 : vector<2x8x8xf32> to vector<2x8x8xbf16>
    %46 = vector.extract_strided_slice %13 {offsets = [0, 0, 72], sizes = [2, 8, 8], strides = [1, 1, 1]} : vector<2x8x96xf32> to vector<2x8x8xf32>
    %47 = arith.truncf %46 : vector<2x8x8xf32> to vector<2x8x8xbf16>
    "tpu.trace_start"() <{level = 10 : i32, message = "bqd,bkd->bqk"}> : () -> ()
    %cst_19 = arith.constant dense<0.000000e+00> : vector<2x8x8xf32>
    %48 = tpu.matmul %43, %45, %cst_19 {dimension_numbers = #tpu.dot_dimension_numbers<[2], [2], [1], [1], [0, 0, 0, 1, 1, 1], [0], [0]>} : vector<2x8x8xbf16>, vector<2x8x8xbf16>, vector<2x8x8xf32> -> vector<2x8x8xf32>
    "tpu.trace_stop"() : () -> ()
    %cst_20 = arith.constant 0.353553385 : f32
    %49 = vector.broadcast %cst_20 : f32 to vector<2x8x8xf32>
    %50 = arith.mulf %48, %49 : vector<2x8x8xf32>
    %51 = vector.broadcast %5 : vector<2x1x8xf32> to vector<2x8x8xf32>
    %52 = arith.addf %50, %51 : vector<2x8x8xf32>
    %cst_21 = arith.constant dense<0xFF800000> : vector<2x8xf32>
    %53 = vector.multi_reduction <maximumf>, %52, %cst_21 [2] : vector<2x8x8xf32> to vector<2x8xf32>
    %54 = vector.shape_cast %53 : vector<2x8xf32> to vector<2x8x1xf32>
    %55 = vector.broadcast %54 : vector<2x8x1xf32> to vector<2x8x8xf32>
    %56 = arith.subf %52, %55 : vector<2x8x8xf32>
    %57 = math.exp %56 : vector<2x8x8xf32>
    %cst_22 = arith.constant dense<0.000000e+00> : vector<2x8xf32>
    %58 = vector.multi_reduction <add>, %57, %cst_22 [2] : vector<2x8x8xf32> to vector<2x8xf32>
    %59 = vector.shape_cast %58 : vector<2x8xf32> to vector<2x8x1xf32>
    %60 = tpu.reciprocal %59 {approx = true} : vector<2x8x1xf32> -> vector<2x8x1xf32>
    %61 = vector.broadcast %60 : vector<2x8x1xf32> to vector<2x8x8xf32>
    %62 = arith.mulf %57, %61 : vector<2x8x8xf32>
    %c1_i32_23 = arith.constant 1 : i32
    %63 = arith.cmpi eq, %arg1, %c1_i32_23 : i32
    %64 = arith.extui %63 : i1 to i32
    %c0_i32_24 = arith.constant 0 : i32
    %65 = arith.cmpi ne, %64, %c0_i32_24 : i32
    scf.if %65 {
      %c0_93 = arith.constant 0 : index
      %c0_94 = arith.constant 0 : index
      %c8_95 = arith.constant 8 : index
      %211 = vector.load %arg24[%c0_93, %c0_94, %c8_95] : memref<2x8x32xf32, #tpu.memory_space<vmem>>, vector<2x8x8xf32>
      tpu.vector_store %arg24[%c0_93, %c0_94, %c8_95], %62 {strides = array<i32>} : memref<2x8x32xf32, #tpu.memory_space<vmem>>, vector<2x8x8xf32>,
    } else {
    }
    %66 = arith.truncf %62 : vector<2x8x8xf32> to vector<2x8x8xbf16>
    "tpu.trace_start"() <{level = 10 : i32, message = "bqk,bkd->bqd"}> : () -> ()
    %cst_25 = arith.constant dense<0.000000e+00> : vector<2x8x8xf32>
    %67 = tpu.matmul %66, %47, %cst_25 {dimension_numbers = #tpu.dot_dimension_numbers<[2], [1], [1], [2], [0, 0, 0, 1, 1, 2], [0], [0]>} : vector<2x8x8xbf16>, vector<2x8x8xbf16>, vector<2x8x8xf32> -> vector<2x8x8xf32>
    "tpu.trace_stop"() : () -> ()
    %68 = vector.shape_cast %67 : vector<2x8x8xf32> to vector<16x8xf32>
    %c0_26 = arith.constant 0 : index
    %c8 = arith.constant 8 : index
    %69 = vector.load %arg26[%c0_26, %c8] : memref<16x32xf32, #tpu.memory_space<vmem>>, vector<16x8xf32>
    tpu.vector_store %arg26[%c0_26, %c8], %68 {strides = array<i32>} : memref<16x32xf32, #tpu.memory_space<vmem>>, vector<16x8xf32>,
    %70 = vector.extract_strided_slice %13 {offsets = [0, 0, 16], sizes = [2, 8, 8], strides = [1, 1, 1]} : vector<2x8x96xf32> to vector<2x8x8xf32>
    %71 = arith.truncf %70 : vector<2x8x8xf32> to vector<2x8x8xbf16>
    %72 = vector.extract_strided_slice %13 {offsets = [0, 0, 48], sizes = [2, 8, 8], strides = [1, 1, 1]} : vector<2x8x96xf32> to vector<2x8x8xf32>
    %73 = arith.truncf %72 : vector<2x8x8xf32> to vector<2x8x8xbf16>
    %74 = vector.extract_strided_slice %13 {offsets = [0, 0, 80], sizes = [2, 8, 8], strides = [1, 1, 1]} : vector<2x8x96xf32> to vector<2x8x8xf32>
    %75 = arith.truncf %74 : vector<2x8x8xf32> to vector<2x8x8xbf16>
    "tpu.trace_start"() <{level = 10 : i32, message = "bqd,bkd->bqk"}> : () -> ()
    %cst_27 = arith.constant dense<0.000000e+00> : vector<2x8x8xf32>
    %76 = tpu.matmul %71, %73, %cst_27 {dimension_numbers = #tpu.dot_dimension_numbers<[2], [2], [1], [1], [0, 0, 0, 1, 1, 1], [0], [0]>} : vector<2x8x8xbf16>, vector<2x8x8xbf16>, vector<2x8x8xf32> -> vector<2x8x8xf32>
    "tpu.trace_stop"() : () -> ()
    %cst_28 = arith.constant 0.353553385 : f32
    %77 = vector.broadcast %cst_28 : f32 to vector<2x8x8xf32>
    %78 = arith.mulf %76, %77 : vector<2x8x8xf32>
    %79 = vector.broadcast %5 : vector<2x1x8xf32> to vector<2x8x8xf32>
    %80 = arith.addf %78, %79 : vector<2x8x8xf32>
    %cst_29 = arith.constant dense<0xFF800000> : vector<2x8xf32>
    %81 = vector.multi_reduction <maximumf>, %80, %cst_29 [2] : vector<2x8x8xf32> to vector<2x8xf32>
    %82 = vector.shape_cast %81 : vector<2x8xf32> to vector<2x8x1xf32>
    %83 = vector.broadcast %82 : vector<2x8x1xf32> to vector<2x8x8xf32>
    %84 = arith.subf %80, %83 : vector<2x8x8xf32>
    %85 = math.exp %84 : vector<2x8x8xf32>
    %cst_30 = arith.constant dense<0.000000e+00> : vector<2x8xf32>
    %86 = vector.multi_reduction <add>, %85, %cst_30 [2] : vector<2x8x8xf32> to vector<2x8xf32>
    %87 = vector.shape_cast %86 : vector<2x8xf32> to vector<2x8x1xf32>
    %88 = tpu.reciprocal %87 {approx = true} : vector<2x8x1xf32> -> vector<2x8x1xf32>
    %89 = vector.broadcast %88 : vector<2x8x1xf32> to vector<2x8x8xf32>
    %90 = arith.mulf %85, %89 : vector<2x8x8xf32>
    %c1_i32_31 = arith.constant 1 : i32
    %91 = arith.cmpi eq, %arg1, %c1_i32_31 : i32
    %92 = arith.extui %91 : i1 to i32
    %c0_i32_32 = arith.constant 0 : i32
    %93 = arith.cmpi ne, %92, %c0_i32_32 : i32
    scf.if %93 {
      %c0_93 = arith.constant 0 : index
      %c0_94 = arith.constant 0 : index
      %c16_95 = arith.constant 16 : index
      %211 = vector.load %arg24[%c0_93, %c0_94, %c16_95] : memref<2x8x32xf32, #tpu.memory_space<vmem>>, vector<2x8x8xf32>
      tpu.vector_store %arg24[%c0_93, %c0_94, %c16_95], %90 {strides = array<i32>} : memref<2x8x32xf32, #tpu.memory_space<vmem>>, vector<2x8x8xf32>,
    } else {
    }
    %94 = arith.truncf %90 : vector<2x8x8xf32> to vector<2x8x8xbf16>
    "tpu.trace_start"() <{level = 10 : i32, message = "bqk,bkd->bqd"}> : () -> ()
    %cst_33 = arith.constant dense<0.000000e+00> : vector<2x8x8xf32>
    %95 = tpu.matmul %94, %75, %cst_33 {dimension_numbers = #tpu.dot_dimension_numbers<[2], [1], [1], [2], [0, 0, 0, 1, 1, 2], [0], [0]>} : vector<2x8x8xbf16>, vector<2x8x8xbf16>, vector<2x8x8xf32> -> vector<2x8x8xf32>
    "tpu.trace_stop"() : () -> ()
    %96 = vector.shape_cast %95 : vector<2x8x8xf32> to vector<16x8xf32>
    %c0_34 = arith.constant 0 : index
    %c16 = arith.constant 16 : index
    %97 = vector.load %arg26[%c0_34, %c16] : memref<16x32xf32, #tpu.memory_space<vmem>>, vector<16x8xf32>
    tpu.vector_store %arg26[%c0_34, %c16], %96 {strides = array<i32>} : memref<16x32xf32, #tpu.memory_space<vmem>>, vector<16x8xf32>,
    %98 = vector.extract_strided_slice %13 {offsets = [0, 0, 24], sizes = [2, 8, 8], strides = [1, 1, 1]} : vector<2x8x96xf32> to vector<2x8x8xf32>
    %99 = arith.truncf %98 : vector<2x8x8xf32> to vector<2x8x8xbf16>
    %100 = vector.extract_strided_slice %13 {offsets = [0, 0, 56], sizes = [2, 8, 8], strides = [1, 1, 1]} : vector<2x8x96xf32> to vector<2x8x8xf32>
    %101 = arith.truncf %100 : vector<2x8x8xf32> to vector<2x8x8xbf16>
    %102 = vector.extract_strided_slice %13 {offsets = [0, 0, 88], sizes = [2, 8, 8], strides = [1, 1, 1]} : vector<2x8x96xf32> to vector<2x8x8xf32>
    %103 = arith.truncf %102 : vector<2x8x8xf32> to vector<2x8x8xbf16>
    "tpu.trace_start"() <{level = 10 : i32, message = "bqd,bkd->bqk"}> : () -> ()
    %cst_35 = arith.constant dense<0.000000e+00> : vector<2x8x8xf32>
    %104 = tpu.matmul %99, %101, %cst_35 {dimension_numbers = #tpu.dot_dimension_numbers<[2], [2], [1], [1], [0, 0, 0, 1, 1, 1], [0], [0]>} : vector<2x8x8xbf16>, vector<2x8x8xbf16>, vector<2x8x8xf32> -> vector<2x8x8xf32>
    "tpu.trace_stop"() : () -> ()
    %cst_36 = arith.constant 0.353553385 : f32
    %105 = vector.broadcast %cst_36 : f32 to vector<2x8x8xf32>
    %106 = arith.mulf %104, %105 : vector<2x8x8xf32>
    %107 = vector.broadcast %5 : vector<2x1x8xf32> to vector<2x8x8xf32>
    %108 = arith.addf %106, %107 : vector<2x8x8xf32>
    %cst_37 = arith.constant dense<0xFF800000> : vector<2x8xf32>
    %109 = vector.multi_reduction <maximumf>, %108, %cst_37 [2] : vector<2x8x8xf32> to vector<2x8xf32>
    %110 = vector.shape_cast %109 : vector<2x8xf32> to vector<2x8x1xf32>
    %111 = vector.broadcast %110 : vector<2x8x1xf32> to vector<2x8x8xf32>
    %112 = arith.subf %108, %111 : vector<2x8x8xf32>
    %113 = math.exp %112 : vector<2x8x8xf32>
    %cst_38 = arith.constant dense<0.000000e+00> : vector<2x8xf32>
    %114 = vector.multi_reduction <add>, %113, %cst_38 [2] : vector<2x8x8xf32> to vector<2x8xf32>
    %115 = vector.shape_cast %114 : vector<2x8xf32> to vector<2x8x1xf32>
    %116 = tpu.reciprocal %115 {approx = true} : vector<2x8x1xf32> -> vector<2x8x1xf32>
    %117 = vector.broadcast %116 : vector<2x8x1xf32> to vector<2x8x8xf32>
    %118 = arith.mulf %113, %117 : vector<2x8x8xf32>
    %c1_i32_39 = arith.constant 1 : i32
    %119 = arith.cmpi eq, %arg1, %c1_i32_39 : i32
    %120 = arith.extui %119 : i1 to i32
    %c0_i32_40 = arith.constant 0 : i32
    %121 = arith.cmpi ne, %120, %c0_i32_40 : i32
    scf.if %121 {
      %c0_93 = arith.constant 0 : index
      %c0_94 = arith.constant 0 : index
      %c24_95 = arith.constant 24 : index
      %211 = vector.load %arg24[%c0_93, %c0_94, %c24_95] : memref<2x8x32xf32, #tpu.memory_space<vmem>>, vector<2x8x8xf32>
      tpu.vector_store %arg24[%c0_93, %c0_94, %c24_95], %118 {strides = array<i32>} : memref<2x8x32xf32, #tpu.memory_space<vmem>>, vector<2x8x8xf32>,
    } else {
    }
    %122 = arith.truncf %118 : vector<2x8x8xf32> to vector<2x8x8xbf16>
    "tpu.trace_start"() <{level = 10 : i32, message = "bqk,bkd->bqd"}> : () -> ()
    %cst_41 = arith.constant dense<0.000000e+00> : vector<2x8x8xf32>
    %123 = tpu.matmul %122, %103, %cst_41 {dimension_numbers = #tpu.dot_dimension_numbers<[2], [1], [1], [2], [0, 0, 0, 1, 1, 2], [0], [0]>} : vector<2x8x8xbf16>, vector<2x8x8xbf16>, vector<2x8x8xf32> -> vector<2x8x8xf32>
    "tpu.trace_stop"() : () -> ()
    %124 = vector.shape_cast %123 : vector<2x8x8xf32> to vector<16x8xf32>
    %c0_42 = arith.constant 0 : index
    %c24 = arith.constant 24 : index
    %125 = vector.load %arg26[%c0_42, %c24] : memref<16x32xf32, #tpu.memory_space<vmem>>, vector<16x8xf32>
    tpu.vector_store %arg26[%c0_42, %c24], %124 {strides = array<i32>} : memref<16x32xf32, #tpu.memory_space<vmem>>, vector<16x8xf32>,
    %c0_43 = arith.constant 0 : index
    %c0_44 = arith.constant 0 : index
    %126 = vector.load %arg26[%c0_43, %c0_44] : memref<16x32xf32, #tpu.memory_space<vmem>>, vector<16x32xf32>
    %127 = arith.truncf %126 : vector<16x32xf32> to vector<16x32xbf16>
    %c0_45 = arith.constant 0 : index
    %c0_46 = arith.constant 0 : index
    %c0_47 = arith.constant 0 : index
    %128 = vector.load %arg13[%c0_45, %c0_46, %c0_47] : memref<1x32x32xbf16, #tpu.memory_space<vmem>>, vector<1x32x32xbf16>
    %129 = vector.shape_cast %128 : vector<1x32x32xbf16> to vector<32x32xbf16>
    %cst_48 = arith.constant dense<0.000000e+00> : vector<16x32xf32>
    %130 = tpu.matmul %127, %129, %cst_48 {dimension_numbers = #tpu.dot_dimension_numbers<[1], [0], [0], [1], [0, 0, 1, 1], [], []>} : vector<16x32xbf16>, vector<32x32xbf16>, vector<16x32xf32> -> vector<16x32xf32>
    %c0_49 = arith.constant 0 : index
    %c0_50 = arith.constant 0 : index
    %c0_51 = arith.constant 0 : index
    %131 = vector.load %arg14[%c0_49, %c0_50, %c0_51] : memref<1x1x32xf32, #tpu.memory_space<vmem>>, vector<1x1x32xf32>
    %132 = vector.shape_cast %131 : vector<1x1x32xf32> to vector<1x32xf32>
    %133 = vector.broadcast %132 : vector<1x32xf32> to vector<16x32xf32>
    %134 = arith.addf %130, %133 : vector<16x32xf32>
    %135 = arith.addf %134, %3 : vector<16x32xf32>
    %cst_52 = arith.constant dense<0.000000e+00> : vector<16xf32>
    %136 = vector.multi_reduction <add>, %135, %cst_52 [1] : vector<16x32xf32> to vector<16xf32>
    %137 = vector.shape_cast %136 : vector<16xf32> to vector<16x1xf32>
    %cst_53 = arith.constant 3.200000e+01 : f32
    %138 = vector.broadcast %cst_53 : f32 to vector<16x1xf32>
    %139 = arith.divf %137, %138 : vector<16x1xf32>
    %140 = vector.broadcast %139 : vector<16x1xf32> to vector<16x32xf32>
    %141 = arith.subf %135, %140 : vector<16x32xf32>
    %142 = arith.mulf %141, %141 : vector<16x32xf32>
    %cst_54 = arith.constant dense<0.000000e+00> : vector<16xf32>
    %143 = vector.multi_reduction <add>, %142, %cst_54 [1] : vector<16x32xf32> to vector<16xf32>
    %144 = vector.shape_cast %143 : vector<16xf32> to vector<16x1xf32>
    %cst_55 = arith.constant 3.200000e+01 : f32
    %145 = vector.broadcast %cst_55 : f32 to vector<16x1xf32>
    %146 = arith.divf %144, %145 : vector<16x1xf32>
    %147 = vector.broadcast %139 : vector<16x1xf32> to vector<16x32xf32>
    %148 = arith.subf %135, %147 : vector<16x32xf32>
    %cst_56 = arith.constant 9.99999997E-7 : f32
    %149 = vector.broadcast %cst_56 : f32 to vector<16x1xf32>
    %150 = arith.addf %146, %149 : vector<16x1xf32>
    %151 = math.rsqrt %150 : vector<16x1xf32>
    %152 = vector.broadcast %151 : vector<16x1xf32> to vector<16x32xf32>
    %153 = arith.mulf %148, %152 : vector<16x32xf32>
    %c0_57 = arith.constant 0 : index
    %c0_58 = arith.constant 0 : index
    %c0_59 = arith.constant 0 : index
    %154 = vector.load %arg15[%c0_57, %c0_58, %c0_59] : memref<1x1x32xf32, #tpu.memory_space<vmem>>, vector<1x1x32xf32>
    %155 = vector.shape_cast %154 : vector<1x1x32xf32> to vector<1x32xf32>
    %156 = vector.broadcast %155 : vector<1x32xf32> to vector<16x32xf32>
    %157 = arith.mulf %153, %156 : vector<16x32xf32>
    %c0_60 = arith.constant 0 : index
    %c0_61 = arith.constant 0 : index
    %c0_62 = arith.constant 0 : index
    %158 = vector.load %arg16[%c0_60, %c0_61, %c0_62] : memref<1x1x32xf32, #tpu.memory_space<vmem>>, vector<1x1x32xf32>
    %159 = vector.shape_cast %158 : vector<1x1x32xf32> to vector<1x32xf32>
    %160 = vector.broadcast %159 : vector<1x32xf32> to vector<16x32xf32>
    %161 = arith.addf %157, %160 : vector<16x32xf32>
    %162 = arith.truncf %161 : vector<16x32xf32> to vector<16x32xbf16>
    %c0_63 = arith.constant 0 : index
    %c0_64 = arith.constant 0 : index
    %c0_65 = arith.constant 0 : index
    %163 = vector.load %arg17[%c0_63, %c0_64, %c0_65] : memref<1x32x32xbf16, #tpu.memory_space<vmem>>, vector<1x32x32xbf16>
    %164 = vector.shape_cast %163 : vector<1x32x32xbf16> to vector<32x32xbf16>
    %cst_66 = arith.constant dense<0.000000e+00> : vector<16x32xf32>
    %165 = tpu.matmul %162, %164, %cst_66 {dimension_numbers = #tpu.dot_dimension_numbers<[1], [0], [0], [1], [0, 0, 1, 1], [], []>} : vector<16x32xbf16>, vector<32x32xbf16>, vector<16x32xf32> -> vector<16x32xf32>
    %c0_67 = arith.constant 0 : index
    %c0_68 = arith.constant 0 : index
    %c0_69 = arith.constant 0 : index
    %166 = vector.load %arg18[%c0_67, %c0_68, %c0_69] : memref<1x1x32xf32, #tpu.memory_space<vmem>>, vector<1x1x32xf32>
    %167 = vector.shape_cast %166 : vector<1x1x32xf32> to vector<1x32xf32>
    %168 = vector.broadcast %167 : vector<1x32xf32> to vector<16x32xf32>
    %169 = arith.addf %165, %168 : vector<16x32xf32>
    %cst_70 = arith.constant 0.000000e+00 : f32
    %170 = vector.broadcast %cst_70 : f32 to vector<16x32xf32>
    %171 = arith.maximumf %169, %170 : vector<16x32xf32>
    %172 = arith.truncf %171 : vector<16x32xf32> to vector<16x32xbf16>
    %c0_71 = arith.constant 0 : index
    %c0_72 = arith.constant 0 : index
    %c0_73 = arith.constant 0 : index
    %173 = vector.load %arg19[%c0_71, %c0_72, %c0_73] : memref<1x32x32xbf16, #tpu.memory_space<vmem>>, vector<1x32x32xbf16>
    %174 = vector.shape_cast %173 : vector<1x32x32xbf16> to vector<32x32xbf16>
    %cst_74 = arith.constant dense<0.000000e+00> : vector<16x32xf32>
    %175 = tpu.matmul %172, %174, %cst_74 {dimension_numbers = #tpu.dot_dimension_numbers<[1], [0], [0], [1], [0, 0, 1, 1], [], []>} : vector<16x32xbf16>, vector<32x32xbf16>, vector<16x32xf32> -> vector<16x32xf32>
    %c0_75 = arith.constant 0 : index
    %c0_76 = arith.constant 0 : index
    %c0_77 = arith.constant 0 : index
    %176 = vector.load %arg20[%c0_75, %c0_76, %c0_77] : memref<1x1x32xf32, #tpu.memory_space<vmem>>, vector<1x1x32xf32>
    %177 = vector.shape_cast %176 : vector<1x1x32xf32> to vector<1x32xf32>
    %178 = vector.broadcast %177 : vector<1x32xf32> to vector<16x32xf32>
    %179 = arith.addf %175, %178 : vector<16x32xf32>
    %180 = arith.addf %179, %161 : vector<16x32xf32>
    %cst_78 = arith.constant dense<0.000000e+00> : vector<16xf32>
    %181 = vector.multi_reduction <add>, %180, %cst_78 [1] : vector<16x32xf32> to vector<16xf32>
    %182 = vector.shape_cast %181 : vector<16xf32> to vector<16x1xf32>
    %cst_79 = arith.constant 3.200000e+01 : f32
    %183 = vector.broadcast %cst_79 : f32 to vector<16x1xf32>
    %184 = arith.divf %182, %183 : vector<16x1xf32>
    %185 = vector.broadcast %184 : vector<16x1xf32> to vector<16x32xf32>
    %186 = arith.subf %180, %185 : vector<16x32xf32>
    %187 = arith.mulf %186, %186 : vector<16x32xf32>
    %cst_80 = arith.constant dense<0.000000e+00> : vector<16xf32>
    %188 = vector.multi_reduction <add>, %187, %cst_80 [1] : vector<16x32xf32> to vector<16xf32>
    %189 = vector.shape_cast %188 : vector<16xf32> to vector<16x1xf32>
    %cst_81 = arith.constant 3.200000e+01 : f32
    %190 = vector.broadcast %cst_81 : f32 to vector<16x1xf32>
    %191 = arith.divf %189, %190 : vector<16x1xf32>
    %192 = vector.broadcast %184 : vector<16x1xf32> to vector<16x32xf32>
    %193 = arith.subf %180, %192 : vector<16x32xf32>
    %cst_82 = arith.constant 9.99999997E-7 : f32
    %194 = vector.broadcast %cst_82 : f32 to vector<16x1xf32>
    %195 = arith.addf %191, %194 : vector<16x1xf32>
    %196 = math.rsqrt %195 : vector<16x1xf32>
    %197 = vector.broadcast %196 : vector<16x1xf32> to vector<16x32xf32>
    %198 = arith.mulf %193, %197 : vector<16x32xf32>
    %c0_83 = arith.constant 0 : index
    %c0_84 = arith.constant 0 : index
    %c0_85 = arith.constant 0 : index
    %199 = vector.load %arg21[%c0_83, %c0_84, %c0_85] : memref<1x1x32xf32, #tpu.memory_space<vmem>>, vector<1x1x32xf32>
    %200 = vector.shape_cast %199 : vector<1x1x32xf32> to vector<1x32xf32>
    %201 = vector.broadcast %200 : vector<1x32xf32> to vector<16x32xf32>
    %202 = arith.mulf %198, %201 : vector<16x32xf32>
    %c0_86 = arith.constant 0 : index
    %c0_87 = arith.constant 0 : index
    %c0_88 = arith.constant 0 : index
    %203 = vector.load %arg22[%c0_86, %c0_87, %c0_88] : memref<1x1x32xf32, #tpu.memory_space<vmem>>, vector<1x1x32xf32>
    %204 = vector.shape_cast %203 : vector<1x1x32xf32> to vector<1x32xf32>
    %205 = vector.broadcast %204 : vector<1x32xf32> to vector<16x32xf32>
    %206 = arith.addf %202, %205 : vector<16x32xf32>
    %c0_89 = arith.constant 0 : index
    %c0_90 = arith.constant 0 : index
    %207 = vector.load %arg25[%c0_89, %c0_90] : memref<16x32xf32, #tpu.memory_space<vmem>>, vector<16x32xf32>
    tpu.vector_store %arg25[%c0_89, %c0_90], %206 {strides = array<i32>} : memref<16x32xf32, #tpu.memory_space<vmem>>, vector<16x32xf32>,
    %c1_i32_91 = arith.constant 1 : i32
    %208 = arith.cmpi eq, %arg1, %c1_i32_91 : i32
    %209 = arith.extui %208 : i1 to i32
    %c0_i32_92 = arith.constant 0 : i32
    %210 = arith.cmpi ne, %209, %c0_i32_92 : i32
    scf.if %210 {
      %211 = vector.shape_cast %206 : vector<16x32xf32> to vector<2x8x32xf32>
      %212 = vector.extract_strided_slice %211 {offsets = [0, 0, 0], sizes = [2, 1, 32], strides = [1, 1, 1]} : vector<2x8x32xf32> to vector<2x1x32xf32>
      %c0_93 = arith.constant 0 : index
      %c0_94 = arith.constant 0 : index
      %c0_95 = arith.constant 0 : index
      %213 = vector.load %arg23[%c0_93, %c0_94, %c0_95] : memref<2x1x32xf32, #tpu.memory_space<vmem>>, vector<2x1x32xf32>
      tpu.vector_store %arg23[%c0_93, %c0_94, %c0_95], %212 {strides = array<i32>} : memref<2x1x32xf32, #tpu.memory_space<vmem>>, vector<2x1x32xf32>,
    } else {
    }
    return
  }
  func.func @transform_0(%arg0: i32, %arg1: i32) -> (i32, i32, i32) {
    %c0_i32 = arith.constant 0 : i32
    %c0_i32_0 = arith.constant 0 : i32
    %c0_i32_1 = arith.constant 0 : i32
    return %arg0, %c0_i32, %c0_i32_0 : i32, i32, i32
  }
  func.func @transform_1(%arg0: i32, %arg1: i32) -> (i32, i32, i32) {
    %c0_i32 = arith.constant 0 : i32
    %c0_i32_0 = arith.constant 0 : i32
    %c0_i32_1 = arith.constant 0 : i32
    return %arg0, %c0_i32, %c0_i32_0 : i32, i32, i32
  }
  func.func @transform_2(%arg0: i32, %arg1: i32) -> (i32, i32, i32) {
    %c0_i32 = arith.constant 0 : i32
    %c0_i32_0 = arith.constant 0 : i32
    %c0_i32_1 = arith.constant 0 : i32
    return %arg0, %c0_i32, %c0_i32_0 : i32, i32, i32
  }
  func.func @transform_3(%arg0: i32, %arg1: i32) -> (i32, i32) {
    %c0_i32 = arith.constant 0 : i32
    %c0_i32_0 = arith.constant 0 : i32
    %c0_i32_1 = arith.constant 0 : i32
    return %c0_i32, %c0_i32_0 : i32, i32
  }
  func.func @transform_4(%arg0: i32, %arg1: i32) -> (i32, i32) {
    %c0_i32 = arith.constant 0 : i32
    %c0_i32_0 = arith.constant 0 : i32
    %c0_i32_1 = arith.constant 0 : i32
    return %c0_i32, %c0_i32_0 : i32, i32
  }
  func.func @transform_5(%arg0: i32, %arg1: i32) -> (i32, i32) {
    %c0_i32 = arith.constant 0 : i32
    %c0_i32_0 = arith.constant 0 : i32
    %c0_i32_1 = arith.constant 0 : i32
    return %c0_i32, %c0_i32_0 : i32, i32
  }
  func.func @transform_6(%arg0: i32, %arg1: i32) -> (i32, i32) {
    %c0_i32 = arith.constant 0 : i32
    %c0_i32_0 = arith.constant 0 : i32
    %c0_i32_1 = arith.constant 0 : i32
    return %c0_i32, %c0_i32_0 : i32, i32
  }
  func.func @transform_7(%arg0: i32, %arg1: i32) -> (i32, i32) {
    %c0_i32 = arith.constant 0 : i32
    %c0_i32_0 = arith.constant 0 : i32
    %c0_i32_1 = arith.constant 0 : i32
    return %c0_i32, %c0_i32_0 : i32, i32
  }
  func.func @transform_8(%arg0: i32, %arg1: i32) -> (i32, i32) {
    %c0_i32 = arith.constant 0 : i32
    %c0_i32_0 = arith.constant 0 : i32
    %c0_i32_1 = arith.constant 0 : i32
    return %c0_i32, %c0_i32_0 : i32, i32
  }
  func.func @transform_9(%arg0: i32, %arg1: i32) -> (i32, i32, i32) {
    %c0_i32 = arith.constant 0 : i32
    %c0_i32_0 = arith.constant 0 : i32
    %c0_i32_1 = arith.constant 0 : i32
    return %arg1, %c0_i32, %c0_i32_0 : i32, i32, i32
  }
  func.func @transform_10(%arg0: i32, %arg1: i32) -> (i32, i32, i32) {
    %c0_i32 = arith.constant 0 : i32
    %c0_i32_0 = arith.constant 0 : i32
    %c0_i32_1 = arith.constant 0 : i32
    return %arg1, %c0_i32, %c0_i32_0 : i32, i32, i32
  }
  func.func @transform_11(%arg0: i32, %arg1: i32) -> (i32, i32, i32) {
    %c0_i32 = arith.constant 0 : i32
    %c0_i32_0 = arith.constant 0 : i32
    %c0_i32_1 = arith.constant 0 : i32
    return %arg1, %c0_i32, %c0_i32_0 : i32, i32, i32
  }
  func.func @transform_12(%arg0: i32, %arg1: i32) -> (i32, i32, i32) {
    %c0_i32 = arith.constant 0 : i32
    %c0_i32_0 = arith.constant 0 : i32
    %c0_i32_1 = arith.constant 0 : i32
    return %arg1, %c0_i32, %c0_i32_0 : i32, i32, i32
  }
  func.func @transform_13(%arg0: i32, %arg1: i32) -> (i32, i32, i32) {
    %c0_i32 = arith.constant 0 : i32
    %c0_i32_0 = arith.constant 0 : i32
    %c0_i32_1 = arith.constant 0 : i32
    return %arg1, %c0_i32, %c0_i32_0 : i32, i32, i32
  }
  func.func @transform_14(%arg0: i32, %arg1: i32) -> (i32, i32, i32) {
    %c0_i32 = arith.constant 0 : i32
    %c0_i32_0 = arith.constant 0 : i32
    %c0_i32_1 = arith.constant 0 : i32
    return %arg1, %c0_i32, %c0_i32_0 : i32, i32, i32
  }
  func.func @transform_15(%arg0: i32, %arg1: i32) -> (i32, i32, i32) {
    %c0_i32 = arith.constant 0 : i32
    %c0_i32_0 = arith.constant 0 : i32
    %c0_i32_1 = arith.constant 0 : i32
    return %arg1, %c0_i32, %c0_i32_0 : i32, i32, i32
  }
  func.func @transform_16(%arg0: i32, %arg1: i32) -> (i32, i32, i32) {
    %c0_i32 = arith.constant 0 : i32
    %c0_i32_0 = arith.constant 0 : i32
    %c0_i32_1 = arith.constant 0 : i32
    return %arg1, %c0_i32, %c0_i32_0 : i32, i32, i32
  }
  func.func @transform_17(%arg0: i32, %arg1: i32) -> (i32, i32, i32) {
    %c0_i32 = arith.constant 0 : i32
    %c0_i32_0 = arith.constant 0 : i32
    %c0_i32_1 = arith.constant 0 : i32
    return %arg1, %c0_i32, %c0_i32_0 : i32, i32, i32
  }
  func.func @transform_18(%arg0: i32, %arg1: i32) -> (i32, i32, i32) {
    %c0_i32 = arith.constant 0 : i32
    %c0_i32_0 = arith.constant 0 : i32
    %c0_i32_1 = arith.constant 0 : i32
    return %arg1, %c0_i32, %c0_i32_0 : i32, i32, i32
  }
  func.func @transform_19(%arg0: i32, %arg1: i32) -> (i32, i32, i32) {
    %c0_i32 = arith.constant 0 : i32
    %c0_i32_0 = arith.constant 0 : i32
    %c0_i32_1 = arith.constant 0 : i32
    return %arg1, %c0_i32, %c0_i32_0 : i32, i32, i32
  }
  func.func @transform_20(%arg0: i32, %arg1: i32) -> (i32, i32, i32) {
    %c0_i32 = arith.constant 0 : i32
    %c0_i32_0 = arith.constant 0 : i32
    %c0_i32_1 = arith.constant 0 : i32
    return %arg1, %c0_i32, %c0_i32_0 : i32, i32, i32
  }
  func.func @transform_21(%arg0: i32, %arg1: i32) -> (i32, i32, i32) {
    %c0_i32 = arith.constant 0 : i32
    %c0_i32_0 = arith.constant 0 : i32
    %c0_i32_1 = arith.constant 0 : i32
    return %arg0, %c0_i32, %c0_i32_0 : i32, i32, i32
  }
  func.func @transform_22(%arg0: i32, %arg1: i32) -> (i32, i32, i32) {
    %c0_i32 = arith.constant 0 : i32
    %c0_i32_0 = arith.constant 0 : i32
    %c0_i32_1 = arith.constant 0 : i32
    return %arg0, %c0_i32, %c0_i32_0 : i32, i32, i32
  }
}

</mosaic_0001>

<bundles_post_ra>
// kernel: tpu_custom_call.1
= control target key start
LH: loop header
LB: loop body
LE: loop exit
PB: predicated region body
PF: predicated region fallthrough
CT: control target
= control target key end

     0   :  { %s4206_s0 = inlined_call_operand.vmem [shape: f32[4,8,3], index: 0, kind: input, shape index: {}]   ;;  %s4207_s1 = inlined_call_operand.vmem [shape: f32[4,8,32], index: 1, kind: input, shape index: {}]   ;;  %s4208_s2 = inlined_call_operand.hbm [shape: f32[4,1,8], index: 2, kind: input, shape index: {}]   ;;  %s4209_s3 = inlined_call_operand.hbm [shape: f32[3,32], index: 3, kind: input, shape index: {}]   ;;  %s4210_s4 = inlined_call_operand.hbm [shape: f32[1,32], index: 4, kind: input, shape index: {}]   ;;  %s4211_s5 = inlined_call_operand.vmem [shape: bf16[32,32], index: 5, kind: input, shape index: {}]   ;;  %s4212_s6 = inlined_call_operand.hbm [shape: bf16[32,32], index: 6, kind: input, shape index: {}]   ;;  %s4213_s7 = inlined_call_operand.hbm [shape: f32[1,32], index: 7, kind: input, shape index: {}]   ;;  %s4214_s8 = inlined_call_operand.hbm [shape: f32[8,32], index: 8, kind: input, shape index: {}]   ;;  %s4215_s9 = inlined_call_operand.hbm [shape: bf16[2,32,96], index: 9, kind: input, shape index: {}]   ;;  %s4216_s10 = inlined_call_operand.vmem [shape: f32[2,1,96], index: 10, kind: input, shape index: {}]   ;;  %s4217_s11 = inlined_call_operand.hbm [shape: bf16[2,32,32], index: 11, kind: input, shape index: {}]   ;;  %s4218_s12 = inlined_call_operand.vmem [shape: f32[2,1,32], index: 12, kind: input, shape index: {}]   ;;  %s4219_s13 = inlined_call_operand.vmem [shape: f32[2,1,32], index: 13, kind: input, shape index: {}]   ;;  %s4220_s14 = inlined_call_operand.vmem [shape: f32[2,1,32], index: 14, kind: input, shape index: {}]   ;;  %s4221_s15 = inlined_call_operand.hbm [shape: bf16[2,32,32], index: 15, kind: input, shape index: {}]   ;;  %s4222_s16 = inlined_call_operand.vmem [shape: f32[2,1,32], index: 16, kind: input, shape index: {}]   ;;  %s4223_s17 = inlined_call_operand.hbm [shape: bf16[2,32,32], index: 17, kind: input, shape index: {}]   ;;  %s4224_s18 = inlined_call_operand.vmem [shape: f32[2,1,32], index: 18, kind: input, shape index: {}]   ;;  %s4225_s19 = inlined_call_operand.vmem [shape: f32[2,1,32], index: 19, kind: input, shape index: {}]   ;;  %s4226_s20 = inlined_call_operand.hbm [shape: f32[2,1,32], index: 20, kind: input, shape index: {}]   ;;  %s4227_s21 = inlined_call_operand.hbm [shape: f32[4,1,32], index: 21, kind: output, shape index: {0}]   ;;  %s4228_s22 = inlined_call_operand.hbm [shape: f32[4,8,32], index: 22, kind: output, shape index: {1}]  }
   0x1   :  { %4255 = sst [smem:[#allocation48_spill]] %s4206_s0 }
   0x2   :  { %4256 = sst [smem:[#allocation49_spill]] %s4207_s1 }
   0x3   :  { %4257 = sst [smem:[#allocation50_spill]] %s4208_s2 }
   0x4   :  { %4258 = sst [smem:[#allocation51_spill]] %s4209_s3 }
   0x5   :  { %4259 = sst [smem:[#allocation52_spill]] %s4210_s4 }
   0x6   :  { %4260 = sst [smem:[#allocation53_spill]] %s4211_s5 }
   0x7   :  { %4261 = sst [smem:[#allocation54_spill]] %s4212_s6 }
   0x8   :  { %4262 = sst [smem:[#allocation55_spill]] %s4213_s7 }
   0x9   :  { %4263 = sst [smem:[#allocation56_spill]] %s4214_s8 }
   0xa   :  { %4264 = sst [smem:[#allocation57_spill]] %s4215_s9 }
   0xb   :  { %4265 = sst [smem:[#allocation58_spill]] %s4216_s10 }
   0xc   :  { %4266 = sst [smem:[#allocation59_spill]] %s4217_s11 }
   0xd   :  { %4267 = sst [smem:[#allocation60_spill]] %s4218_s12 }
   0xe   :  { %4268 = sst [smem:[#allocation61_spill]] %s4219_s13 }
   0xf   :  { %4269 = sst [smem:[#allocation62_spill]] %s4220_s14 }
  0x10   :  { %4270 = sst [smem:[#allocation63_spill]] %s4221_s15 }
  0x11   :  { %4271 = sst [smem:[#allocation64_spill]] %s4222_s16 }
  0x12   :  { %4272 = sst [smem:[#allocation65_spill]] %s4223_s17 }
  0x13   :  { %4273 = sst [smem:[#allocation66_spill]] %s4224_s18 }
  0x14   :  { %4274 = sst [smem:[#allocation67_spill]] %s4225_s19 }
  0x15   :  { %4275 = sst [smem:[#allocation68_spill]] %s4226_s20 }
  0x16   :  { %4276 = sst [smem:[#allocation69_spill]] %s4227_s21 }
  0x17   :  { %4277 = sst [smem:[#allocation70_spill]] %s4228_s22 }
  0x18   :  { %28 = vsyncpa [#allocation5], 0 }
  0x19   :  { %30 = vsyncpa [#allocation5 + $0x1], 0 }
  0x1a   :  { %31 = vsyncpa [#allocation8], 0 }
  0x1b   :  { %32 = vsyncpa [#allocation11], 0 }
  0x1c   :  { %33 = vsyncpa [#allocation14], 0 }
  0x1d   :  { %34 = vsyncpa [#allocation6], 0 }
  0x1e   :  { %36 = vsyncpa [#allocation6 + $0x1], 0 }
  0x1f   :  { %37 = vsyncpa [#allocation22], 0 }
  0x20   :  { %39 = vsyncpa [#allocation22 + $0x1], 0  ;;  %s3570_s3 = smov 0   ;;  %s3572_s28 = smov 0  }
  0x21   :  { %s3574_s29 = smov 0   ;;  %s3576_s30 = smov 0  }
  0x22   :  { %s3578_s4 = smov 0   ;;  %s3580_s0 = smov 0  }
  0x23   :  { %s3582_s23 = smov 0   ;;  %s3584_s1 = smov 0  }
  0x24   :  { %s3586_s5 = smov 0   ;;  %s3588_s24 = smov 0  }
  0x25   :  { %s3590_s6 = smov 0  }
  0x26 LB: > { %4278 = sst [smem:[#allocation30_spill]] %s3385_s28  ;;  %s3626_s25 = sadd.s32 4294967295, %s3421_s6   ;;  %s3421_s6 = sphi %s3590_s6, %s45_s6   ;;  %s3417_s24 = sphi %s3588_s24, %s4367_s24   ;;  %s3413_s5 = sphi %s3586_s5, %s4366_s5   ;;  %s3409_s1 = sphi %s3584_s1, %s4365_s1   ;;  %s3405_s23 = sphi %s3582_s23, %s4364_s23   ;;  %s3401_s0 = sphi %s3580_s0, %s4363_s0   ;;  %s3397_s4 = sphi %s3578_s4, %s4362_s4   ;;  %s3393_s30 = sphi %s3576_s30, %s4361_s30   ;;  %s3389_s29 = sphi %s3574_s29, %s4360_s29   ;;  %s3385_s28 = sphi %s3572_s28, %s4359_s28   ;;  %s3381_s3 = sphi %s3570_s3, %s4358_s3  }
  0x27   : > { %4279 = sst [smem:[#allocation31_spill]] %s3389_s29  ;;  %s2511_s26 = sadd.s32 4294967294, %s3421_s6  }
  0x28   : > { %4280 = sst [smem:[#allocation32_spill]] %s3393_s30  ;;  %s54_s2 = sadd.s32 1, %s3413_s5 }
  0x29   : > { %4281 = sst [smem:[#allocation33_spill]] %s3397_s4  ;;  %s57_s27 = sadd.s32 1, %s3417_s24 }
  0x2a   : > { %4282 = sst [smem:[#allocation34_spill]] %s3401_s0  ;;  %p55_p0 = scmp.ge.s32.totalorder %s54_s2, 2 }
  0x2b   : > { %4283 = sst [smem:[#allocation35_spill]] %s3405_s23  ;;  %s116_s22 = sadd.s32 1, %s3401_s0 }
  0x2c   : > { %4284 = sst [smem:[#allocation36_spill]] %s3409_s1  ;;  %p123_p1 = scmp.ne.s32.totalorder %s3401_s0, %s3397_s4 }
  0x2d   : > { %4285 = sst [smem:[#allocation37_spill]] %s3413_s5  ;;  %p124_p2 = scmp.eq.s32.totalorder %s3421_s6, 0 }
  0x2e   : > { %4286 = sst [smem:[#allocation38_spill]] %s3417_s24  ;;  %s4369_s2 = smov (%p55_p0, %s54_s2), 0 }
  0x2f   : > { %4287 = sst [smem:[#allocation39_spill]] %s3421_s6  ;;  %s4371_s27 = smov (!%p55_p0, %s57_s27), %s3417_s24 }
  0x30   : > { %4288 = sst [smem:[#allocation40_spill]] %s4369_s2  ;;  %p3643_p3 = por %p124_p2, %p123_p1 }
  0x31   : > { %p129_p4 = scmp.ne.s32.totalorder %s3397_s4, %s3393_s30  ;;  %p59_p5 = scmp.ge.s32.totalorder %s4371_s27, 2 }
  0x32   : > { %p130_p6 = scmp.eq.s32.totalorder %s3626_s25, 0  ;;  %s265_s19 = ssub.s32 %s3413_s5, %s4369_s2 }
  0x33   : > { %p591_p7 = scmp.eq.s32.totalorder %s3626_s25, 3  ;;  %s4373_s27 = smov (%p59_p5, %s4371_s27), 0 }
  0x34   : > { %4290 = sst [smem:[#allocation41_spill]] %s4373_s27  ;;  %p3660_p8 = por %p130_p6, %p129_p4 }
  0x35   : > { %p3664_p9 = scmp.eq.s32.totalorder %s265_s19, 0  ;;  %s113_s14 = ssub.s32 %s3417_s24, %s4373_s27 }
  0x36   : > { %p3673_p10 = por %p591_p7, %p123_p1  ;;  %p114_p11 = scmp.eq.s32.totalorder %s113_s14, 0 }
  0x37   : > { %p597_p12 = scmp.eq.s32.totalorder %s2511_s26, 3  ;;  %p2733_p0 = scmp.lt.s32.totalorder %s3421_s6, 4 }
  0x38   : > { %s4293_s13 = scalar_select %p3673_p10, 1, 0 }
  0x39   : > { %s3678_s2 = scalar_select %p114_p11, %s3401_s0, %s116_s22  }
  0x3a   : > { %4294 = sst [smem:[#allocation42_spill]] %s4293_s13  ;;  %p3683_p13 = por %p597_p12, %p129_p4 }
  0x3b   : > { %4295 = sst [smem:[#allocation43_spill]] %s3678_s2  ;;  %s726_s19 = sand.u32 1, %s3421_s6  }
  0x3c   : > { %s4296_s12 = scalar_select %p3683_p13, 1, 0 }
  0x3d   : > { %s728_s27 = sand.u32 1, %s3401_s0   ;;  %s2520_s14 = sshll.u32 %s3417_s24, 1 }
  0x3e   : > { %4297 = sst [smem:[#allocation44_spill]] %s4296_s12  ;;  %s2519_s13 = sshll.u32 %s728_s27, 1 }
  0x3f   : > { %s4298_s2 = sld [smem:[#allocation50_spill]]  ;;  %s730_s10 = scalar_lea.vmem [#allocation4], %s2519_s13 }
  0x40   : > { %s737_s12 = sshll.u32 %s730_s10, 4  ;;  %p2703_p1 = pnand %p2733_p0, %p3643_p3  ;;  %s738_s12 = int_to_ptr.vmem [resolvable:$true] %s737_s12 }
  0x41   : > { %s3698_s27 = scalar_lea.sflag [#allocation5], %s726_s19  ;;  %s3423_s24 = smov 16  }
  0x42   : > { %s3424_s0 = smov 1   ;;  %p275_p4 = scmp.ne.s32.totalorder %s3389_s29, %s3385_s28 }
  0x43   : > { %p281_p5 = scmp.ne.s32.totalorder %s3385_s28, %s3381_s3  ;;  %s4242_s21 = sand.u32 1, %s3389_s29  }
  0x44   : > { %p277_p7 = por %p275_p4, %p124_p2  ;;  %s4302_s9 = sld [smem:[#allocation57_spill]] }
  0x45   : > { %s734_s30 = scalar_lea.hbm %s4298_s2, %s2520_s14  ;;  %s268_s2 = sadd.s32 1, %s3389_s29 }
  0x46   : > { %s735_s23 = sshll.u32 %s734_s30, 4  ;;  %p3715_p11 = por %p281_p5, %p130_p6  ;;  %s736_s23 = int_to_ptr.hbm [resolvable:$true] %s735_s23 }
  0x47   : > { %2705 = dma.hbm_to_vmem [thread:$0]  (!%p2703_p1), %s736_s23, 32, %s738_s12, %s3698_s27, %s3423_s24, %s3423_s24, %s3424_s0  }
  0x48   : > { %s3705_s13 = scalar_select %p3664_p9, %s3389_s29, %s268_s2  }
  0x49   : > { %s4300_s10 = scalar_select %p3715_p11, 1, 0 }
  0x4a   : > { %4299 = sst [smem:[#allocation45_spill]] %s3705_s13  ;;  %s3721_s30 = sshll.u32 %s3413_s5, 4 }
  0x4b   : > { %4301 = sst [smem:[#allocation46_spill]] %s4300_s10  ;;  %s3725_s12 = sshll.u32 %s4242_s21, 4 }
  0x4c   : > { %s756_s3 = scalar_lea.hbm %s4302_s9, %s3721_s30  ;;  %s751_s24 = scalar_lea.vmem [#allocation15], %s3725_s12 }
  0x4d   : > { %s757_s23 = sshll.u32 %s756_s3, 4  ;;  %s759_s19 = sshll.u32 %s751_s24, 4  ;;  %s758_s23 = int_to_ptr.hbm [resolvable:$true] %s757_s23  ;;  %s760_s19 = int_to_ptr.vmem [resolvable:$true] %s759_s19 }
  0x4e   : > { %p3734_p2 = pnand %p2733_p0, %p277_p7  ;;  %s4304_s11 = sld [smem:[#allocation59_spill]] }
  0x4f   : > { %s4243_s0 = smov 64   ;;  %s3426_s3 = smov 4  }
  0x50   : > { %2708 = dma.hbm_to_vmem [thread:$0]  (!%p3734_p2), %s758_s23, 256, %s760_s19, %s3698_s27, %s4243_s0, %s4243_s0, %s3426_s3  }
  0x51   : > { %s779_s24 = scalar_lea.vmem [#allocation16], %s3725_s12  ;;  %s4305_s15 = sld [smem:[#allocation63_spill]] }
  0x52   : > { %s787_s21 = sshll.u32 %s779_s24, 4  ;;  %s819_s9 = scalar_lea.vmem [#allocation17], %s3725_s12  ;;  %s788_s21 = int_to_ptr.vmem [resolvable:$true] %s787_s21 }
  0x53   : > { %p2512_p3 = scmp.ge.s32.totalorder %s3421_s6, 1  ;;  %p630_p9 = scmp.lt.s32.totalorder %s3421_s6, 5 }
  0x54   : > { %s784_s2 = scalar_lea.hbm %s4304_s11, %s3721_s30  ;;  %s827_s11 = sshll.u32 %s819_s9, 4  ;;  %s828_s11 = int_to_ptr.vmem [resolvable:$true] %s827_s11 }
  0x55   : > { %s785_s16 = sshll.u32 %s784_s2, 4  ;;  %s4306_s19 = sld [smem:[#allocation51_spill]]  ;;  %s786_s16 = int_to_ptr.hbm [resolvable:$true] %s785_s16 }
  0x56   : > { %2711 = dma.hbm_to_vmem [thread:$0]  (!%p3734_p2), %s786_s16, 256, %s788_s21, %s3698_s27, %s4243_s0, %s4243_s0, %s3426_s3  }
  0x57   : > { %s824_s2 = scalar_lea.hbm %s4305_s15, %s3721_s30  ;;  %p3771_p12 = pnand %p2512_p3, %p630_p9 }
  0x58   : > { %s825_s13 = sshll.u32 %s824_s2, 4  ;;  %s3427_s9 = smov [#allocation7]   ;;  %s826_s13 = int_to_ptr.hbm [resolvable:$true] %s825_s13 }
  0x59   : > { %2714 = dma.hbm_to_vmem [thread:$0]  (!%p3734_p2), %s826_s13, 256, %s828_s11, %s3698_s27, %s4243_s0, %s4243_s0, %s3426_s3  }
  0x5a   : > { %s644_s26 = sshll.u32 %s3427_s9, 4  ;;  %s4308_s11 = sld [smem:[#allocation54_spill]]  ;;  %s645_s26 = int_to_ptr.vmem [resolvable:$true] %s644_s26 }
  0x5b   : > { %s642_s16 = sshll.u32 %s4306_s19, 4  ;;  %p2686_p0 = pneg %p3771_p12  ;;  %s643_s16 = int_to_ptr.hbm [resolvable:$true] %s642_s16 }
  0x5c   : > { %s3428_s21 = smov [#allocation10]   ;;  %s4310_s17 = sld [smem:[#allocation65_spill]] }
  0x5d   : > { %p3782_p1 = pnand %p2686_p0, %p130_p6  ;;  %s670_s19 = sshll.u32 %s3428_s21, 4  ;;  %s671_s19 = int_to_ptr.vmem [resolvable:$true] %s670_s19 }
  0x5e   : > { %s847_s15 = scalar_lea.vmem [#allocation18], %s3725_s12  ;;  %s4312_s10 = sld [smem:[#allocation52_spill]] }
  0x5f   : > { %2689 = dma.hbm_to_vmem [thread:$0]  (!%p3782_p1), %s643_s16, 64, %s645_s26, [#allocation8]  }
  0x60   : > { %s668_s13 = sshll.u32 %s4308_s11, 4  ;;  %s4311_s11 = smov 64   ;;  %s669_s13 = int_to_ptr.hbm [resolvable:$true] %s668_s13 }
  0x61   : > { %2695 = dma.hbm_to_vmem [thread:$0]  (!%p3782_p1), %s669_s13, 256, %s671_s19, [#allocation11], %s4311_s11, %s4311_s11, %s3426_s3  }
  0x62   : > { %s852_s22 = scalar_lea.hbm %s4310_s17, %s3721_s30  ;;  %s855_s6 = sshll.u32 %s847_s15, 4  ;;  %s856_s6 = int_to_ptr.vmem [resolvable:$true] %s855_s6 }
  0x63   : > { %s853_s2 = sshll.u32 %s852_s22, 4  ;;  %s3429_s30 = smov [#allocation9]   ;;  %s854_s2 = int_to_ptr.hbm [resolvable:$true] %s853_s2 }
  0x64   : > { %s654_s28 = sshll.u32 %s4312_s10, 4  ;;  %s656_s0 = sshll.u32 %s3429_s30, 4  ;;  %s655_s28 = int_to_ptr.hbm [resolvable:$true] %s654_s28  ;;  %s657_s0 = int_to_ptr.vmem [resolvable:$true] %s656_s0 }
  0x65   : > { %2717 = dma.hbm_to_vmem [thread:$0]  (!%p3734_p2), %s854_s2, 256, %s856_s6, %s3698_s27, %s4311_s11, %s4311_s11, %s3426_s3  }
  0x66   : > { %s4313_s7 = sld [smem:[#allocation55_spill]]  ;;  %s3430_s6 = smov [#allocation12]  }
  0x67   : > { %2692 = dma.hbm_to_vmem [thread:$0]  (!%p3782_p1), %s655_s28, 16, %s657_s0, [#allocation8]  }
  0x68   : > { %s4314_s8 = sld [smem:[#allocation56_spill]]  ;;  %s685_s3 = sshll.u32 %s3430_s6, 4  ;;  %s686_s3 = int_to_ptr.vmem [resolvable:$true] %s685_s3 }
  0x69   : > { %s3431_s13 = smov [#allocation13]   ;;  %s4315_s20 = sld [smem:[#allocation68_spill]] }
  0x6a   : > { %s697_s19 = sshll.u32 %s3431_s13, 4  ;;  %s4316_s11 = sand.u32 1, %s3389_s29   ;;  %s698_s19 = int_to_ptr.vmem [resolvable:$true] %s697_s19 }
  0x6b   : > { %s880_s21 = scalar_lea.vmem [#allocation19], %s4316_s11 }
  0x6c   : > { %s683_s15 = sshll.u32 %s4313_s7, 4  ;;  %s887_s30 = sshll.u32 %s880_s21, 4  ;;  %s684_s15 = int_to_ptr.hbm [resolvable:$true] %s683_s15  ;;  %s888_s30 = int_to_ptr.vmem [resolvable:$true] %s887_s30 }
  0x6d   : > { %2698 = dma.hbm_to_vmem [thread:$0]  (!%p3782_p1), %s684_s15, 16, %s686_s3, [#allocation11]  }
  0x6e   : > { %s695_s12 = sshll.u32 %s4314_s8, 4  ;;  %896 = sbr.rel (%p3771_p12) target bundleno = 4416 (0x1140), region = 104  ;;  %s696_s12 = int_to_ptr.hbm [resolvable:$true] %s695_s12 }
  0x6f   : > { %s883_s2 = scalar_lea.hbm %s4315_s20, %s3413_s5 }
  0x70   : > { %2701 = dma.hbm_to_vmem [thread:$0]  (!%p3782_p1), %s696_s12, 128, %s698_s19, [#allocation14]  }
  0x71   : > { %s885_s28 = sshll.u32 %s883_s2, 4  ;;  %s886_s28 = int_to_ptr.hbm [resolvable:$true] %s885_s28 }
  0x72   : > { %2720 = dma.hbm_to_vmem [thread:$0]  (!%p3734_p2), %s886_s28, 16, %s888_s30, %s3698_s27  }
  0x73   : > { %s898_s0 = sand.u32 1, %s3626_s25   ;;  %s3832_s16 = sand.u32 1, %s3397_s4  }
  0x74   : > { %s4250_s23 = sshll.u32 %s3832_s16, 1  ;;  %s899_s26 = scalar_lea.sflag [#allocation5], %s898_s0 }
  0x75   : > { %s3837_s15 = scalar_lea.vmem [#allocation4], %s4250_s23 }
  0x76   : > { %3352 = dma.done.wait (%p3660_p8), %s899_s26, 32  }
  0x77   : > { %3354 = vsyncadd (%p3660_p8), %s899_s26, 4294967264 }
  0x78   : > { %3356 = dma.done.wait (%p130_p6), [#allocation8], 80  }
  0x79   : > { %3358 = vsyncadd (%p130_p6), [#allocation8], 4294967216 }
  0x7a   : > { %3360 = dma.done.wait (%p130_p6), [#allocation11], 272  }
  0x7b   : > { %3362 = vsyncadd (%p130_p6), [#allocation11], 4294967024 }
  0x7c   : > { %3364 = dma.done.wait (%p130_p6), [#allocation14], 128  }
  0x7d   : > { %3366 = vsyncadd (%p130_p6), [#allocation14], 4294967168  ;;  %s4317_s18 = sld [smem:[#allocation30_spill]] }
  0x83   : > { %s935_s14 = sand.u32 1, %s4317_s18  }
  0x84   : > { %s3856_s24 = sshll.u32 %s935_s14, 4 }
  0x85   : > { %3368 = dma.done.wait (%p3715_p11), %s899_s26, 1040  }
  0x86   : > { %3370 = vsyncadd (%p3715_p11), %s899_s26, 4294966256  ;;  %s4319_s10 = sld [smem:[#allocation36_spill]]  ;;  %s2545_s6 = sshll.u32 %s3832_s16, 4 }
  0x87   : > { %s4320_s12 = sld [smem:[#allocation35_spill]]  ;;  %s947_s1 = scalar_lea.vmem [#allocation16], %s3856_s24 }
  0x88   : > { %s4322_s2 = sld [smem:[#allocation48_spill]]  ;;  %s957_s8 = scalar_lea.vmem [#allocation17], %s3856_s24 }
  0x89   : > { %s4323_s30 = sld [smem:[#allocation49_spill]]  ;;  %s967_s17 = scalar_lea.vmem [#allocation18], %s3856_s24 }
  0x8a   : > { %s4327_s22 = sld [smem:[#allocation62_spill]]  ;;  %s3912_s20 = scalar_lea.vmem [#allocation19], %s935_s14 }
  0x8b   : > { %s4329_s26 = sld [smem:[#allocation66_spill]]  ;;  %s3918_s9 = scalar_lea.vmem [#allocation21], %s2545_s6 }
  0x8c   : > { %s3865_s25 = sshll.u32 %s4319_s10, 1  ;;  %s4330_s23 = sld [smem:[#allocation67_spill]] }
  0x8d   : > { %4321 = sst [smem:[#allocation47_spill]] %s3865_s25  ;;  %p1099_p6 = scmp.lt.s32.totalorder %s3865_s25, 3 }
  0x8e   : > { %p1111_p8 = scmp.lt.s32.totalorder %s4320_s12, 1  ;;  %p2550_p4 = scmp.ne.s32.totalorder %s4320_s12, 0 }
  0x8f   : > { %s1100_s3 = scalar_select %p1099_p6, %s3865_s25, 3 }
  0x90   : > { %s3871_s13 = scalar_select %p1111_p8, %s4320_s12, 1 }
  0x91   : > { %s2547_s19 = sshll.u32 %s1100_s3, 3  ;;  %s4326_s3 = sld [smem:[#allocation61_spill]] }
  0x92   : > { %s1102_s28 = scalar_lea.vmem %s4322_s2, %s2547_s19  ;;  %s3879_s0 = scalar_lea.vmem %s4323_s30, %s2547_s19 }
  0x93   : > { %s1122_s2 = scalar_lea.vmem %s4327_s22, %s3871_s13  ;;  %s4328_s19 = sld [smem:[#allocation64_spill]] }
  0x94   : > { %s1128_s18 = scalar_lea.vmem %s4329_s26, %s3871_s13  ;;  %s1131_s7 = scalar_lea.vmem %s4330_s23, %s3871_s13 }
  0x95   : > { %1138 = sbr.rel (%p2550_p4) target bundleno = 432 (0x1b0), region = 152  ;;  %s4332_s12 = sld [smem:[#allocation53_spill]] (!%p2550_p4) }
  0x97   : > { %s1119_s5 = scalar_lea.vmem %s4326_s3, %s3871_s13  ;;  %s4331_s3 = sshll.u32 %s3832_s16, 1 }
  0x98   : > { %s3916_s4 = scalar_lea.vmem [#allocation20], %s4331_s3 }
  0x99   : > { %s1125_s21 = scalar_lea.vmem %s4328_s19, %s3871_s13 }
  0x9a   : > { %v1139_v0 = vld [vmem:[%s1102_s28] sm:$0xff]  ;;  %v3432_v1 = vmov 1   ;;  %v3433_v2 = vmov 0   ;;  %v3434_v3 = vmov 2   ;;  %v1140_v4 = vld [vmem:[%s1102_s28 + $0x8] sm:$0xff]  ;;  %v2640_v5 = vld [vmem:[#allocation10 + $0x8] sm:$0xff] }
  0x9b   : > { %2861 = vset.pattern.permute.xlu1 %v3432_v1  ;;  %2860 = vset.pattern.permute.xlu0 %v3433_v2  ;;  %v2639_v6 = vld [vmem:[#allocation10] sm:$0xff]  ;;  %v1192_v7 = vld [vmem:[%s3879_s0] sm:$0xff]  ;;  %vm1216_vm0 = vcmask 261120   ;;  %v2866_v17 = vld [vmem:[#allocation9] ss:$0 sm:$0xff] }
  0x9c   : > { %1164 = vperm.xlu1 %2861, %v1139_v0   ;;  %1149 = vperm.xlu0 %2860, %v1139_v0   ;;  %v1193_v8 = vld [vmem:[%s3879_s0 + $0x8] sm:$0xff]  ;;  %v2637_v11 = vld [vmem:[%s4332_s12] sm:$0xff]  ;;  %v2868_v38 = vld [vmem:[#allocation12] ss:$0 sm:$0xff] }
  0x9d   : > { %2862 = vset.pattern.permute.xlu2 %v3434_v3  ;;  %1226 = vmatpush.bf16.msra.mxu0 %v2640_v5  ;;  %v1199_v9 = vpack.c.bf16 %v1193_v8, %v1192_v7  ;;  %v2638_v10 = vld [vmem:[%s4332_s12 + $0x8] sm:$0xff]  ;;  %v2867_v12 = vld [vmem:[#allocation7] ss:$0 sm:$0xff]  ;;  %v2865_v16 = vld [vmem:[#allocation7 + $0x1] ss:$0 sm:$0xff] }
  0x9e   : > { %1178 = vperm.xlu2 %2862, %v1139_v0   ;;  %1255 = vmatpush.bf16.msra.mxu1 %v2638_v10  ;;  %v2864_v19 = vld [vmem:[#allocation7 + $0x2] ss:$0 sm:$0xff]  ;;  %v1269_v41 = vld [vmem:[#allocation13] sm:$0xff] }
  0xa1   : > { %1227 = vmatpush.bf16.msra.mxu0 %v2639_v6 }
  0xa2   : > { %1256 = vmatpush.bf16.msra.mxu1 %v2637_v11 }
  0xa4   : > { %1168 = vperm.xlu1 %2861, %v1140_v4   ;;  %1154 = vperm.xlu0 %2860, %v1140_v4  }
  0xa5   : > { %2559 = vmatmul.msk.bf16.vlgmr.msra.gmra.mxu0 %vm1216_vm0, %v1199_v9 }
  0xa6   : > { %1182 = vperm.xlu2 %2862, %v1140_v4  }
  0xac   : > { %2863 = vset.pattern.permute.xlu0 %v3434_v3 }
  0xf8   : > { %v1179_v13 = vpop.permute.xlu2 %1178 }
  0xf9   : > { %v1186_v24 = vmul.f32 %v2864_v19, %v1179_v13 }
 0x100   : > { %v1183_v27 = vpop.permute.xlu2 %1182 }
 0x101   : > { %v1187_v30 = vmul.f32 %v2864_v19, %v1183_v27 }
 0x10e   : > { %v1165_v14 = vpop.permute.xlu1 %1164  ;;  %v1150_v15 = vpop.permute.xlu0 %1149 }
 0x10f   : > { %v1158_v18 = vmul.f32 %v2867_v12, %v1150_v15  ;;  %v1172_v20 = vmul.f32 %v2865_v16, %v1165_v14 }
 0x111   : > { %v1160_v21 = vadd.f32 %v2866_v17, %v1158_v18 }
 0x113   : > { %v1174_v25 = vadd.f32 %v1172_v20, %v1160_v21 }
 0x115   : > { %v1188_v32 = vadd.f32 %v1186_v24, %v1174_v25 }
 0x116   : > { %v1169_v22 = vpop.permute.xlu1 %1168  ;;  %v1155_v23 = vpop.permute.xlu0 %1154 }
 0x117   : > { %v1159_v26 = vmul.f32 %v2867_v12, %v1155_v23  ;;  %v1173_v28 = vmul.f32 %v2865_v16, %v1169_v22  ;;  %v1190_v34 = vmax.f32 %v1188_v32, 0.0 }
 0x119   : > { %v1161_v29 = vadd.f32 %v2866_v17, %v1159_v26 }
 0x11b   : > { %v1175_v31 = vadd.f32 %v1173_v28, %v1161_v29 }
 0x11d   : > { %v1189_v33 = vadd.f32 %v1187_v30, %v1175_v31 }
 0x11f   : > { %v1191_v35 = vmax.f32 %v1189_v33, 0.0 }
 0x121   : > { %v1194_v36 = vpack.c.bf16 %v1191_v35, %v1190_v34 }
 0x122   : > { %v1229_v37 = vpop.f32.mrf.mxu0 }
 0x123   : > { %2568 = vmatmul.msk.bf16.vlgmr.msra.gmra.mxu1 %vm1216_vm0, %v1194_v36 }
 0x12a   : > { %v1231_v44 = vpop.f32.mrf.mxu0 }
 0x1a0   : > { %v1258_v39 = vpop.f32.mrf.mxu1 }
 0x1a1   : > { %v1259_v40 = vadd.f32 %v1258_v39, %v1229_v37 }
 0x1a3   : > { %v1267_v42 = vadd.f32 %v2868_v38, %v1259_v40 }
 0x1a5   : > { %v1270_v43 = vadd.f32 %v1269_v41, %v1267_v42 }
 0x1a7   : > { %1272 = vst.msk [vmem:[#allocation2] sm:$0xff] %vm1216_vm0, %v1270_v43 }
 0x1a8   : > { %v1260_v45 = vpop.f32.mrf.mxu1 }
 0x1a9   : > { %v1261_v46 = vadd.f32 %v1260_v45, %v1231_v44 }
 0x1ab   : > { %v1268_v47 = vadd.f32 %v2868_v38, %v1261_v46 }
 0x1ad   : > { %v1271_v48 = vadd.f32 %v1269_v41, %v1268_v47 }
 0x1af   : > { %1273 = vst.msk [vmem:[#allocation2 + $0x8] sm:$0xff] %vm1216_vm0, %v1271_v48 }
 0x1b0 PF: > { %s4333_s28 = scalar_lea.vmem [#allocation15], %s3856_s24  ;;  %v3937_v51 = vld [vmem:[#allocation2] sm:$0xff]  ;;  %vm1299_vm1 = vcmask 261120   ;;  %s4335_s11 = sld [smem:[#allocation58_spill]]  ;;  %vm1324_vm2 = vcmask 64512  }
 0x1b1   : > { %v2642_v49 = vld [vmem:[%s4333_s28 + $0x8] sm:$0xff]  ;;  %s4334_s0 = smov %s4333_s28  ;;  %s3435_s30 = smov 96  }
 0x1b2   : > { %v2641_v50 = vld [vmem:[%s4334_s0] sm:$0xff]  ;;  %1309 = vmatpush.bf16.msra.mxu0 %v2642_v49 }
 0x1b3   : > { %v3960_v6 = vld [vmem:[%s3837_s15] ss:$0 sm:$0xff]  ;;  %v3965_v12 = vld [vmem:[%s3837_s15 + $0x1] ss:$0 sm:$0xff]  ;;  %s4337_s15 = sld [smem:[#allocation35_spill]] }
 0x1b6   : > { %v3939_v52 = vld [vmem:[#allocation2 + $0x8] sm:$0xff]  ;;  %1310 = vmatpush.bf16.msra.mxu0 %v2641_v50  ;;  %s4336_s19 = scalar_lea.vmem %s4335_s11, %s3871_s13 }
 0x1b7   : > { %v1276_v53 = vpack.c.bf16 %v3939_v52, %v3937_v51  ;;  %v2869_v55 = vld [vmem:[%s4336_s19] ss:$0 sm:$0xff] }
 0x1b9   : > { %2577 = vmatmul.msk.bf16.vlgmr.msra.gmra.mxu0 %vm1299_vm1, %v1276_v53  ;;  %p2580_p5 = scmp.ne.s32.totalorder %s4337_s15, 1 }
 0x236   : > { %v1312_v54 = vpop.f32.mrf.mxu0 }
 0x237   : > { %v1313_v58 = vadd.f32 %v2869_v55, %v1312_v54 }
 0x239   : > { %v1317_v61 = vpack.c.bf16 %v1313_v58, %v1313_v58 }
 0x23b   : > { %v1320_v63 = vunpack.c.l.b16 %v1317_v61 }
 0x23d   : > { %v3952_v0 = vpack.c.b16 %v1320_v63, %v1320_v63 }
 0x23e   : > { %v1314_v56 = vpop.f32.mrf.mxu0 }
 0x23f   : > { %v1315_v57 = vadd.f32 %v2869_v55, %v1314_v56 }
 0x241   : > { %v1318_v59 = vpack.c.bf16 %v1315_v57, %v1315_v57 }
 0x243   : > { %v1345_v60 = vunpack.c.l.b16 %v1318_v59 }
 0x245   : > { %v3949_v62 = vpack.c.b16 %v1345_v60, %v1345_v60 }
 0x247   : > { %1347 = vrot.lane.b32.xlu0 %v3949_v62, %s3435_s30 }
 0x24f   : > { %1322 = vrot.lane.b32.xlu0 %v3952_v0, %s3435_s30 }
 0x2b9   : > { %v1348_v1 = vpop.permute.xlu0 %1347 }
 0x2ba   : > { %v1353_v2 = vsel %vm1324_vm2, %v1348_v1, 0 }
 0x2bb   : > { %1362 = vmatpush.bf16.xpose.msra.mxu2 %v1353_v2 }
 0x2c1   : > { %v1323_v3 = vpop.permute.xlu0 %1322 }
 0x2c2   : > { %2579 = vmatmul.msk.bf16.vlgmr.msra.gmra.mxu2 %vm1324_vm2, %v1318_v59  ;;  %v1329_v4 = vsel %vm1324_vm2, %v1323_v3, 0 }
 0x2c3   : > { %1338 = vmatpush.bf16.xpose.msra.mxu1 %v1329_v4 }
 0x2ca   : > { %2578 = vmatmul.msk.bf16.vlgmr.msra.gmra.mxu1 %vm1324_vm2, %v1317_v61 }
 0x345   : > { %v1364_v5 = vpop.f32.mrf.mxu2 }
 0x346   : > { %v1369_v10 = vmul.f32 0.35355338, %v1364_v5 }
 0x347   : > { %v1340_v7 = vpop.f32.mrf.mxu1 }
 0x348   : > { %v1368_v8 = vmul.f32 0.35355338, %v1340_v7  ;;  %v1377_v15 = vadd.f32 %v3965_v12, %v1369_v10 }
 0x34a   : > { %v1376_v9 = vadd.f32 %v3960_v6, %v1368_v8  ;;  %v1381_v16 = vsel %vm1324_vm2, %v1377_v15, -inf }
 0x34c   : > { %v1378_v11 = vsel %vm1324_vm2, %v1376_v9, -inf }
 0x34d   : > { %v1366_v13 = vpop.f32.mrf.mxu2  ;;  %1379 = vmax.xlane.f32.xlu1 %v1378_v11 }
 0x34f   : > { %v1342_v14 = vpop.f32.mrf.mxu1 }
 0x355   : > { %1382 = vmax.xlane.f32.xlu1 %v1381_v16 }
 0x3c0   : > { %v1380_v17 = vpop.xlane.xlu1 %1379 }
 0x3c1   : > { %v1384_v18 = vsub.f32 %v1376_v9, %v1380_v17 }
 0x3c3   : > { %v1386_v19 = vmul.f32 1.442695, %v1384_v18 }
 0x3c5   : > { %2872 = vpow2.f32 %v1386_v19 }
 0x3c8   : > { %v1383_v20 = vpop.xlane.xlu1 %1382 }
 0x3c9   : > { %v1385_v21 = vsub.f32 %v1377_v15, %v1383_v20 }
 0x3cb   : > { %v2873_v22 = vpop.eup %2872  ;;  %v1388_v23 = vmul.f32 1.442695, %v1385_v21 }
 0x3cc   : > { %v1390_v24 = vsel %vm1324_vm2, %v2873_v22, 0.0 }
 0x3cd   : > { %2874 = vpow2.f32 %v1388_v23  ;;  %1391 = vadd.xlane.f32.xlu2 %v1390_v24 }
 0x3d3   : > { %v2875_v25 = vpop.eup %2874 }
 0x3d4   : > { %v1393_v26 = vsel %vm1324_vm2, %v2875_v25, 0.0 }
 0x3d5   : > { %1394 = vadd.xlane.f32.xlu2 %v1393_v26 }
 0x440   : > { %v1392_v27 = vpop.xlane.xlu2 %1391 }
 0x441   : > { %2876 = vrcp.f32 %v1392_v27 }
 0x447   : > { %v2877_v28 = vpop.eup %2876 }
 0x448   : > { %v1398_v29 = vmul.f32 %v2877_v28, %v2873_v22  ;;  %v1395_v30 = vpop.xlane.xlu2 %1394 }
 0x449   : > { %2878 = vrcp.f32 %v1395_v30 }
 0x44c   : > { %1403 = sbr.rel (%p2580_p5) target bundleno = 1107 (0x453), region = 156 }
 0x44f   : > { %v2879_v31 = vpop.eup %2878 }
 0x450   : > { %v1399_v32 = vmul.f32 %v2879_v31, %v2875_v25 }
 0x451   : > { %1404 = vst.msk [vmem:[%s3918_s9] sm:$0xff] %vm1324_vm2, %v1398_v29 }
 0x452   : > { %1405 = vst.msk [vmem:[%s3918_s9 + $0x8] sm:$0xff] %vm1324_vm2, %v1399_v32 }
 0x453 PF: > { %s3436_s26 = smov 88   ;;  %s3437_s27 = smov 120   ;;  %vm1413_vm3 = vcmask 1043456   ;;  %v1406_v41 = vpack.c.bf16 %v1398_v29, %v1398_v29  ;;  %v1407_v46 = vpack.c.bf16 %v1399_v32, %v1399_v32 }
 0x454   : > { %1455 = vrot.lane.b32.xlu0 %v3952_v0, %s3436_s26  ;;  %1453 = vrot.lane.b32.xlu1 %v3952_v0, %s3437_s27  ;;  %s3438_s23 = smov 64   ;;  %s3439_s29 = smov (!%p2580_p5), 8  }
 0x455   : > { %1408 = vrot.lane.b32.xlu2 %v3952_v0, %s3438_s23 }
 0x45c   : > { %1478 = vrot.lane.b32.xlu0 %v3949_v62, %s3436_s26  ;;  %1476 = vrot.lane.b32.xlu1 %v3949_v62, %s3437_s27 }
 0x45d   : > { %1430 = vrot.lane.b32.xlu2 %v3949_v62, %s3438_s23 }
 0x4af   : > { %v1409_v39 = vpop.permute.xlu2 %1408 }
 0x4b0   : > { %v1415_v40 = vsel %vm1413_vm3, %v1409_v39, 0 }
 0x4b1   : > { %1424 = vmatpush.bf16.msra.mxu3 %v1415_v40 }
 0x4b4   : > { %2581 = vmatmul.msk.bf16.vlgmr.msra.gmra.mxu3 %vm1324_vm2, %v1406_v41 }
 0x4b7   : > { %v1431_v42 = vpop.permute.xlu2 %1430 }
 0x4b8   : > { %v1436_v43 = vsel %vm1413_vm3, %v1431_v42, 0 }
 0x4b9   : > { %1445 = vmatpush.bf16.msrb.mxu3 %v1436_v43 }
 0x4c4   : > { %2582 = vmatmul.msk.bf16.vlgmr.msrb.gmra.mxu3 %vm1324_vm2, %v1407_v46 }
 0x4c6   : > { %v1456_v33 = vpop.permute.xlu0 %1455  ;;  %v1454_v35 = vpop.permute.xlu1 %1453 }
 0x4c7   : > { %v1461_v34 = vsel %vm1324_vm2, %v1456_v33, 0 }
 0x4c8   : > { %1470 = vmatpush.bf16.xpose.msrb.mxu0 %v1461_v34 }
 0x4ce   : > { %v1479_v36 = vpop.permute.xlu0 %1478  ;;  %v1477_v38 = vpop.permute.xlu1 %1476 }
 0x4cf   : > { %2583 = vmatmul.msk.bf16.vlgmr.msrb.gmra.mxu0 %vm1324_vm2, %v1454_v35  ;;  %v1484_v37 = vsel %vm1324_vm2, %v1479_v36, 0 }
 0x4d0   : > { %1493 = vmatpush.bf16.xpose.msrb.mxu1 %v1484_v37 }
 0x4d7   : > { %2584 = vmatmul.msk.bf16.vlgmr.msrb.gmra.mxu1 %vm1324_vm2, %v1477_v38 }
 0x537   : > { %v1426_v57 = vpop.f32.mrf.mxu3 }
 0x538   : > { %1451 = vst.msk [vmem:[#allocation3] sm:$0xff] %vm1324_vm2, %v1426_v57 }
 0x53f   : > { %v1428_v61 = vpop.f32.mrf.mxu3 }
 0x547   : > { %v1447_v8 = vpop.f32.mrf.mxu3 }
 0x548   : > { %1452 = vst.msk [vmem:[#allocation3 + $0x8] sm:$0xff] %vm1324_vm2, %v1447_v8 }
 0x54c   : > { %v1472_v44 = vpop.f32.mrf.mxu0 }
 0x54d   : > { %v1499_v45 = vmul.f32 0.35355338, %v1472_v44 }
 0x54f   : > { %v1501_v47 = vadd.f32 %v3960_v6, %v1499_v45  ;;  %v1449_v9 = vpop.f32.mrf.mxu3 }
 0x551   : > { %v1503_v48 = vsel %vm1324_vm2, %v1501_v47, -inf }
 0x552   : > { %1504 = vmax.xlane.f32.xlu0 %v1503_v48 }
 0x554   : > { %v1474_v49 = vpop.f32.mrf.mxu0  ;;  %v1495_v50 = vpop.f32.mrf.mxu1 }
 0x555   : > { %v1500_v53 = vmul.f32 0.35355338, %v1495_v50 }
 0x557   : > { %v1502_v54 = vadd.f32 %v3965_v12, %v1500_v53 }
 0x559   : > { %v1506_v55 = vsel %vm1324_vm2, %v1502_v54, -inf }
 0x55a   : > { %1507 = vmax.xlane.f32.xlu1 %v1506_v55 }
 0x55c   : > { %v1497_v56 = vpop.f32.mrf.mxu1 }
 0x5c5   : > { %v1505_v58 = vpop.xlane.xlu0 %1504 }
 0x5c6   : > { %v1509_v59 = vsub.f32 %v1501_v47, %v1505_v58 }
 0x5c8   : > { %v1511_v60 = vmul.f32 1.442695, %v1509_v59 }
 0x5ca   : > { %2880 = vpow2.f32 %v1511_v60 }
 0x5cd   : > { %v1508_v63 = vpop.xlane.xlu1 %1507 }
 0x5ce   : > { %v1510_v1 = vsub.f32 %v1502_v54, %v1508_v63 }
 0x5d0   : > { %v2881_v2 = vpop.eup %2880  ;;  %v1513_v3 = vmul.f32 1.442695, %v1510_v1 }
 0x5d1   : > { %v1515_v4 = vsel %vm1324_vm2, %v2881_v2, 0.0 }
 0x5d2   : > { %2882 = vpow2.f32 %v1513_v3  ;;  %1516 = vadd.xlane.f32.xlu2 %v1515_v4 }
 0x5d8   : > { %v2883_v5 = vpop.eup %2882 }
 0x5d9   : > { %v1518_v7 = vsel %vm1324_vm2, %v2883_v5, 0.0 }
 0x5da   : > { %1519 = vadd.xlane.f32.xlu2 %v1518_v7 }
 0x645   : > { %v1517_v10 = vpop.xlane.xlu2 %1516 }
 0x646   : > { %2884 = vrcp.f32 %v1517_v10 }
 0x64c   : > { %v2885_v11 = vpop.eup %2884 }
 0x64d   : > { %v1523_v13 = vmul.f32 %v2885_v11, %v2881_v2  ;;  %v1520_v14 = vpop.xlane.xlu2 %1519 }
 0x64e   : > { %2886 = vrcp.f32 %v1520_v14 }
 0x651   : > { %1527 = sbr.rel (%p2580_p5) target bundleno = 1746 (0x6d2), region = 160 }
 0x654   : > { %v2887_v15 = vpop.eup %2886 }
 0x655   : > { %v1524_v16 = vmul.f32 %v2887_v15, %v2883_v5 }
 0x656   : > { %1530 = vrot.lane.b32.xlu0 %v1523_v13, %s3439_s29  ;;  %vm1536_vm4 = vcmask 130112  }
 0x65e   : > { %1532 = vrot.lane.b32.xlu0 %v1524_v16, %s3439_s29 }
 0x6c8   : > { %v1531_v17 = vpop.permute.xlu0 %1530 }
 0x6c9   : > { %1537 = vst.msk [vmem:[%s3918_s9] sm:$0xff] %vm1536_vm4, %v1531_v17 }
 0x6d0   : > { %v1533_v18 = vpop.permute.xlu0 %1532 }
 0x6d1   : > { %1538 = vst.msk [vmem:[%s3918_s9 + $0x8] sm:$0xff] %vm1536_vm4, %v1533_v18 }
 0x6d2 PF: > { %s3440_s14 = smov 80   ;;  %s3441_s6 = smov 112   ;;  %v1539_v29 = vpack.c.bf16 %v1523_v13, %v1523_v13  ;;  %v1540_v30 = vpack.c.bf16 %v1524_v16, %v1524_v16  ;;  %vm1591_vm5 = vcmask 130112  }
 0x6d3   : > { %1596 = vrot.lane.b32.xlu0 %v3952_v0, %s3440_s14  ;;  %1594 = vrot.lane.b32.xlu1 %v3952_v0, %s3441_s6  ;;  %s3442_s25 = smov 56   ;;  %s3443_s28 = smov 8  }
 0x6d4   : > { %1541 = vrot.lane.b32.xlu2 %v3952_v0, %s3442_s25  ;;  %s3444_s10 = smov (!%p2580_p5), 16  }
 0x6db   : > { %1619 = vrot.lane.b32.xlu0 %v3949_v62, %s3440_s14  ;;  %1617 = vrot.lane.b32.xlu1 %v3949_v62, %s3441_s6 }
 0x6dc   : > { %1562 = vrot.lane.b32.xlu2 %v3949_v62, %s3442_s25 }
 0x72e   : > { %v1542_v25 = vpop.permute.xlu2 %1541 }
 0x72f   : > { %v1547_v27 = vsel %vm1413_vm3, %v1542_v25, 0 }
 0x730   : > { %1556 = vmatpush.bf16.msrb.mxu2 %v1547_v27 }
 0x733   : > { %2586 = vmatmul.msk.bf16.vlgmr.msrb.gmra.mxu2 %vm1324_vm2, %v1539_v29 }
 0x736   : > { %v1563_v26 = vpop.permute.xlu2 %1562 }
 0x737   : > { %v1568_v28 = vsel %vm1413_vm3, %v1563_v26, 0 }
 0x738   : > { %1577 = vmatpush.bf16.msra.mxu3 %v1568_v28 }
 0x73b   : > { %2587 = vmatmul.msk.bf16.vlgmr.msra.gmra.mxu3 %vm1324_vm2, %v1540_v30 }
 0x745   : > { %v1597_v19 = vpop.permute.xlu0 %1596  ;;  %v1595_v21 = vpop.permute.xlu1 %1594 }
 0x746   : > { %v1602_v20 = vsel %vm1324_vm2, %v1597_v19, 0 }
 0x747   : > { %1611 = vmatpush.bf16.xpose.msra.mxu0 %v1602_v20 }
 0x74d   : > { %v1620_v22 = vpop.permute.xlu0 %1619  ;;  %v1618_v24 = vpop.permute.xlu1 %1617 }
 0x74e   : > { %2588 = vmatmul.msk.bf16.vlgmr.msra.gmra.mxu0 %vm1324_vm2, %v1595_v21  ;;  %v1625_v23 = vsel %vm1324_vm2, %v1620_v22, 0 }
 0x74f   : > { %1634 = vmatpush.bf16.xpose.msra.mxu1 %v1625_v23 }
 0x756   : > { %2589 = vmatmul.msk.bf16.vlgmr.msra.gmra.mxu1 %vm1324_vm2, %v1618_v24 }
 0x7b6   : > { %v1558_v41 = vpop.f32.mrf.mxu2 }
 0x7be   : > { %v1579_v42 = vpop.f32.mrf.mxu3  ;;  %v1560_v43 = vpop.f32.mrf.mxu2 }
 0x7c6   : > { %v1581_v44 = vpop.f32.mrf.mxu3 }
 0x7cb   : > { %v1613_v31 = vpop.f32.mrf.mxu0 }
 0x7cc   : > { %v1640_v32 = vmul.f32 0.35355338, %v1613_v31 }
 0x7ce   : > { %v1642_v33 = vadd.f32 %v3960_v6, %v1640_v32 }
 0x7d0   : > { %v1644_v34 = vsel %vm1324_vm2, %v1642_v33, -inf }
 0x7d1   : > { %1645 = vmax.xlane.f32.xlu0 %v1644_v34 }
 0x7d3   : > { %v1615_v35 = vpop.f32.mrf.mxu0  ;;  %v1636_v36 = vpop.f32.mrf.mxu1 }
 0x7d4   : > { %v1641_v37 = vmul.f32 0.35355338, %v1636_v36 }
 0x7d6   : > { %v1643_v38 = vadd.f32 %v3965_v12, %v1641_v37 }
 0x7d8   : > { %v1647_v39 = vsel %vm1324_vm2, %v1643_v38, -inf }
 0x7d9   : > { %1648 = vmax.xlane.f32.xlu1 %v1647_v39 }
 0x7db   : > { %v1638_v40 = vpop.f32.mrf.mxu1 }
 0x7e5   : > { %1585 = vrot.lane.b32.xlu0 %v1558_v41, %s3443_s28 }
 0x7f2   : > { %1587 = vrot.lane.b32.xlu1 %v1579_v42, %s3443_s28 }
 0x844   : > { %v1646_v45 = vpop.xlane.xlu0 %1645 }
 0x845   : > { %v1650_v46 = vsub.f32 %v1642_v33, %v1646_v45 }
 0x847   : > { %v1652_v47 = vmul.f32 1.442695, %v1650_v46 }
 0x849   : > { %2888 = vpow2.f32 %v1652_v47 }
 0x84c   : > { %v1649_v48 = vpop.xlane.xlu1 %1648 }
 0x84d   : > { %v1651_v49 = vsub.f32 %v1643_v38, %v1649_v48 }
 0x84f   : > { %v2889_v50 = vpop.eup %2888  ;;  %v1654_v53 = vmul.f32 1.442695, %v1651_v49 }
 0x850   : > { %v1656_v54 = vsel %vm1324_vm2, %v2889_v50, 0.0 }
 0x851   : > { %2890 = vpow2.f32 %v1654_v53  ;;  %1657 = vadd.xlane.f32.xlu2 %v1656_v54 }
 0x857   : > { %v2891_v55 = vpop.eup %2890  ;;  %v1586_v58 = vpop.permute.xlu0 %1585 }
 0x858   : > { %v1659_v56 = vsel %vm1324_vm2, %v2891_v55, 0.0  ;;  %1592 = vst.msk [vmem:[#allocation3] sm:$0xff] %vm1591_vm5, %v1586_v58 }
 0x859   : > { %1660 = vadd.xlane.f32.xlu2 %v1659_v56 }
 0x864   : > { %v1588_v57 = vpop.permute.xlu1 %1587 }
 0x865   : > { %1593 = vst.msk [vmem:[#allocation3 + $0x8] sm:$0xff] %vm1591_vm5, %v1588_v57 }
 0x8c4   : > { %v1658_v59 = vpop.xlane.xlu2 %1657 }
 0x8c5   : > { %2892 = vrcp.f32 %v1658_v59 }
 0x8cb   : > { %v2893_v60 = vpop.eup %2892 }
 0x8cc   : > { %v1664_v61 = vmul.f32 %v2893_v60, %v2889_v50  ;;  %v1661_v63 = vpop.xlane.xlu2 %1660 }
 0x8cd   : > { %2894 = vrcp.f32 %v1661_v63 }
 0x8d0   : > { %1668 = sbr.rel (%p2580_p5) target bundleno = 2385 (0x951), region = 164 }
 0x8d3   : > { %v2895_v1 = vpop.eup %2894 }
 0x8d4   : > { %v1665_v2 = vmul.f32 %v2895_v1, %v2891_v55 }
 0x8d5   : > { %1671 = vrot.lane.b32.xlu0 %v1664_v61, %s3444_s10  ;;  %vm1677_vm6 = vcmask 195712  }
 0x8dd   : > { %1673 = vrot.lane.b32.xlu0 %v1665_v2, %s3444_s10 }
 0x947   : > { %v1672_v3 = vpop.permute.xlu0 %1671 }
 0x948   : > { %1678 = vst.msk [vmem:[%s3918_s9] sm:$0xff] %vm1677_vm6, %v1672_v3 }
 0x94f   : > { %v1674_v4 = vpop.permute.xlu0 %1673 }
 0x950   : > { %1679 = vst.msk [vmem:[%s3918_s9 + $0x8] sm:$0xff] %vm1677_vm6, %v1674_v4 }
 0x951 PF: > { %s3445_s22 = smov 72   ;;  %s3446_s11 = smov 104   ;;  %v1680_v17 = vpack.c.bf16 %v1664_v61, %v1664_v61  ;;  %v1681_v18 = vpack.c.bf16 %v1665_v2, %v1665_v2  ;;  %vm1732_vm7 = vcmask 195712  }
 0x952   : > { %1737 = vrot.lane.b32.xlu0 %v3952_v0, %s3445_s22  ;;  %1735 = vrot.lane.b32.xlu1 %v3952_v0, %s3446_s11  ;;  %s3447_s19 = smov 48   ;;  %s3448_s30 = smov 16  }
 0x953   : > { %1682 = vrot.lane.b32.xlu2 %v3952_v0, %s3447_s19  ;;  %s3449_s26 = smov (!%p2580_p5), 24  }
 0x95a   : > { %1760 = vrot.lane.b32.xlu0 %v3949_v62, %s3445_s22  ;;  %1758 = vrot.lane.b32.xlu1 %v3949_v62, %s3446_s11 }
 0x95b   : > { %1703 = vrot.lane.b32.xlu2 %v3949_v62, %s3447_s19 }
 0x9ad   : > { %v1683_v13 = vpop.permute.xlu2 %1682 }
 0x9ae   : > { %v1688_v15 = vsel %vm1413_vm3, %v1683_v13, 0 }
 0x9af   : > { %1697 = vmatpush.bf16.msra.mxu2 %v1688_v15 }
 0x9b2   : > { %2591 = vmatmul.msk.bf16.vlgmr.msra.gmra.mxu2 %vm1324_vm2, %v1680_v17 }
 0x9b5   : > { %v1704_v14 = vpop.permute.xlu2 %1703 }
 0x9b6   : > { %v1709_v16 = vsel %vm1413_vm3, %v1704_v14, 0 }
 0x9b7   : > { %1718 = vmatpush.bf16.msrb.mxu3 %v1709_v16 }
 0x9ba   : > { %2592 = vmatmul.msk.bf16.vlgmr.msrb.gmra.mxu3 %vm1324_vm2, %v1681_v18 }
 0x9c4   : > { %v1738_v5 = vpop.permute.xlu0 %1737  ;;  %v1736_v8 = vpop.permute.xlu1 %1735 }
 0x9c5   : > { %v1743_v7 = vsel %vm1324_vm2, %v1738_v5, 0 }
 0x9c6   : > { %1752 = vmatpush.bf16.xpose.msrb.mxu0 %v1743_v7 }
 0x9cc   : > { %v1761_v9 = vpop.permute.xlu0 %1760  ;;  %v1759_v11 = vpop.permute.xlu1 %1758 }
 0x9cd   : > { %2593 = vmatmul.msk.bf16.vlgmr.msrb.gmra.mxu0 %vm1324_vm2, %v1736_v8  ;;  %v1766_v10 = vsel %vm1324_vm2, %v1761_v9, 0 }
 0x9ce   : > { %1775 = vmatpush.bf16.xpose.msrb.mxu1 %v1766_v10 }
 0x9d5   : > { %2594 = vmatmul.msk.bf16.vlgmr.msrb.gmra.mxu1 %vm1324_vm2, %v1759_v11 }
 0xa35   : > { %v1699_v29 = vpop.f32.mrf.mxu2 }
 0xa3d   : > { %v1720_v30 = vpop.f32.mrf.mxu3 }
 0xa45   : > { %v1722_v31 = vpop.f32.mrf.mxu3 }
 0xa4a   : > { %v1754_v19 = vpop.f32.mrf.mxu0 }
 0xa4b   : > { %v1781_v20 = vmul.f32 0.35355338, %v1754_v19 }
 0xa4d   : > { %v1783_v21 = vadd.f32 %v3960_v6, %v1781_v20  ;;  %v1701_v6 = vpop.f32.mrf.mxu2 }
 0xa4f   : > { %v1785_v22 = vsel %vm1324_vm2, %v1783_v21, -inf }
 0xa50   : > { %1786 = vmax.xlane.f32.xlu0 %v1785_v22 }
 0xa52   : > { %v1756_v23 = vpop.f32.mrf.mxu0  ;;  %v1777_v24 = vpop.f32.mrf.mxu1 }
 0xa53   : > { %v1782_v25 = vmul.f32 0.35355338, %v1777_v24 }
 0xa55   : > { %v1784_v26 = vadd.f32 %v3965_v12, %v1782_v25 }
 0xa57   : > { %v1788_v27 = vsel %vm1324_vm2, %v1784_v26, -inf }
 0xa58   : > { %1789 = vmax.xlane.f32.xlu1 %v1788_v27 }
 0xa5a   : > { %v1779_v28 = vpop.f32.mrf.mxu1 }
 0xa64   : > { %1726 = vrot.lane.b32.xlu0 %v1699_v29, %s3448_s30 }
 0xa71   : > { %1728 = vrot.lane.b32.xlu1 %v1720_v30, %s3448_s30 }
 0xac3   : > { %v1787_v32 = vpop.xlane.xlu0 %1786 }
 0xac4   : > { %v1791_v33 = vsub.f32 %v1783_v21, %v1787_v32 }
 0xac6   : > { %v1793_v34 = vmul.f32 1.442695, %v1791_v33 }
 0xac8   : > { %2896 = vpow2.f32 %v1793_v34 }
 0xacb   : > { %v1790_v35 = vpop.xlane.xlu1 %1789 }
 0xacc   : > { %v1792_v36 = vsub.f32 %v1784_v26, %v1790_v35 }
 0xace   : > { %v2897_v12 = vpop.eup %2896  ;;  %v1795_v37 = vmul.f32 1.442695, %v1792_v36 }
 0xacf   : > { %v1797_v38 = vsel %vm1324_vm2, %v2897_v12, 0.0 }
 0xad0   : > { %2898 = vpow2.f32 %v1795_v37  ;;  %1798 = vadd.xlane.f32.xlu2 %v1797_v38 }
 0xad6   : > { %v2899_v39 = vpop.eup %2898  ;;  %v1727_v42 = vpop.permute.xlu0 %1726 }
 0xad7   : > { %v1800_v40 = vsel %vm1324_vm2, %v2899_v39, 0.0  ;;  %1733 = vst.msk [vmem:[#allocation3] sm:$0xff] %vm1732_vm7, %v1727_v42 }
 0xad8   : > { %1801 = vadd.xlane.f32.xlu2 %v1800_v40 }
 0xae3   : > { %v1729_v41 = vpop.permute.xlu1 %1728 }
 0xae4   : > { %1734 = vst.msk [vmem:[#allocation3 + $0x8] sm:$0xff] %vm1732_vm7, %v1729_v41 }
 0xb43   : > { %v1799_v43 = vpop.xlane.xlu2 %1798 }
 0xb44   : > { %2900 = vrcp.f32 %v1799_v43 }
 0xb4a   : > { %v2901_v44 = vpop.eup %2900 }
 0xb4b   : > { %v1805_v45 = vmul.f32 %v2901_v44, %v2897_v12  ;;  %v1802_v46 = vpop.xlane.xlu2 %1801 }
 0xb4c   : > { %2902 = vrcp.f32 %v1802_v46 }
 0xb4f   : > { %1809 = sbr.rel (%p2580_p5) target bundleno = 3024 (0xbd0), region = 168 }
 0xb52   : > { %v2903_v47 = vpop.eup %2902 }
 0xb53   : > { %v1806_v48 = vmul.f32 %v2903_v47, %v2899_v39 }
 0xb54   : > { %1812 = vrot.lane.b32.xlu0 %v1805_v45, %s3449_s26  ;;  %vm1818_vm8 = vcmask 261312  }
 0xb5c   : > { %1814 = vrot.lane.b32.xlu0 %v1806_v48, %s3449_s26 }
 0xbc6   : > { %v1813_v49 = vpop.permute.xlu0 %1812 }
 0xbc7   : > { %1819 = vst.msk [vmem:[%s3918_s9] sm:$0xff] %vm1818_vm8, %v1813_v49 }
 0xbce   : > { %v1815_v50 = vpop.permute.xlu0 %1814 }
 0xbcf   : > { %1820 = vst.msk [vmem:[%s3918_s9 + $0x8] sm:$0xff] %vm1818_vm8, %v1815_v50 }
 0xbd0 PF: > { %s3450_s27 = smov 40   ;;  %v1821_v55 = vpack.c.bf16 %v1805_v45, %v1805_v45  ;;  %v1822_v58 = vpack.c.bf16 %v1806_v48, %v1806_v48  ;;  %s3451_s23 = smov 24   ;;  %v2644_v61 = vld [vmem:[%s947_s1 + $0x8] sm:$0xff]  ;;  %v2643_v63 = vld [vmem:[%s947_s1] sm:$0xff]  ;;  %vm1873_vm9 = vcmask 261312   ;;  %v3452_v17 = vmov 32.0  }
 0xbd1   : > { %1823 = vrot.lane.b32.xlu0 %v3952_v0, %s3450_s27  ;;  %1908 = vmatpush.bf16.msra.mxu0 %v2644_v61  ;;  %s4341_s14 = sld [smem:[#allocation60_spill]]  ;;  %2911 = vrcp.f32 %v3452_v17  ;;  %v2646_v31 = vld [vmem:[%s957_s8 + $0x8] sm:$0xff]  ;;  %v2645_v32 = vld [vmem:[%s957_s8] sm:$0xff] }
 0xbd2   : > { %2011 = vmatpush.bf16.msra.mxu1 %v2646_v31  ;;  %v2648_v36 = vld [vmem:[%s967_s17 + $0x8] sm:$0xff] }
 0xbd5   : > { %1909 = vmatpush.bf16.msra.mxu0 %v2643_v63  ;;  %v2647_v63 = vld [vmem:[%s967_s17] sm:$0xff] }
 0xbd6   : > { %2012 = vmatpush.bf16.msra.mxu1 %v2645_v32 }
 0xbd7   : > { %s4342_s6 = scalar_lea.vmem %s4341_s14, %s3871_s13  ;;  %v2912_v18 = vpop.eup %2911 }
 0xbd8   : > { %v2904_v7 = vld [vmem:[%s4342_s6] ss:$0 sm:$0xff]  ;;  %v1925_v19 = vmul.f32 32.0, %v2912_v18  ;;  %vm1929_vm10 = vweird.f32 %v2912_v18 }
 0xbd9   : > { %1844 = vrot.lane.b32.xlu0 %v3949_v62, %s3450_s27 }
 0xbda   : > { %v1926_v20 = vsub.f32 1.0, %v1925_v19 }
 0xbdc   : > { %v1927_v21 = vmul.f32 %v2912_v18, %v1926_v20 }
 0xbde   : > { %v1928_v22 = vadd.f32 %v2912_v18, %v1927_v21 }
 0xc43   : > { %v1824_v53 = vpop.permute.xlu0 %1823 }
 0xc44   : > { %v1829_v54 = vsel %vm1413_vm3, %v1824_v53, 0 }
 0xc45   : > { %1838 = vmatpush.bf16.msrb.mxu2 %v1829_v54  ;;  %v2905_v54 = vld [vmem:[%s1119_s5] ss:$0 sm:$0xff] }
 0xc48   : > { %2596 = vmatmul.msk.bf16.vlgmr.msrb.gmra.mxu2 %vm1324_vm2, %v1821_v55 }
 0xc49   : > { %2051 = vmatpush.bf16.msra.mxu2 %v2648_v36 }
 0xc4b   : > { %v1845_v56 = vpop.permute.xlu0 %1844 }
 0xc4c   : > { %v1850_v57 = vsel %vm1413_vm3, %v1845_v56, 0 }
 0xc4d   : > { %1859 = vmatpush.bf16.msra.mxu3 %v1850_v57  ;;  %2052 = vmatpush.bf16.msra.mxu2 %v2647_v63 }
 0xc50   : > { %2597 = vmatmul.msk.bf16.vlgmr.msra.gmra.mxu3 %vm1324_vm2, %v1822_v58 }
 0xccb   : > { %v1840_v59 = vpop.f32.mrf.mxu2 }
 0xccc   : > { %1867 = vrot.lane.b32.xlu1 %v1840_v59, %s3451_s23  ;;  %v2906_v59 = vld [vmem:[%s1122_s2] ss:$0 sm:$0xff] }
 0xcd3   : > { %v1842_v62 = vpop.f32.mrf.mxu2  ;;  %v1861_v0 = vpop.f32.mrf.mxu3 }
 0xcd4   : > { %1869 = vrot.lane.b32.xlu1 %v1861_v0, %s3451_s23 }
 0xcdb   : > { %v1863_v60 = vpop.f32.mrf.mxu3 }
 0xd3e   : > { %v1868_v1 = vpop.permute.xlu1 %1867 }
 0xd3f   : > { %1874 = vst.msk [vmem:[#allocation3] sm:$0xff] %vm1873_vm9, %v1868_v1 }
 0xd46   : > { %v1870_v2 = vpop.permute.xlu1 %1869  ;;  %v1876_v3 = vld [vmem:[#allocation3] sm:$0xff] }
 0xd47   : > { %1875 = vst.msk [vmem:[#allocation3 + $0x8] sm:$0xff] %vm1873_vm9, %v1870_v2  ;;  %v2907_v2 = vld [vmem:[%s1125_s21] ss:$0 sm:$0xff] }
 0xd4e   : > { %v1877_v4 = vld [vmem:[#allocation3 + $0x8] sm:$0xff] }
 0xd4f   : > { %v1878_v5 = vpack.c.bf16 %v1877_v4, %v1876_v3 }
 0xd51   : > { %2606 = vmatmul.msk.bf16.vlgmr.msra.gmra.mxu0 %vm1299_vm1, %v1878_v5 }
 0xdce   : > { %v1911_v8 = vpop.f32.mrf.mxu0 }
 0xdcf   : > { %v1912_v9 = vadd.f32 %v2904_v7, %v1911_v8 }
 0xdd1   : > { %v1916_v10 = vadd.f32 %v1912_v9, %v3937_v51  ;;  %v4076_v51 = vsel %vm1929_vm10, %v2912_v18, %v1928_v22 }
 0xdd3   : > { %v1918_v11 = vsel %vm1299_vm1, %v1916_v10, 0.0 }
 0xdd4   : > { %1919 = vadd.xlane.f32.xlu2 %v1918_v11 }
 0xdd6   : > { %v1913_v13 = vpop.f32.mrf.mxu0 }
 0xdd7   : > { %v1914_v14 = vadd.f32 %v2904_v7, %v1913_v13 }
 0xdd9   : > { %v1917_v15 = vadd.f32 %v1914_v14, %v3939_v52 }
 0xddb   : > { %v1921_v16 = vsel %vm1299_vm1, %v1917_v15, 0.0 }
 0xddc   : > { %1922 = vadd.xlane.f32.xlu2 %v1921_v16 }
 0xe47   : > { %v1920_v23 = vpop.xlane.xlu2 %1919 }
 0xe48   : > { %v1931_v24 = vmul.f32 %v4076_v51, %v1920_v23 }
 0xe4a   : > { %v1933_v25 = vsub.f32 %v1916_v10, %v1931_v24  ;;  %v2908_v10 = vld [vmem:[%s1128_s18] ss:$0 sm:$0xff] }
 0xe4c   : > { %v1935_v52 = vmul.f32 %v1933_v25, %v1933_v25 }
 0xe4e   : > { %v1937_v26 = vsel %vm1299_vm1, %v1935_v52, 0.0 }
 0xe4f   : > { %1938 = vadd.xlane.f32.xlu0 %v1937_v26  ;;  %v1923_v27 = vpop.xlane.xlu2 %1922 }
 0xe50   : > { %v1932_v28 = vmul.f32 %v4076_v51, %v1923_v27 }
 0xe52   : > { %v1934_v29 = vsub.f32 %v1917_v15, %v1932_v28 }
 0xe54   : > { %v1936_v30 = vmul.f32 %v1934_v29, %v1934_v29 }
 0xe56   : > { %v1940_v6 = vsel %vm1299_vm1, %v1936_v30, 0.0 }
 0xe57   : > { %1941 = vadd.xlane.f32.xlu1 %v1940_v6 }
 0xec2   : > { %v1939_v33 = vpop.xlane.xlu0 %1938 }
 0xec3   : > { %v1943_v34 = vmul.f32 %v1939_v33, %v4076_v51 }
 0xec5   : > { %v1945_v35 = vadd.f32 1e-06, %v1943_v34 }
 0xec7   : > { %2913 = vrsqrt.f32 %v1945_v35  ;;  %vm1953_vm12 = vweird.f32 %v1945_v35 }
 0xeca   : > { %v1942_v12 = vpop.xlane.xlu1 %1941 }
 0xecb   : > { %v1944_v37 = vmul.f32 %v1942_v12, %v4076_v51 }
 0xecd   : > { %v2914_v38 = vpop.eup %2913  ;;  %v1946_v39 = vadd.f32 1e-06, %v1944_v37 }
 0xece   : > { %v1948_v40 = vmul.f32 %v2914_v38, %v1945_v35  ;;  %vm1954_vm11 = vweird.f32 %v2914_v38 }
 0xecf   : > { %2915 = vrsqrt.f32 %v1946_v39  ;;  %vm1955_vm13 = vmor %vm1953_vm12, %vm1954_vm11  ;;  %vm1963_vm15 = vweird.f32 %v1946_v39 }
 0xed0   : > { %v1949_v41 = vmul.f32 %v2914_v38, %v1948_v40 }
 0xed2   : > { %v1950_v42 = vmul.f32 0.5, %v1949_v41  ;;  %v2909_v41 = vld [vmem:[%s1131_s7] ss:$0 sm:$0xff] }
 0xed4   : > { %v1951_v43 = vsub.f32 1.5, %v1950_v42 }
 0xed5   : > { %v2916_v44 = vpop.eup %2915 }
 0xed6   : > { %v1952_v45 = vmul.f32 %v2914_v38, %v1951_v43  ;;  %v1958_v46 = vmul.f32 %v2916_v44, %v1946_v39  ;;  %vm1964_vm14 = vweird.f32 %v2916_v44  ;;  %v2910_v43 = vld [vmem:[%s3912_s20] ss:$0 sm:$0xff] }
 0xed7   : > { %vm1965_vm0 = vmor %vm1963_vm15, %vm1964_vm14 }
 0xed8   : > { %v1959_v47 = vmul.f32 %v2916_v44, %v1958_v46  ;;  %v1956_v49 = vsel %vm1955_vm13, %v2914_v38, %v1952_v45 }
 0xed9   : > { %v1967_v53 = vmul.f32 %v1956_v49, %v1933_v25 }
 0xeda   : > { %v1960_v48 = vmul.f32 0.5, %v1959_v47 }
 0xedb   : > { %v1973_v58 = vmul.f32 %v2905_v54, %v1967_v53 }
 0xedc   : > { %v1961_v50 = vsub.f32 1.5, %v1960_v48 }
 0xedd   : > { %v1979_v0 = vadd.f32 %v2906_v59, %v1973_v58 }
 0xede   : > { %v1962_v55 = vmul.f32 %v2916_v44, %v1961_v50 }
 0xee0   : > { %v1966_v56 = vsel %vm1965_vm0, %v2916_v44, %v1962_v55 }
 0xee1   : > { %v1968_v57 = vmul.f32 %v1966_v56, %v1934_v29 }
 0xee3   : > { %v1974_v62 = vmul.f32 %v2905_v54, %v1968_v57 }
 0xee5   : > { %v1980_v60 = vadd.f32 %v2906_v59, %v1974_v62 }
 0xee7   : > { %v1981_v61 = vpack.c.bf16 %v1980_v60, %v1979_v0 }
 0xee9   : > { %2615 = vmatmul.msk.bf16.vlgmr.msra.gmra.mxu1 %vm1299_vm1, %v1981_v61 }
 0xf66   : > { %v2014_v1 = vpop.f32.mrf.mxu1 }
 0xf67   : > { %v2015_v3 = vadd.f32 %v2907_v2, %v2014_v1 }
 0xf69   : > { %v2019_v7 = vmax.f32 %v2015_v3, 0.0 }
 0xf6e   : > { %v2016_v4 = vpop.f32.mrf.mxu1 }
 0xf6f   : > { %v2017_v5 = vadd.f32 %v2907_v2, %v2016_v4 }
 0xf71   : > { %v2020_v8 = vmax.f32 %v2017_v5, 0.0 }
 0xf73   : > { %v2021_v9 = vpack.c.bf16 %v2020_v8, %v2019_v7 }
 0xf75   : > { %2624 = vmatmul.msk.bf16.vlgmr.msra.gmra.mxu2 %vm1299_vm1, %v2021_v9 }
 0xff8   : > { %v2054_v11 = vpop.f32.mrf.mxu2 }
 0xff9   : > { %v2055_v13 = vadd.f32 %v2908_v10, %v2054_v11 }
 0xffb   : > { %v2059_v14 = vadd.f32 %v2055_v13, %v1979_v0 }
 0xffd   : > { %v2061_v15 = vsel %vm1299_vm1, %v2059_v14, 0.0 }
 0xffe   : > { %2062 = vadd.xlane.f32.xlu2 %v2061_v15 }
0x1000   : > { %v2056_v16 = vpop.f32.mrf.mxu2 }
0x1001   : > { %v2057_v17 = vadd.f32 %v2908_v10, %v2056_v16 }
0x1003   : > { %v2060_v18 = vadd.f32 %v2057_v17, %v1980_v60 }
0x1005   : > { %v2064_v19 = vsel %vm1299_vm1, %v2060_v18, 0.0 }
0x1006   : > { %2065 = vadd.xlane.f32.xlu2 %v2064_v19 }
0x1071   : > { %v2063_v20 = vpop.xlane.xlu2 %2062 }
0x1072   : > { %v2067_v21 = vmul.f32 %v2063_v20, %v4076_v51 }
0x1074   : > { %v2069_v22 = vsub.f32 %v2059_v14, %v2067_v21 }
0x1076   : > { %v2071_v23 = vmul.f32 %v2069_v22, %v2069_v22 }
0x1078   : > { %v2073_v24 = vsel %vm1299_vm1, %v2071_v23, 0.0 }
0x1079   : > { %2074 = vadd.xlane.f32.xlu2 %v2073_v24  ;;  %v2066_v25 = vpop.xlane.xlu2 %2065 }
0x107a   : > { %v2068_v52 = vmul.f32 %v2066_v25, %v4076_v51 }
0x107c   : > { %v2070_v26 = vsub.f32 %v2060_v18, %v2068_v52 }
0x107e   : > { %v2072_v27 = vmul.f32 %v2070_v26, %v2070_v26 }
0x1080   : > { %v2076_v28 = vsel %vm1299_vm1, %v2072_v27, 0.0 }
0x1081   : > { %2077 = vadd.xlane.f32.xlu2 %v2076_v28 }
0x10ec   : > { %v2075_v29 = vpop.xlane.xlu2 %2074 }
0x10ed   : > { %v2079_v30 = vmul.f32 %v2075_v29, %v4076_v51 }
0x10ef   : > { %v2081_v6 = vadd.f32 1e-06, %v2079_v30 }
0x10f1   : > { %2917 = vrsqrt.f32 %v2081_v6  ;;  %vm2089_vm3 = vweird.f32 %v2081_v6 }
0x10f4   : > { %v2078_v31 = vpop.xlane.xlu2 %2077 }
0x10f5   : > { %v2080_v32 = vmul.f32 %v2078_v31, %v4076_v51 }
0x10f7   : > { %v2918_v33 = vpop.eup %2917  ;;  %v2082_v34 = vadd.f32 1e-06, %v2080_v32 }
0x10f8   : > { %v2084_v35 = vmul.f32 %v2918_v33, %v2081_v6  ;;  %vm2090_vm2 = vweird.f32 %v2918_v33 }
0x10f9   : > { %2919 = vrsqrt.f32 %v2082_v34  ;;  %vm2091_vm4 = vmor %vm2089_vm3, %vm2090_vm2  ;;  %vm2099_vm6 = vweird.f32 %v2082_v34 }
0x10fa   : > { %v2085_v36 = vmul.f32 %v2918_v33, %v2084_v35 }
0x10fc   : > { %v2086_v12 = vmul.f32 0.5, %v2085_v36 }
0x10fe   : > { %v2087_v37 = vsub.f32 1.5, %v2086_v12 }
0x10ff   : > { %v2920_v38 = vpop.eup %2919 }
0x1100   : > { %v2088_v39 = vmul.f32 %v2918_v33, %v2087_v37  ;;  %v2094_v40 = vmul.f32 %v2920_v38, %v2082_v34  ;;  %vm2100_vm5 = vweird.f32 %v2920_v38 }
0x1101   : > { %vm2101_vm7 = vmor %vm2099_vm6, %vm2100_vm5 }
0x1102   : > { %v2092_v51 = vsel %vm2091_vm4, %v2918_v33, %v2088_v39  ;;  %v2095_v42 = vmul.f32 %v2920_v38, %v2094_v40 }
0x1103   : > { %v2103_v44 = vmul.f32 %v2092_v51, %v2069_v22 }
0x1104   : > { %v2096_v45 = vmul.f32 0.5, %v2095_v42 }
0x1105   : > { %v2109_v46 = vmul.f32 %v2909_v41, %v2103_v44 }
0x1106   : > { %v2097_v47 = vsub.f32 1.5, %v2096_v45 }
0x1107   : > { %v2115_v48 = vadd.f32 %v2910_v43, %v2109_v46 }
0x1108   : > { %v2098_v49 = vmul.f32 %v2920_v38, %v2097_v47 }
0x1109   : > { %2117 = vst.msk [vmem:[#allocation2] sm:$0xff] %vm1299_vm1, %v2115_v48 }
0x110a   : > { %v2102_v50 = vsel %vm2101_vm7, %v2920_v38, %v2098_v49 }
0x110b   : > { %v2104_v53 = vmul.f32 %v2102_v50, %v2070_v26 }
0x110d   : > { %v2110_v54 = vmul.f32 %v2909_v41, %v2104_v53  ;;  %2121 = sbr.rel (%p2580_p5) target bundleno = 4373 (0x1115), region = 172 }
0x110f   : > { %v2116_v55 = vadd.f32 %v2910_v43, %v2110_v54 }
0x1111   : > { %2118 = vst.msk [vmem:[#allocation2 + $0x8] sm:$0xff] %vm1299_vm1, %v2116_v55 }
0x1112   : > { %vm2122_vm8 = vcmask 253952  }
0x1113   : > { %2123 = vst.msk [vmem:[%s3916_s4] sm:$0x1] %vm2122_vm8, %v2115_v48 }
0x1114   : > { %2124 = vst.msk [vmem:[%s3916_s4 + $0x1] sm:$0x1] %vm2122_vm8, %v2116_v55 }
0x1115 PF: > { %s4349_s7 = sld [smem:[#allocation47_spill]]  ;;  %s2142_s29 = sshll.u32 %s3916_s4, 4  ;;  %s2143_s29 = int_to_ptr.vmem [resolvable:$true] %s2142_s29 }
0x1116   : > { %s4350_s27 = sld [smem:[#allocation69_spill]]  ;;  %s2126_s6 = scalar_lea.sflag [#allocation6], %s3832_s16 }
0x111c   : > { %s2141_s3 = scalar_lea.hbm %s4350_s27, %s4349_s7  ;;  %s3271_s10 = scalar_lea.hbm %s4350_s27, 4 }
0x111d   : > { %s2144_s14 = sshll.u32 %s2141_s3, 4  ;;  %s2145_s14 = int_to_ptr.hbm [resolvable:$true] %s2144_s14 }
0x111e   : > { %s3265_s8 = sshra.s32 %s2145_s14, 4  ;;  %s3266_s8 = int_to_ptr.hbm [resolvable:$true] %s3265_s8 }
0x111f   : > { %s3267_s1 = scalar_lea.hbm %s3266_s8, 2  ;;  %p3272_p3 = scmp.lt.s32.totalorder %s3266_s8, %s4350_s27 }
0x1120   : > { %p3268_p7 = scmp.ne.s32.totalorder %s3266_s8, %s3267_s1  ;;  %p3273_p9 = scmp.lt.s32.totalorder %s3271_s10, %s3267_s1 }
0x1122   : > { %p3269_p11 = pnand %p3268_p7, %p3673_p10  ;;  %p3274_p12 = por %p3273_p9, %p3272_p3 }
0x1124   : > { %p3270_p2 = pneg %p3269_p11 }
0x1126   : > { %p3275_p0 = pnand %p3274_p12, %p3270_p2 }
0x1128   : > { %3278 = shalt.err (!%p3275_p0)
}
0x1129   : > { %s3453_s4 = smov 1   ;;  %s4352_s11 = sld [smem:[#allocation36_spill]] }
0x112a   : > { %2682 = dma.vmem_to_hbm [thread:$0]  (%p3673_p10), %s2143_s29, 32, %s2145_s14, %s2126_s6, %s3448_s30, %s3448_s30, %s3453_s4  }
0x112b   : > { %s2159_s2 = sshll.u32 %s3918_s9, 4  ;;  %s4353_s24 = sld [smem:[#allocation70_spill]]  ;;  %s2160_s2 = int_to_ptr.vmem [resolvable:$true] %s2159_s2 }
0x112c   : > { %s2131_s7 = scalar_lea.sflag [#allocation22], %s3832_s16 }
0x112f   : > { %s2649_s19 = sshll.u32 %s4352_s11, 4 }
0x1131   : > { %s4354_s21 = smov %s4353_s24  ;;  %s2158_s18 = scalar_lea.hbm %s4353_s24, %s2649_s19 }
0x1132   : > { %s2161_s13 = sshll.u32 %s2158_s18, 4  ;;  %s3299_s30 = scalar_lea.hbm %s4354_s21, 32  ;;  %s2162_s13 = int_to_ptr.hbm [resolvable:$true] %s2161_s13 }
0x1133   : > { %s3293_s17 = sshra.s32 %s2162_s13, 4  ;;  %s3294_s17 = int_to_ptr.hbm [resolvable:$true] %s3293_s17 }
0x1134   : > { %s3295_s20 = scalar_lea.hbm %s3294_s17, 16  ;;  %p3300_p4 = scmp.lt.s32.totalorder %s3294_s17, %s4354_s21 }
0x1135   : > { %p3296_p1 = scmp.ne.s32.totalorder %s3294_s17, %s3295_s20  ;;  %p3301_p5 = scmp.lt.s32.totalorder %s3299_s30, %s3295_s20 }
0x1137   : > { %p3297_p6 = pnand %p3296_p1, %p3673_p10  ;;  %p3302_p7 = por %p3301_p5, %p3300_p4 }
0x1139   : > { %p3298_p8 = pneg %p3297_p6 }
0x113b   : > { %p3303_p11 = pnand %p3302_p7, %p3298_p8 }
0x113d   : > { %3306 = shalt.err (!%p3303_p11)
}
0x113e   : > { %s3454_s16 = smov 128  }
0x113f   : > { %2683 = dma.vmem_to_hbm [thread:$0]  (%p3673_p10), %s2160_s2, 256, %s2162_s13, %s2131_s7, %s3454_s16, %s3454_s16, %s3443_s28  }
0x1140 PF: > { %s4355_s14 = sld [smem:[#allocation39_spill]] }
0x1141   : > { %s4356_s6 = sld [smem:[#allocation32_spill]] }
0x1146   : > { %p2739_p2 = scmp.ge.s32.totalorder %s4355_s14, 2 }
0x1147   : > { %s2176_s25 = sand.u32 1, %s4356_s6  }
0x1148   : > { %p2722_p3 = pnand %p2739_p2, %p3683_p13  ;;  %s2177_s0 = scalar_lea.sflag [#allocation6], %s2176_s25 }
0x114a   : > { %p2723_p9 = pneg %p2722_p3 }
0x114c   : > { %3372 = dma.done.wait (%p2723_p9), %s2177_s0, 32  }
0x114d   : > { %3374 = vsyncadd (%p2723_p9), %s2177_s0, 4294967264  ;;  %s2187_s10 = scalar_lea.sflag [#allocation22], %s2176_s25 }
0x114e   : > { %3376 = dma.done.wait (%p2723_p9), %s2187_s10, 256  }
0x114f   : > { %3378 = vsyncadd (%p2723_p9), %s2187_s10, 4294967040  ;;  %s45_s6 = sadd.s32 1, %s4355_s14   ;;  %s4358_s3 = sld [smem:[#allocation30_spill]] }
0x1150   : > { %p42_p12 = scmp.ge.s32.totalorder %s45_s6, 6   ;;  %s4359_s28 = sld [smem:[#allocation31_spill]] }
0x1151   : > { %s4360_s29 = sld [smem:[#allocation45_spill]] }
0x1152   : > { %s4361_s30 = sld [smem:[#allocation33_spill]] }
0x1153   : > { %s4362_s4 = sld [smem:[#allocation34_spill]] }
0x1154   : > { %s4363_s0 = sld [smem:[#allocation43_spill]]  ;;  %44 = sbr.rel (!%p42_p12) target bundleno = 38 (0x26), region = 292 }
0x1155   : > { %s4364_s23 = sld [smem:[#allocation37_spill]] }
0x1156   : > { %s4365_s1 = sld [smem:[#allocation38_spill]] }
0x1157   : > { %s4366_s5 = sld [smem:[#allocation40_spill]] }
0x1158   : > { %s4367_s24 = sld [smem:[#allocation41_spill]] }
0x1159   :  { %2193 = vsyncpa [#allocation5], 1 }
0x115a   :  { %2195 = vsyncpa [#allocation5 + $0x1], 1 }
0x115b   :  { %2196 = vsyncpa [#allocation8], 1 }
0x115c   :  { %2197 = vsyncpa [#allocation11], 1 }
0x115d   :  { %2198 = vsyncpa [#allocation14], 1 }
0x115e   :  { %2199 = vsyncpa [#allocation6], 1 }
0x115f   :  { %2201 = vsyncpa [#allocation6 + $0x1], 1 }
0x1160   :  { %2202 = vsyncpa [#allocation22], 1 }
0x1161   :  { %2204 = vsyncpa [#allocation22 + $0x1], 1 }

// kernel: tpu_custom_call.1
= control target key start
LH: loop header
LB: loop body
LE: loop exit
PB: predicated region body
PF: predicated region fallthrough
CT: control target
= control target key end

     0   :  { %s4206_s0 = inlined_call_operand.vmem [shape: f32[4,8,3], index: 0, kind: input, shape index: {}]   ;;  %s4207_s1 = inlined_call_operand.vmem [shape: f32[4,8,32], index: 1, kind: input, shape index: {}]   ;;  %s4208_s2 = inlined_call_operand.hbm [shape: f32[4,1,8], index: 2, kind: input, shape index: {}]   ;;  %s4209_s3 = inlined_call_operand.hbm [shape: f32[3,32], index: 3, kind: input, shape index: {}]   ;;  %s4210_s4 = inlined_call_operand.hbm [shape: f32[1,32], index: 4, kind: input, shape index: {}]   ;;  %s4211_s5 = inlined_call_operand.vmem [shape: bf16[32,32], index: 5, kind: input, shape index: {}]   ;;  %s4212_s6 = inlined_call_operand.hbm [shape: bf16[32,32], index: 6, kind: input, shape index: {}]   ;;  %s4213_s7 = inlined_call_operand.hbm [shape: f32[1,32], index: 7, kind: input, shape index: {}]   ;;  %s4214_s8 = inlined_call_operand.hbm [shape: f32[8,32], index: 8, kind: input, shape index: {}]   ;;  %s4215_s9 = inlined_call_operand.hbm [shape: bf16[2,32,96], index: 9, kind: input, shape index: {}]   ;;  %s4216_s10 = inlined_call_operand.vmem [shape: f32[2,1,96], index: 10, kind: input, shape index: {}]   ;;  %s4217_s11 = inlined_call_operand.hbm [shape: bf16[2,32,32], index: 11, kind: input, shape index: {}]   ;;  %s4218_s12 = inlined_call_operand.vmem [shape: f32[2,1,32], index: 12, kind: input, shape index: {}]   ;;  %s4219_s13 = inlined_call_operand.vmem [shape: f32[2,1,32], index: 13, kind: input, shape index: {}]   ;;  %s4220_s14 = inlined_call_operand.vmem [shape: f32[2,1,32], index: 14, kind: input, shape index: {}]   ;;  %s4221_s15 = inlined_call_operand.hbm [shape: bf16[2,32,32], index: 15, kind: input, shape index: {}]   ;;  %s4222_s16 = inlined_call_operand.vmem [shape: f32[2,1,32], index: 16, kind: input, shape index: {}]   ;;  %s4223_s17 = inlined_call_operand.hbm [shape: bf16[2,32,32], index: 17, kind: input, shape index: {}]   ;;  %s4224_s18 = inlined_call_operand.vmem [shape: f32[2,1,32], index: 18, kind: input, shape index: {}]   ;;  %s4225_s19 = inlined_call_operand.vmem [shape: f32[2,1,32], index: 19, kind: input, shape index: {}]   ;;  %s4226_s20 = inlined_call_operand.hbm [shape: f32[2,1,32], index: 20, kind: input, shape index: {}]   ;;  %s4227_s21 = inlined_call_operand.hbm [shape: f32[4,1,32], index: 21, kind: output, shape index: {0}]   ;;  %s4228_s22 = inlined_call_operand.hbm [shape: f32[4,8,32], index: 22, kind: output, shape index: {1}]  }
   0x1   :  { %4255 = sst [smem:[#allocation48_spill]] %s4206_s0 }
   0x2   :  { %4256 = sst [smem:[#allocation49_spill]] %s4207_s1 }
   0x3   :  { %4257 = sst [smem:[#allocation50_spill]] %s4208_s2 }
   0x4   :  { %4258 = sst [smem:[#allocation51_spill]] %s4209_s3 }
   0x5   :  { %4259 = sst [smem:[#allocation52_spill]] %s4210_s4 }
   0x6   :  { %4260 = sst [smem:[#allocation53_spill]] %s4211_s5 }
   0x7   :  { %4261 = sst [smem:[#allocation54_spill]] %s4212_s6 }
   0x8   :  { %4262 = sst [smem:[#allocation55_spill]] %s4213_s7 }
   0x9   :  { %4263 = sst [smem:[#allocation56_spill]] %s4214_s8 }
   0xa   :  { %4264 = sst [smem:[#allocation57_spill]] %s4215_s9 }
   0xb   :  { %4265 = sst [smem:[#allocation58_spill]] %s4216_s10 }
   0xc   :  { %4266 = sst [smem:[#allocation59_spill]] %s4217_s11 }
   0xd   :  { %4267 = sst [smem:[#allocation60_spill]] %s4218_s12 }
   0xe   :  { %4268 = sst [smem:[#allocation61_spill]] %s4219_s13 }
   0xf   :  { %4269 = sst [smem:[#allocation62_spill]] %s4220_s14 }
  0x10   :  { %4270 = sst [smem:[#allocation63_spill]] %s4221_s15 }
  0x11   :  { %4271 = sst [smem:[#allocation64_spill]] %s4222_s16 }
  0x12   :  { %4272 = sst [smem:[#allocation65_spill]] %s4223_s17 }
  0x13   :  { %4273 = sst [smem:[#allocation66_spill]] %s4224_s18 }
  0x14   :  { %4274 = sst [smem:[#allocation67_spill]] %s4225_s19 }
  0x15   :  { %4275 = sst [smem:[#allocation68_spill]] %s4226_s20 }
  0x16   :  { %4276 = sst [smem:[#allocation69_spill]] %s4227_s21 }
  0x17   :  { %4277 = sst [smem:[#allocation70_spill]] %s4228_s22 }
  0x18   :  { %28 = vsyncpa [#allocation5], 0 }
  0x19   :  { %30 = vsyncpa [#allocation5 + $0x1], 0 }
  0x1a   :  { %31 = vsyncpa [#allocation8], 0 }
  0x1b   :  { %32 = vsyncpa [#allocation11], 0 }
  0x1c   :  { %33 = vsyncpa [#allocation14], 0 }
  0x1d   :  { %34 = vsyncpa [#allocation6], 0 }
  0x1e   :  { %36 = vsyncpa [#allocation6 + $0x1], 0 }
  0x1f   :  { %37 = vsyncpa [#allocation22], 0 }
  0x20   :  { %39 = vsyncpa [#allocation22 + $0x1], 0  ;;  %s3570_s3 = smov 0   ;;  %s3572_s28 = smov 0  }
  0x21   :  { %s3574_s29 = smov 0   ;;  %s3576_s30 = smov 0  }
  0x22   :  { %s3578_s4 = smov 0   ;;  %s3580_s0 = smov 0  }
  0x23   :  { %s3582_s23 = smov 0   ;;  %s3584_s1 = smov 0  }
  0x24   :  { %s3586_s5 = smov 0   ;;  %s3588_s24 = smov 0  }
  0x25   :  { %s3590_s6 = smov 0  }
  0x26 LB: > { %4278 = sst [smem:[#allocation30_spill]] %s3385_s28  ;;  %s3626_s25 = sadd.s32 4294967295, %s3421_s6   ;;  %s3421_s6 = sphi %s3590_s6, %s45_s6   ;;  %s3417_s24 = sphi %s3588_s24, %s4367_s24   ;;  %s3413_s5 = sphi %s3586_s5, %s4366_s5   ;;  %s3409_s1 = sphi %s3584_s1, %s4365_s1   ;;  %s3405_s23 = sphi %s3582_s23, %s4364_s23   ;;  %s3401_s0 = sphi %s3580_s0, %s4363_s0   ;;  %s3397_s4 = sphi %s3578_s4, %s4362_s4   ;;  %s3393_s30 = sphi %s3576_s30, %s4361_s30   ;;  %s3389_s29 = sphi %s3574_s29, %s4360_s29   ;;  %s3385_s28 = sphi %s3572_s28, %s4359_s28   ;;  %s3381_s3 = sphi %s3570_s3, %s4358_s3  }
  0x27   : > { %4279 = sst [smem:[#allocation31_spill]] %s3389_s29  ;;  %s2511_s26 = sadd.s32 4294967294, %s3421_s6  }
  0x28   : > { %4280 = sst [smem:[#allocation32_spill]] %s3393_s30  ;;  %s54_s2 = sadd.s32 1, %s3413_s5 }
  0x29   : > { %4281 = sst [smem:[#allocation33_spill]] %s3397_s4  ;;  %s57_s27 = sadd.s32 1, %s3417_s24 }
  0x2a   : > { %4282 = sst [smem:[#allocation34_spill]] %s3401_s0  ;;  %p55_p0 = scmp.ge.s32.totalorder %s54_s2, 2 }
  0x2b   : > { %4283 = sst [smem:[#allocation35_spill]] %s3405_s23  ;;  %s116_s22 = sadd.s32 1, %s3401_s0 }
  0x2c   : > { %4284 = sst [smem:[#allocation36_spill]] %s3409_s1  ;;  %p123_p1 = scmp.ne.s32.totalorder %s3401_s0, %s3397_s4 }
  0x2d   : > { %4285 = sst [smem:[#allocation37_spill]] %s3413_s5  ;;  %p124_p2 = scmp.eq.s32.totalorder %s3421_s6, 0 }
  0x2e   : > { %4286 = sst [smem:[#allocation38_spill]] %s3417_s24  ;;  %s4369_s2 = smov (%p55_p0, %s54_s2), 0 }
  0x2f   : > { %4287 = sst [smem:[#allocation39_spill]] %s3421_s6  ;;  %s4371_s27 = smov (!%p55_p0, %s57_s27), %s3417_s24 }
  0x30   : > { %4288 = sst [smem:[#allocation40_spill]] %s4369_s2  ;;  %p3643_p3 = por %p124_p2, %p123_p1 }
  0x31   : > { %p129_p4 = scmp.ne.s32.totalorder %s3397_s4, %s3393_s30  ;;  %p59_p5 = scmp.ge.s32.totalorder %s4371_s27, 2 }
  0x32   : > { %p130_p6 = scmp.eq.s32.totalorder %s3626_s25, 0  ;;  %s265_s19 = ssub.s32 %s3413_s5, %s4369_s2 }
  0x33   : > { %p591_p7 = scmp.eq.s32.totalorder %s3626_s25, 3  ;;  %s4373_s27 = smov (%p59_p5, %s4371_s27), 0 }
  0x34   : > { %4290 = sst [smem:[#allocation41_spill]] %s4373_s27  ;;  %p3660_p8 = por %p130_p6, %p129_p4 }
  0x35   : > { %p3664_p9 = scmp.eq.s32.totalorder %s265_s19, 0  ;;  %s113_s14 = ssub.s32 %s3417_s24, %s4373_s27 }
  0x36   : > { %p3673_p10 = por %p591_p7, %p123_p1  ;;  %p114_p11 = scmp.eq.s32.totalorder %s113_s14, 0 }
  0x37   : > { %p597_p12 = scmp.eq.s32.totalorder %s2511_s26, 3  ;;  %p2733_p0 = scmp.lt.s32.totalorder %s3421_s6, 4 }
  0x38   : > { %s4293_s13 = scalar_select %p3673_p10, 1, 0 }
  0x39   : > { %s3678_s2 = scalar_select %p114_p11, %s3401_s0, %s116_s22  }
  0x3a   : > { %4294 = sst [smem:[#allocation42_spill]] %s4293_s13  ;;  %p3683_p13 = por %p597_p12, %p129_p4 }
  0x3b   : > { %4295 = sst [smem:[#allocation43_spill]] %s3678_s2  ;;  %s726_s19 = sand.u32 1, %s3421_s6  }
  0x3c   : > { %s4296_s12 = scalar_select %p3683_p13, 1, 0 }
  0x3d   : > { %s728_s27 = sand.u32 1, %s3401_s0   ;;  %s2520_s14 = sshll.u32 %s3417_s24, 1 }
  0x3e   : > { %4297 = sst [smem:[#allocation44_spill]] %s4296_s12  ;;  %s2519_s13 = sshll.u32 %s728_s27, 1 }
  0x3f   : > { %s4298_s2 = sld [smem:[#allocation50_spill]]  ;;  %s730_s10 = scalar_lea.vmem [#allocation4], %s2519_s13 }
  0x40   : > { %s737_s12 = sshll.u32 %s730_s10, 4  ;;  %p2703_p1 = pnand %p2733_p0, %p3643_p3  ;;  %s738_s12 = int_to_ptr.vmem [resolvable:$true] %s737_s12 }
  0x41   : > { %s3698_s27 = scalar_lea.sflag [#allocation5], %s726_s19  ;;  %s3423_s24 = smov 16  }
  0x42   : > { %s3424_s0 = smov 1   ;;  %p275_p4 = scmp.ne.s32.totalorder %s3389_s29, %s3385_s28 }
  0x43   : > { %p281_p5 = scmp.ne.s32.totalorder %s3385_s28, %s3381_s3  ;;  %s4242_s21 = sand.u32 1, %s3389_s29  }
  0x44   : > { %p277_p7 = por %p275_p4, %p124_p2  ;;  %s4302_s9 = sld [smem:[#allocation57_spill]] }
  0x45   : > { %s734_s30 = scalar_lea.hbm %s4298_s2, %s2520_s14  ;;  %s268_s2 = sadd.s32 1, %s3389_s29 }
  0x46   : > { %s735_s23 = sshll.u32 %s734_s30, 4  ;;  %p3715_p11 = por %p281_p5, %p130_p6  ;;  %s736_s23 = int_to_ptr.hbm [resolvable:$true] %s735_s23 }
  0x47   : > { %2705 = dma.hbm_to_vmem [thread:$0]  (!%p2703_p1), %s736_s23, 32, %s738_s12, %s3698_s27, %s3423_s24, %s3423_s24, %s3424_s0  }
  0x48   : > { %s3705_s13 = scalar_select %p3664_p9, %s3389_s29, %s268_s2  }
  0x49   : > { %s4300_s10 = scalar_select %p3715_p11, 1, 0 }
  0x4a   : > { %4299 = sst [smem:[#allocation45_spill]] %s3705_s13  ;;  %s3721_s30 = sshll.u32 %s3413_s5, 4 }
  0x4b   : > { %4301 = sst [smem:[#allocation46_spill]] %s4300_s10  ;;  %s3725_s12 = sshll.u32 %s4242_s21, 4 }
  0x4c   : > { %s756_s3 = scalar_lea.hbm %s4302_s9, %s3721_s30  ;;  %s751_s24 = scalar_lea.vmem [#allocation15], %s3725_s12 }
  0x4d   : > { %s757_s23 = sshll.u32 %s756_s3, 4  ;;  %s759_s19 = sshll.u32 %s751_s24, 4  ;;  %s758_s23 = int_to_ptr.hbm [resolvable:$true] %s757_s23  ;;  %s760_s19 = int_to_ptr.vmem [resolvable:$true] %s759_s19 }
  0x4e   : > { %p3734_p2 = pnand %p2733_p0, %p277_p7  ;;  %s4304_s11 = sld [smem:[#allocation59_spill]] }
  0x4f   : > { %s4243_s0 = smov 64   ;;  %s3426_s3 = smov 4  }
  0x50   : > { %2708 = dma.hbm_to_vmem [thread:$0]  (!%p3734_p2), %s758_s23, 256, %s760_s19, %s3698_s27, %s4243_s0, %s4243_s0, %s3426_s3  }
  0x51   : > { %s779_s24 = scalar_lea.vmem [#allocation16], %s3725_s12  ;;  %s4305_s15 = sld [smem:[#allocation63_spill]] }
  0x52   : > { %s787_s21 = sshll.u32 %s779_s24, 4  ;;  %s819_s9 = scalar_lea.vmem [#allocation17], %s3725_s12  ;;  %s788_s21 = int_to_ptr.vmem [resolvable:$true] %s787_s21 }
  0x53   : > { %p2512_p3 = scmp.ge.s32.totalorder %s3421_s6, 1  ;;  %p630_p9 = scmp.lt.s32.totalorder %s3421_s6, 5 }
  0x54   : > { %s784_s2 = scalar_lea.hbm %s4304_s11, %s3721_s30  ;;  %s827_s11 = sshll.u32 %s819_s9, 4  ;;  %s828_s11 = int_to_ptr.vmem [resolvable:$true] %s827_s11 }
  0x55   : > { %s785_s16 = sshll.u32 %s784_s2, 4  ;;  %s4306_s19 = sld [smem:[#allocation51_spill]]  ;;  %s786_s16 = int_to_ptr.hbm [resolvable:$true] %s785_s16 }
  0x56   : > { %2711 = dma.hbm_to_vmem [thread:$0]  (!%p3734_p2), %s786_s16, 256, %s788_s21, %s3698_s27, %s4243_s0, %s4243_s0, %s3426_s3  }
  0x57   : > { %s824_s2 = scalar_lea.hbm %s4305_s15, %s3721_s30  ;;  %p3771_p12 = pnand %p2512_p3, %p630_p9 }
  0x58   : > { %s825_s13 = sshll.u32 %s824_s2, 4  ;;  %s3427_s9 = smov [#allocation7]   ;;  %s826_s13 = int_to_ptr.hbm [resolvable:$true] %s825_s13 }
  0x59   : > { %2714 = dma.hbm_to_vmem [thread:$0]  (!%p3734_p2), %s826_s13, 256, %s828_s11, %s3698_s27, %s4243_s0, %s4243_s0, %s3426_s3  }
  0x5a   : > { %s644_s26 = sshll.u32 %s3427_s9, 4  ;;  %s4308_s11 = sld [smem:[#allocation54_spill]]  ;;  %s645_s26 = int_to_ptr.vmem [resolvable:$true] %s644_s26 }
  0x5b   : > { %s642_s16 = sshll.u32 %s4306_s19, 4  ;;  %p2686_p0 = pneg %p3771_p12  ;;  %s643_s16 = int_to_ptr.hbm [resolvable:$true] %s642_s16 }
  0x5c   : > { %s3428_s21 = smov [#allocation10]   ;;  %s4310_s17 = sld [smem:[#allocation65_spill]] }
  0x5d   : > { %p3782_p1 = pnand %p2686_p0, %p130_p6  ;;  %s670_s19 = sshll.u32 %s3428_s21, 4  ;;  %s671_s19 = int_to_ptr.vmem [resolvable:$true] %s670_s19 }
  0x5e   : > { %s847_s15 = scalar_lea.vmem [#allocation18], %s3725_s12  ;;  %s4312_s10 = sld [smem:[#allocation52_spill]] }
  0x5f   : > { %2689 = dma.hbm_to_vmem [thread:$0]  (!%p3782_p1), %s643_s16, 64, %s645_s26, [#allocation8]  }
  0x60   : > { %s668_s13 = sshll.u32 %s4308_s11, 4  ;;  %s4311_s11 = smov 64   ;;  %s669_s13 = int_to_ptr.hbm [resolvable:$true] %s668_s13 }
  0x61   : > { %2695 = dma.hbm_to_vmem [thread:$0]  (!%p3782_p1), %s669_s13, 256, %s671_s19, [#allocation11], %s4311_s11, %s4311_s11, %s3426_s3  }
  0x62   : > { %s852_s22 = scalar_lea.hbm %s4310_s17, %s3721_s30  ;;  %s855_s6 = sshll.u32 %s847_s15, 4  ;;  %s856_s6 = int_to_ptr.vmem [resolvable:$true] %s855_s6 }
  0x63   : > { %s853_s2 = sshll.u32 %s852_s22, 4  ;;  %s3429_s30 = smov [#allocation9]   ;;  %s854_s2 = int_to_ptr.hbm [resolvable:$true] %s853_s2 }
  0x64   : > { %s654_s28 = sshll.u32 %s4312_s10, 4  ;;  %s656_s0 = sshll.u32 %s3429_s30, 4  ;;  %s655_s28 = int_to_ptr.hbm [resolvable:$true] %s654_s28  ;;  %s657_s0 = int_to_ptr.vmem [resolvable:$true] %s656_s0 }
  0x65   : > { %2717 = dma.hbm_to_vmem [thread:$0]  (!%p3734_p2), %s854_s2, 256, %s856_s6, %s3698_s27, %s4311_s11, %s4311_s11, %s3426_s3  }
  0x66   : > { %s4313_s7 = sld [smem:[#allocation55_spill]]  ;;  %s3430_s6 = smov [#allocation12]  }
  0x67   : > { %2692 = dma.hbm_to_vmem [thread:$0]  (!%p3782_p1), %s655_s28, 16, %s657_s0, [#allocation8]  }
  0x68   : > { %s4314_s8 = sld [smem:[#allocation56_spill]]  ;;  %s685_s3 = sshll.u32 %s3430_s6, 4  ;;  %s686_s3 = int_to_ptr.vmem [resolvable:$true] %s685_s3 }
  0x69   : > { %s3431_s13 = smov [#allocation13]   ;;  %s4315_s20 = sld [smem:[#allocation68_spill]] }
  0x6a   : > { %s697_s19 = sshll.u32 %s3431_s13, 4  ;;  %s4316_s11 = sand.u32 1, %s3389_s29   ;;  %s698_s19 = int_to_ptr.vmem [resolvable:$true] %s697_s19 }
  0x6b   : > { %s880_s21 = scalar_lea.vmem [#allocation19], %s4316_s11 }
  0x6c   : > { %s683_s15 = sshll.u32 %s4313_s7, 4  ;;  %s887_s30 = sshll.u32 %s880_s21, 4  ;;  %s684_s15 = int_to_ptr.hbm [resolvable:$true] %s683_s15  ;;  %s888_s30 = int_to_ptr.vmem [resolvable:$true] %s887_s30 }
  0x6d   : > { %2698 = dma.hbm_to_vmem [thread:$0]  (!%p3782_p1), %s684_s15, 16, %s686_s3, [#allocation11]  }
  0x6e   : > { %s695_s12 = sshll.u32 %s4314_s8, 4  ;;  %896 = sbr.rel (%p3771_p12) target bundleno = 4416 (0x1140), region = 104  ;;  %s696_s12 = int_to_ptr.hbm [resolvable:$true] %s695_s12 }
  0x6f   : > { %s883_s2 = scalar_lea.hbm %s4315_s20, %s3413_s5 }
  0x70   : > { %2701 = dma.hbm_to_vmem [thread:$0]  (!%p3782_p1), %s696_s12, 128, %s698_s19, [#allocation14]  }
  0x71   : > { %s885_s28 = sshll.u32 %s883_s2, 4  ;;  %s886_s28 = int_to_ptr.hbm [resolvable:$true] %s885_s28 }
  0x72   : > { %2720 = dma.hbm_to_vmem [thread:$0]  (!%p3734_p2), %s886_s28, 16, %s888_s30, %s3698_s27  }
  0x73   : > { %s898_s0 = sand.u32 1, %s3626_s25   ;;  %s3832_s16 = sand.u32 1, %s3397_s4  }
  0x74   : > { %s4250_s23 = sshll.u32 %s3832_s16, 1  ;;  %s899_s26 = scalar_lea.sflag [#allocation5], %s898_s0 }
  0x75   : > { %s3837_s15 = scalar_lea.vmem [#allocation4], %s4250_s23 }
  0x76   : > { %3352 = dma.done.wait (%p3660_p8), %s899_s26, 32  }
  0x77   : > { %3354 = vsyncadd (%p3660_p8), %s899_s26, 4294967264 }
  0x78   : > { %3356 = dma.done.wait (%p130_p6), [#allocation8], 80  }
  0x79   : > { %3358 = vsyncadd (%p130_p6), [#allocation8], 4294967216 }
  0x7a   : > { %3360 = dma.done.wait (%p130_p6), [#allocation11], 272  }
  0x7b   : > { %3362 = vsyncadd (%p130_p6), [#allocation11], 4294967024 }
  0x7c   : > { %3364 = dma.done.wait (%p130_p6), [#allocation14], 128  }
  0x7d   : > { %3366 = vsyncadd (%p130_p6), [#allocation14], 4294967168  ;;  %s4317_s18 = sld [smem:[#allocation30_spill]] }
  0x83   : > { %s935_s14 = sand.u32 1, %s4317_s18  }
  0x84   : > { %s3856_s24 = sshll.u32 %s935_s14, 4 }
  0x85   : > { %3368 = dma.done.wait (%p3715_p11), %s899_s26, 1040  }
  0x86   : > { %3370 = vsyncadd (%p3715_p11), %s899_s26, 4294966256  ;;  %s4319_s10 = sld [smem:[#allocation36_spill]]  ;;  %s2545_s6 = sshll.u32 %s3832_s16, 4 }
  0x87   : > { %s4320_s12 = sld [smem:[#allocation35_spill]]  ;;  %s947_s1 = scalar_lea.vmem [#allocation16], %s3856_s24 }
  0x88   : > { %s4322_s2 = sld [smem:[#allocation48_spill]]  ;;  %s957_s8 = scalar_lea.vmem [#allocation17], %s3856_s24 }
  0x89   : > { %s4323_s30 = sld [smem:[#allocation49_spill]]  ;;  %s967_s17 = scalar_lea.vmem [#allocation18], %s3856_s24 }
  0x8a   : > { %s4327_s22 = sld [smem:[#allocation62_spill]]  ;;  %s3912_s20 = scalar_lea.vmem [#allocation19], %s935_s14 }
  0x8b   : > { %s4329_s26 = sld [smem:[#allocation66_spill]]  ;;  %s3918_s9 = scalar_lea.vmem [#allocation21], %s2545_s6 }
  0x8c   : > { %s3865_s25 = sshll.u32 %s4319_s10, 1  ;;  %s4330_s23 = sld [smem:[#allocation67_spill]] }
  0x8d   : > { %4321 = sst [smem:[#allocation47_spill]] %s3865_s25  ;;  %p1099_p6 = scmp.lt.s32.totalorder %s3865_s25, 3 }
  0x8e   : > { %p1111_p8 = scmp.lt.s32.totalorder %s4320_s12, 1  ;;  %p2550_p4 = scmp.ne.s32.totalorder %s4320_s12, 0 }
  0x8f   : > { %s1100_s3 = scalar_select %p1099_p6, %s3865_s25, 3 }
  0x90   : > { %s3871_s13 = scalar_select %p1111_p8, %s4320_s12, 1 }
  0x91   : > { %s2547_s19 = sshll.u32 %s1100_s3, 3  ;;  %s4326_s3 = sld [smem:[#allocation61_spill]] }
  0x92   : > { %s1102_s28 = scalar_lea.vmem %s4322_s2, %s2547_s19  ;;  %s3879_s0 = scalar_lea.vmem %s4323_s30, %s2547_s19 }
  0x93   : > { %s1122_s2 = scalar_lea.vmem %s4327_s22, %s3871_s13  ;;  %s4328_s19 = sld [smem:[#allocation64_spill]] }
  0x94   : > { %s1128_s18 = scalar_lea.vmem %s4329_s26, %s3871_s13  ;;  %s1131_s7 = scalar_lea.vmem %s4330_s23, %s3871_s13 }
  0x95   : > { %1138 = sbr.rel (%p2550_p4) target bundleno = 432 (0x1b0), region = 152  ;;  %s4332_s12 = sld [smem:[#allocation53_spill]] (!%p2550_p4) }
  0x97   : > { %s1119_s5 = scalar_lea.vmem %s4326_s3, %s3871_s13  ;;  %s4331_s3 = sshll.u32 %s3832_s16, 1 }
  0x98   : > { %s3916_s4 = scalar_lea.vmem [#allocation20], %s4331_s3 }
  0x99   : > { %s1125_s21 = scalar_lea.vmem %s4328_s19, %s3871_s13 }
  0x9a   : > { %v1139_v0 = vld [vmem:[%s1102_s28] sm:$0xff]  ;;  %v3432_v1 = vmov 1   ;;  %v3433_v2 = vmov 0   ;;  %v3434_v3 = vmov 2   ;;  %v1140_v4 = vld [vmem:[%s1102_s28 + $0x8] sm:$0xff]  ;;  %v2640_v5 = vld [vmem:[#allocation10 + $0x8] sm:$0xff] }
  0x9b   : > { %2861 = vset.pattern.permute.xlu1 %v3432_v1  ;;  %2860 = vset.pattern.permute.xlu0 %v3433_v2  ;;  %v2639_v6 = vld [vmem:[#allocation10] sm:$0xff]  ;;  %v1192_v7 = vld [vmem:[%s3879_s0] sm:$0xff]  ;;  %vm1216_vm0 = vcmask 261120   ;;  %v2866_v17 = vld [vmem:[#allocation9] ss:$0 sm:$0xff] }
  0x9c   : > { %1164 = vperm.xlu1 %2861, %v1139_v0   ;;  %1149 = vperm.xlu0 %2860, %v1139_v0   ;;  %v1193_v8 = vld [vmem:[%s3879_s0 + $0x8] sm:$0xff]  ;;  %v2637_v11 = vld [vmem:[%s4332_s12] sm:$0xff]  ;;  %v2868_v38 = vld [vmem:[#allocation12] ss:$0 sm:$0xff] }
  0x9d   : > { %2862 = vset.pattern.permute.xlu2 %v3434_v3  ;;  %1226 = vmatpush.bf16.msra.mxu0 %v2640_v5  ;;  %v1199_v9 = vpack.c.bf16 %v1193_v8, %v1192_v7  ;;  %v2638_v10 = vld [vmem:[%s4332_s12 + $0x8] sm:$0xff]  ;;  %v2867_v12 = vld [vmem:[#allocation7] ss:$0 sm:$0xff]  ;;  %v2865_v16 = vld [vmem:[#allocation7 + $0x1] ss:$0 sm:$0xff] }
  0x9e   : > { %1178 = vperm.xlu2 %2862, %v1139_v0   ;;  %1255 = vmatpush.bf16.msra.mxu1 %v2638_v10  ;;  %v2864_v19 = vld [vmem:[#allocation7 + $0x2] ss:$0 sm:$0xff]  ;;  %v1269_v41 = vld [vmem:[#allocation13] sm:$0xff] }
  0xa1   : > { %1227 = vmatpush.bf16.msra.mxu0 %v2639_v6 }
  0xa2   : > { %1256 = vmatpush.bf16.msra.mxu1 %v2637_v11 }
  0xa4   : > { %1168 = vperm.xlu1 %2861, %v1140_v4   ;;  %1154 = vperm.xlu0 %2860, %v1140_v4  }
  0xa5   : > { %2559 = vmatmul.msk.bf16.vlgmr.msra.gmra.mxu0 %vm1216_vm0, %v1199_v9 }
  0xa6   : > { %1182 = vperm.xlu2 %2862, %v1140_v4  }
  0xac   : > { %2863 = vset.pattern.permute.xlu0 %v3434_v3 }
  0xf8   : > { %v1179_v13 = vpop.permute.xlu2 %1178 }
  0xf9   : > { %v1186_v24 = vmul.f32 %v2864_v19, %v1179_v13 }
 0x100   : > { %v1183_v27 = vpop.permute.xlu2 %1182 }
 0x101   : > { %v1187_v30 = vmul.f32 %v2864_v19, %v1183_v27 }
 0x10e   : > { %v1165_v14 = vpop.permute.xlu1 %1164  ;;  %v1150_v15 = vpop.permute.xlu0 %1149 }
 0x10f   : > { %v1158_v18 = vmul.f32 %v2867_v12, %v1150_v15  ;;  %v1172_v20 = vmul.f32 %v2865_v16, %v1165_v14 }
 0x111   : > { %v1160_v21 = vadd.f32 %v2866_v17, %v1158_v18 }
 0x113   : > { %v1174_v25 = vadd.f32 %v1172_v20, %v1160_v21 }
 0x115   : > { %v1188_v32 = vadd.f32 %v1186_v24, %v1174_v25 }
 0x116   : > { %v1169_v22 = vpop.permute.xlu1 %1168  ;;  %v1155_v23 = vpop.permute.xlu0 %1154 }
 0x117   : > { %v1159_v26 = vmul.f32 %v2867_v12, %v1155_v23  ;;  %v1173_v28 = vmul.f32 %v2865_v16, %v1169_v22  ;;  %v1190_v34 = vmax.f32 %v1188_v32, 0.0 }
 0x119   : > { %v1161_v29 = vadd.f32 %v2866_v17, %v1159_v26 }
 0x11b   : > { %v1175_v31 = vadd.f32 %v1173_v28, %v1161_v29 }
 0x11d   : > { %v1189_v33 = vadd.f32 %v1187_v30, %v1175_v31 }
 0x11f   : > { %v1191_v35 = vmax.f32 %v1189_v33, 0.0 }
 0x121   : > { %v1194_v36 = vpack.c.bf16 %v1191_v35, %v1190_v34 }
 0x122   : > { %v1229_v37 = vpop.f32.mrf.mxu0 }
 0x123   : > { %2568 = vmatmul.msk.bf16.vlgmr.msra.gmra.mxu1 %vm1216_vm0, %v1194_v36 }
 0x12a   : > { %v1231_v44 = vpop.f32.mrf.mxu0 }
 0x1a0   : > { %v1258_v39 = vpop.f32.mrf.mxu1 }
 0x1a1   : > { %v1259_v40 = vadd.f32 %v1258_v39, %v1229_v37 }
 0x1a3   : > { %v1267_v42 = vadd.f32 %v2868_v38, %v1259_v40 }
 0x1a5   : > { %v1270_v43 = vadd.f32 %v1269_v41, %v1267_v42 }
 0x1a7   : > { %1272 = vst.msk [vmem:[#allocation2] sm:$0xff] %vm1216_vm0, %v1270_v43 }
 0x1a8   : > { %v1260_v45 = vpop.f32.mrf.mxu1 }
 0x1a9   : > { %v1261_v46 = vadd.f32 %v1260_v45, %v1231_v44 }
 0x1ab   : > { %v1268_v47 = vadd.f32 %v2868_v38, %v1261_v46 }
 0x1ad   : > { %v1271_v48 = vadd.f32 %v1269_v41, %v1268_v47 }
 0x1af   : > { %1273 = vst.msk [vmem:[#allocation2 + $0x8] sm:$0xff] %vm1216_vm0, %v1271_v48 }
 0x1b0 PF: > { %s4333_s28 = scalar_lea.vmem [#allocation15], %s3856_s24  ;;  %v3937_v51 = vld [vmem:[#allocation2] sm:$0xff]  ;;  %vm1299_vm1 = vcmask 261120   ;;  %s4335_s11 = sld [smem:[#allocation58_spill]]  ;;  %vm1324_vm2 = vcmask 64512  }
 0x1b1   : > { %v2642_v49 = vld [vmem:[%s4333_s28 + $0x8] sm:$0xff]  ;;  %s4334_s0 = smov %s4333_s28  ;;  %s3435_s30 = smov 96  }
 0x1b2   : > { %v2641_v50 = vld [vmem:[%s4334_s0] sm:$0xff]  ;;  %1309 = vmatpush.bf16.msra.mxu0 %v2642_v49 }
 0x1b3   : > { %v3960_v6 = vld [vmem:[%s3837_s15] ss:$0 sm:$0xff]  ;;  %v3965_v12 = vld [vmem:[%s3837_s15 + $0x1] ss:$0 sm:$0xff]  ;;  %s4337_s15 = sld [smem:[#allocation35_spill]] }
 0x1b6   : > { %v3939_v52 = vld [vmem:[#allocation2 + $0x8] sm:$0xff]  ;;  %1310 = vmatpush.bf16.msra.mxu0 %v2641_v50  ;;  %s4336_s19 = scalar_lea.vmem %s4335_s11, %s3871_s13 }
 0x1b7   : > { %v1276_v53 = vpack.c.bf16 %v3939_v52, %v3937_v51  ;;  %v2869_v55 = vld [vmem:[%s4336_s19] ss:$0 sm:$0xff] }
 0x1b9   : > { %2577 = vmatmul.msk.bf16.vlgmr.msra.gmra.mxu0 %vm1299_vm1, %v1276_v53  ;;  %p2580_p5 = scmp.ne.s32.totalorder %s4337_s15, 1 }
 0x236   : > { %v1312_v54 = vpop.f32.mrf.mxu0 }
 0x237   : > { %v1313_v58 = vadd.f32 %v2869_v55, %v1312_v54 }
 0x239   : > { %v1317_v61 = vpack.c.bf16 %v1313_v58, %v1313_v58 }
 0x23b   : > { %v1320_v63 = vunpack.c.l.b16 %v1317_v61 }
 0x23d   : > { %v3952_v0 = vpack.c.b16 %v1320_v63, %v1320_v63 }
 0x23e   : > { %v1314_v56 = vpop.f32.mrf.mxu0 }
 0x23f   : > { %v1315_v57 = vadd.f32 %v2869_v55, %v1314_v56 }
 0x241   : > { %v1318_v59 = vpack.c.bf16 %v1315_v57, %v1315_v57 }
 0x243   : > { %v1345_v60 = vunpack.c.l.b16 %v1318_v59 }
 0x245   : > { %v3949_v62 = vpack.c.b16 %v1345_v60, %v1345_v60 }
 0x247   : > { %1347 = vrot.lane.b32.xlu0 %v3949_v62, %s3435_s30 }
 0x24f   : > { %1322 = vrot.lane.b32.xlu0 %v3952_v0, %s3435_s30 }
 0x2b9   : > { %v1348_v1 = vpop.permute.xlu0 %1347 }
 0x2ba   : > { %v1353_v2 = vsel %vm1324_vm2, %v1348_v1, 0 }
 0x2bb   : > { %1362 = vmatpush.bf16.xpose.msra.mxu2 %v1353_v2 }
 0x2c1   : > { %v1323_v3 = vpop.permute.xlu0 %1322 }
 0x2c2   : > { %2579 = vmatmul.msk.bf16.vlgmr.msra.gmra.mxu2 %vm1324_vm2, %v1318_v59  ;;  %v1329_v4 = vsel %vm1324_vm2, %v1323_v3, 0 }
 0x2c3   : > { %1338 = vmatpush.bf16.xpose.msra.mxu1 %v1329_v4 }
 0x2ca   : > { %2578 = vmatmul.msk.bf16.vlgmr.msra.gmra.mxu1 %vm1324_vm2, %v1317_v61 }
 0x345   : > { %v1364_v5 = vpop.f32.mrf.mxu2 }
 0x346   : > { %v1369_v10 = vmul.f32 0.35355338, %v1364_v5 }
 0x347   : > { %v1340_v7 = vpop.f32.mrf.mxu1 }
 0x348   : > { %v1368_v8 = vmul.f32 0.35355338, %v1340_v7  ;;  %v1377_v15 = vadd.f32 %v3965_v12, %v1369_v10 }
 0x34a   : > { %v1376_v9 = vadd.f32 %v3960_v6, %v1368_v8  ;;  %v1381_v16 = vsel %vm1324_vm2, %v1377_v15, -inf }
 0x34c   : > { %v1378_v11 = vsel %vm1324_vm2, %v1376_v9, -inf }
 0x34d   : > { %v1366_v13 = vpop.f32.mrf.mxu2  ;;  %1379 = vmax.xlane.f32.xlu1 %v1378_v11 }
 0x34f   : > { %v1342_v14 = vpop.f32.mrf.mxu1 }
 0x355   : > { %1382 = vmax.xlane.f32.xlu1 %v1381_v16 }
 0x3c0   : > { %v1380_v17 = vpop.xlane.xlu1 %1379 }
 0x3c1   : > { %v1384_v18 = vsub.f32 %v1376_v9, %v1380_v17 }
 0x3c3   : > { %v1386_v19 = vmul.f32 1.442695, %v1384_v18 }
 0x3c5   : > { %2872 = vpow2.f32 %v1386_v19 }
 0x3c8   : > { %v1383_v20 = vpop.xlane.xlu1 %1382 }
 0x3c9   : > { %v1385_v21 = vsub.f32 %v1377_v15, %v1383_v20 }
 0x3cb   : > { %v2873_v22 = vpop.eup %2872  ;;  %v1388_v23 = vmul.f32 1.442695, %v1385_v21 }
 0x3cc   : > { %v1390_v24 = vsel %vm1324_vm2, %v2873_v22, 0.0 }
 0x3cd   : > { %2874 = vpow2.f32 %v1388_v23  ;;  %1391 = vadd.xlane.f32.xlu2 %v1390_v24 }
 0x3d3   : > { %v2875_v25 = vpop.eup %2874 }
 0x3d4   : > { %v1393_v26 = vsel %vm1324_vm2, %v2875_v25, 0.0 }
 0x3d5   : > { %1394 = vadd.xlane.f32.xlu2 %v1393_v26 }
 0x440   : > { %v1392_v27 = vpop.xlane.xlu2 %1391 }
 0x441   : > { %2876 = vrcp.f32 %v1392_v27 }
 0x447   : > { %v2877_v28 = vpop.eup %2876 }
 0x448   : > { %v1398_v29 = vmul.f32 %v2877_v28, %v2873_v22  ;;  %v1395_v30 = vpop.xlane.xlu2 %1394 }
 0x449   : > { %2878 = vrcp.f32 %v1395_v30 }
 0x44c   : > { %1403 = sbr.rel (%p2580_p5) target bundleno = 1107 (0x453), region = 156 }
 0x44f   : > { %v2879_v31 = vpop.eup %2878 }
 0x450   : > { %v1399_v32 = vmul.f32 %v2879_v31, %v2875_v25 }
 0x451   : > { %1404 = vst.msk [vmem:[%s3918_s9] sm:$0xff] %vm1324_vm2, %v1398_v29 }
 0x452   : > { %1405 = vst.msk [vmem:[%s3918_s9 + $0x8] sm:$0xff] %vm1324_vm2, %v1399_v32 }
 0x453 PF: > { %s3436_s26 = smov 88   ;;  %s3437_s27 = smov 120   ;;  %vm1413_vm3 = vcmask 1043456   ;;  %v1406_v41 = vpack.c.bf16 %v1398_v29, %v1398_v29  ;;  %v1407_v46 = vpack.c.bf16 %v1399_v32, %v1399_v32 }
 0x454   : > { %1455 = vrot.lane.b32.xlu0 %v3952_v0, %s3436_s26  ;;  %1453 = vrot.lane.b32.xlu1 %v3952_v0, %s3437_s27  ;;  %s3438_s23 = smov 64   ;;  %s3439_s29 = smov (!%p2580_p5), 8  }
 0x455   : > { %1408 = vrot.lane.b32.xlu2 %v3952_v0, %s3438_s23 }
 0x45c   : > { %1478 = vrot.lane.b32.xlu0 %v3949_v62, %s3436_s26  ;;  %1476 = vrot.lane.b32.xlu1 %v3949_v62, %s3437_s27 }
 0x45d   : > { %1430 = vrot.lane.b32.xlu2 %v3949_v62, %s3438_s23 }
 0x4af   : > { %v1409_v39 = vpop.permute.xlu2 %1408 }
 0x4b0   : > { %v1415_v40 = vsel %vm1413_vm3, %v1409_v39, 0 }
 0x4b1   : > { %1424 = vmatpush.bf16.msra.mxu3 %v1415_v40 }
 0x4b4   : > { %2581 = vmatmul.msk.bf16.vlgmr.msra.gmra.mxu3 %vm1324_vm2, %v1406_v41 }
 0x4b7   : > { %v1431_v42 = vpop.permute.xlu2 %1430 }
 0x4b8   : > { %v1436_v43 = vsel %vm1413_vm3, %v1431_v42, 0 }
 0x4b9   : > { %1445 = vmatpush.bf16.msrb.mxu3 %v1436_v43 }
 0x4c4   : > { %2582 = vmatmul.msk.bf16.vlgmr.msrb.gmra.mxu3 %vm1324_vm2, %v1407_v46 }
 0x4c6   : > { %v1456_v33 = vpop.permute.xlu0 %1455  ;;  %v1454_v35 = vpop.permute.xlu1 %1453 }
 0x4c7   : > { %v1461_v34 = vsel %vm1324_vm2, %v1456_v33, 0 }
 0x4c8   : > { %1470 = vmatpush.bf16.xpose.msrb.mxu0 %v1461_v34 }
 0x4ce   : > { %v1479_v36 = vpop.permute.xlu0 %1478  ;;  %v1477_v38 = vpop.permute.xlu1 %1476 }
 0x4cf   : > { %2583 = vmatmul.msk.bf16.vlgmr.msrb.gmra.mxu0 %vm1324_vm2, %v1454_v35  ;;  %v1484_v37 = vsel %vm1324_vm2, %v1479_v36, 0 }
 0x4d0   : > { %1493 = vmatpush.bf16.xpose.msrb.mxu1 %v1484_v37 }
 0x4d7   : > { %2584 = vmatmul.msk.bf16.vlgmr.msrb.gmra.mxu1 %vm1324_vm2, %v1477_v38 }
 0x537   : > { %v1426_v57 = vpop.f32.mrf.mxu3 }
 0x538   : > { %1451 = vst.msk [vmem:[#allocation3] sm:$0xff] %vm1324_vm2, %v1426_v57 }
 0x53f   : > { %v1428_v61 = vpop.f32.mrf.mxu3 }
 0x547   : > { %v1447_v8 = vpop.f32.mrf.mxu3 }
 0x548   : > { %1452 = vst.msk [vmem:[#allocation3 + $0x8] sm:$0xff] %vm1324_vm2, %v1447_v8 }
 0x54c   : > { %v1472_v44 = vpop.f32.mrf.mxu0 }
 0x54d   : > { %v1499_v45 = vmul.f32 0.35355338, %v1472_v44 }
 0x54f   : > { %v1501_v47 = vadd.f32 %v3960_v6, %v1499_v45  ;;  %v1449_v9 = vpop.f32.mrf.mxu3 }
 0x551   : > { %v1503_v48 = vsel %vm1324_vm2, %v1501_v47, -inf }
 0x552   : > { %1504 = vmax.xlane.f32.xlu0 %v1503_v48 }
 0x554   : > { %v1474_v49 = vpop.f32.mrf.mxu0  ;;  %v1495_v50 = vpop.f32.mrf.mxu1 }
 0x555   : > { %v1500_v53 = vmul.f32 0.35355338, %v1495_v50 }
 0x557   : > { %v1502_v54 = vadd.f32 %v3965_v12, %v1500_v53 }
 0x559   : > { %v1506_v55 = vsel %vm1324_vm2, %v1502_v54, -inf }
 0x55a   : > { %1507 = vmax.xlane.f32.xlu1 %v1506_v55 }
 0x55c   : > { %v1497_v56 = vpop.f32.mrf.mxu1 }
 0x5c5   : > { %v1505_v58 = vpop.xlane.xlu0 %1504 }
 0x5c6   : > { %v1509_v59 = vsub.f32 %v1501_v47, %v1505_v58 }
 0x5c8   : > { %v1511_v60 = vmul.f32 1.442695, %v1509_v59 }
 0x5ca   : > { %2880 = vpow2.f32 %v1511_v60 }
 0x5cd   : > { %v1508_v63 = vpop.xlane.xlu1 %1507 }
 0x5ce   : > { %v1510_v1 = vsub.f32 %v1502_v54, %v1508_v63 }
 0x5d0   : > { %v2881_v2 = vpop.eup %2880  ;;  %v1513_v3 = vmul.f32 1.442695, %v1510_v1 }
 0x5d1   : > { %v1515_v4 = vsel %vm1324_vm2, %v2881_v2, 0.0 }
 0x5d2   : > { %2882 = vpow2.f32 %v1513_v3  ;;  %1516 = vadd.xlane.f32.xlu2 %v1515_v4 }
 0x5d8   : > { %v2883_v5 = vpop.eup %2882 }
 0x5d9   : > { %v1518_v7 = vsel %vm1324_vm2, %v2883_v5, 0.0 }
 0x5da   : > { %1519 = vadd.xlane.f32.xlu2 %v1518_v7 }
 0x645   : > { %v1517_v10 = vpop.xlane.xlu2 %1516 }
 0x646   : > { %2884 = vrcp.f32 %v1517_v10 }
 0x64c   : > { %v2885_v11 = vpop.eup %2884 }
 0x64d   : > { %v1523_v13 = vmul.f32 %v2885_v11, %v2881_v2  ;;  %v1520_v14 = vpop.xlane.xlu2 %1519 }
 0x64e   : > { %2886 = vrcp.f32 %v1520_v14 }
 0x651   : > { %1527 = sbr.rel (%p2580_p5) target bundleno = 1746 (0x6d2), region = 160 }
 0x654   : > { %v2887_v15 = vpop.eup %2886 }
 0x655   : > { %v1524_v16 = vmul.f32 %v2887_v15, %v2883_v5 }
 0x656   : > { %1530 = vrot.lane.b32.xlu0 %v1523_v13, %s3439_s29  ;;  %vm1536_vm4 = vcmask 130112  }
 0x65e   : > { %1532 = vrot.lane.b32.xlu0 %v1524_v16, %s3439_s29 }
 0x6c8   : > { %v1531_v17 = vpop.permute.xlu0 %1530 }
 0x6c9   : > { %1537 = vst.msk [vmem:[%s3918_s9] sm:$0xff] %vm1536_vm4, %v1531_v17 }
 0x6d0   : > { %v1533_v18 = vpop.permute.xlu0 %1532 }
 0x6d1   : > { %1538 = vst.msk [vmem:[%s3918_s9 + $0x8] sm:$0xff] %vm1536_vm4, %v1533_v18 }
 0x6d2 PF: > { %s3440_s14 = smov 80   ;;  %s3441_s6 = smov 112   ;;  %v1539_v29 = vpack.c.bf16 %v1523_v13, %v1523_v13  ;;  %v1540_v30 = vpack.c.bf16 %v1524_v16, %v1524_v16  ;;  %vm1591_vm5 = vcmask 130112  }
 0x6d3   : > { %1596 = vrot.lane.b32.xlu0 %v3952_v0, %s3440_s14  ;;  %1594 = vrot.lane.b32.xlu1 %v3952_v0, %s3441_s6  ;;  %s3442_s25 = smov 56   ;;  %s3443_s28 = smov 8  }
 0x6d4   : > { %1541 = vrot.lane.b32.xlu2 %v3952_v0, %s3442_s25  ;;  %s3444_s10 = smov (!%p2580_p5), 16  }
 0x6db   : > { %1619 = vrot.lane.b32.xlu0 %v3949_v62, %s3440_s14  ;;  %1617 = vrot.lane.b32.xlu1 %v3949_v62, %s3441_s6 }
 0x6dc   : > { %1562 = vrot.lane.b32.xlu2 %v3949_v62, %s3442_s25 }
 0x72e   : > { %v1542_v25 = vpop.permute.xlu2 %1541 }
 0x72f   : > { %v1547_v27 = vsel %vm1413_vm3, %v1542_v25, 0 }
 0x730   : > { %1556 = vmatpush.bf16.msrb.mxu2 %v1547_v27 }
 0x733   : > { %2586 = vmatmul.msk.bf16.vlgmr.msrb.gmra.mxu2 %vm1324_vm2, %v1539_v29 }
 0x736   : > { %v1563_v26 = vpop.permute.xlu2 %1562 }
 0x737   : > { %v1568_v28 = vsel %vm1413_vm3, %v1563_v26, 0 }
 0x738   : > { %1577 = vmatpush.bf16.msra.mxu3 %v1568_v28 }
 0x73b   : > { %2587 = vmatmul.msk.bf16.vlgmr.msra.gmra.mxu3 %vm1324_vm2, %v1540_v30 }
 0x745   : > { %v1597_v19 = vpop.permute.xlu0 %1596  ;;  %v1595_v21 = vpop.permute.xlu1 %1594 }
 0x746   : > { %v1602_v20 = vsel %vm1324_vm2, %v1597_v19, 0 }
 0x747   : > { %1611 = vmatpush.bf16.xpose.msra.mxu0 %v1602_v20 }
 0x74d   : > { %v1620_v22 = vpop.permute.xlu0 %1619  ;;  %v1618_v24 = vpop.permute.xlu1 %1617 }
 0x74e   : > { %2588 = vmatmul.msk.bf16.vlgmr.msra.gmra.mxu0 %vm1324_vm2, %v1595_v21  ;;  %v1625_v23 = vsel %vm1324_vm2, %v1620_v22, 0 }
 0x74f   : > { %1634 = vmatpush.bf16.xpose.msra.mxu1 %v1625_v23 }
 0x756   : > { %2589 = vmatmul.msk.bf16.vlgmr.msra.gmra.mxu1 %vm1324_vm2, %v1618_v24 }
 0x7b6   : > { %v1558_v41 = vpop.f32.mrf.mxu2 }
 0x7be   : > { %v1579_v42 = vpop.f32.mrf.mxu3  ;;  %v1560_v43 = vpop.f32.mrf.mxu2 }
 0x7c6   : > { %v1581_v44 = vpop.f32.mrf.mxu3 }
 0x7cb   : > { %v1613_v31 = vpop.f32.mrf.mxu0 }
 0x7cc   : > { %v1640_v32 = vmul.f32 0.35355338, %v1613_v31 }
 0x7ce   : > { %v1642_v33 = vadd.f32 %v3960_v6, %v1640_v32 }
 0x7d0   : > { %v1644_v34 = vsel %vm1324_vm2, %v1642_v33, -inf }
 0x7d1   : > { %1645 = vmax.xlane.f32.xlu0 %v1644_v34 }
 0x7d3   : > { %v1615_v35 = vpop.f32.mrf.mxu0  ;;  %v1636_v36 = vpop.f32.mrf.mxu1 }
 0x7d4   : > { %v1641_v37 = vmul.f32 0.35355338, %v1636_v36 }
 0x7d6   : > { %v1643_v38 = vadd.f32 %v3965_v12, %v1641_v37 }
 0x7d8   : > { %v1647_v39 = vsel %vm1324_vm2, %v1643_v38, -inf }
 0x7d9   : > { %1648 = vmax.xlane.f32.xlu1 %v1647_v39 }
 0x7db   : > { %v1638_v40 = vpop.f32.mrf.mxu1 }
 0x7e5   : > { %1585 = vrot.lane.b32.xlu0 %v1558_v41, %s3443_s28 }
 0x7f2   : > { %1587 = vrot.lane.b32.xlu1 %v1579_v42, %s3443_s28 }
 0x844   : > { %v1646_v45 = vpop.xlane.xlu0 %1645 }
 0x845   : > { %v1650_v46 = vsub.f32 %v1642_v33, %v1646_v45 }
 0x847   : > { %v1652_v47 = vmul.f32 1.442695, %v1650_v46 }
 0x849   : > { %2888 = vpow2.f32 %v1652_v47 }
 0x84c   : > { %v1649_v48 = vpop.xlane.xlu1 %1648 }
 0x84d   : > { %v1651_v49 = vsub.f32 %v1643_v38, %v1649_v48 }
 0x84f   : > { %v2889_v50 = vpop.eup %2888  ;;  %v1654_v53 = vmul.f32 1.442695, %v1651_v49 }
 0x850   : > { %v1656_v54 = vsel %vm1324_vm2, %v2889_v50, 0.0 }
 0x851   : > { %2890 = vpow2.f32 %v1654_v53  ;;  %1657 = vadd.xlane.f32.xlu2 %v1656_v54 }
 0x857   : > { %v2891_v55 = vpop.eup %2890  ;;  %v1586_v58 = vpop.permute.xlu0 %1585 }
 0x858   : > { %v1659_v56 = vsel %vm1324_vm2, %v2891_v55, 0.0  ;;  %1592 = vst.msk [vmem:[#allocation3] sm:$0xff] %vm1591_vm5, %v1586_v58 }
 0x859   : > { %1660 = vadd.xlane.f32.xlu2 %v1659_v56 }
 0x864   : > { %v1588_v57 = vpop.permute.xlu1 %1587 }
 0x865   : > { %1593 = vst.msk [vmem:[#allocation3 + $0x8] sm:$0xff] %vm1591_vm5, %v1588_v57 }
 0x8c4   : > { %v1658_v59 = vpop.xlane.xlu2 %1657 }
 0x8c5   : > { %2892 = vrcp.f32 %v1658_v59 }
 0x8cb   : > { %v2893_v60 = vpop.eup %2892 }
 0x8cc   : > { %v1664_v61 = vmul.f32 %v2893_v60, %v2889_v50  ;;  %v1661_v63 = vpop.xlane.xlu2 %1660 }
 0x8cd   : > { %2894 = vrcp.f32 %v1661_v63 }
 0x8d0   : > { %1668 = sbr.rel (%p2580_p5) target bundleno = 2385 (0x951), region = 164 }
 0x8d3   : > { %v2895_v1 = vpop.eup %2894 }
 0x8d4   : > { %v1665_v2 = vmul.f32 %v2895_v1, %v2891_v55 }
 0x8d5   : > { %1671 = vrot.lane.b32.xlu0 %v1664_v61, %s3444_s10  ;;  %vm1677_vm6 = vcmask 195712  }
 0x8dd   : > { %1673 = vrot.lane.b32.xlu0 %v1665_v2, %s3444_s10 }
 0x947   : > { %v1672_v3 = vpop.permute.xlu0 %1671 }
 0x948   : > { %1678 = vst.msk [vmem:[%s3918_s9] sm:$0xff] %vm1677_vm6, %v1672_v3 }
 0x94f   : > { %v1674_v4 = vpop.permute.xlu0 %1673 }
 0x950   : > { %1679 = vst.msk [vmem:[%s3918_s9 + $0x8] sm:$0xff] %vm1677_vm6, %v1674_v4 }
 0x951 PF: > { %s3445_s22 = smov 72   ;;  %s3446_s11 = smov 104   ;;  %v1680_v17 = vpack.c.bf16 %v1664_v61, %v1664_v61  ;;  %v1681_v18 = vpack.c.bf16 %v1665_v2, %v1665_v2  ;;  %vm1732_vm7 = vcmask 195712  }
 0x952   : > { %1737 = vrot.lane.b32.xlu0 %v3952_v0, %s3445_s22  ;;  %1735 = vrot.lane.b32.xlu1 %v3952_v0, %s3446_s11  ;;  %s3447_s19 = smov 48   ;;  %s3448_s30 = smov 16  }
 0x953   : > { %1682 = vrot.lane.b32.xlu2 %v3952_v0, %s3447_s19  ;;  %s3449_s26 = smov (!%p2580_p5), 24  }
 0x95a   : > { %1760 = vrot.lane.b32.xlu0 %v3949_v62, %s3445_s22  ;;  %1758 = vrot.lane.b32.xlu1 %v3949_v62, %s3446_s11 }
 0x95b   : > { %1703 = vrot.lane.b32.xlu2 %v3949_v62, %s3447_s19 }
 0x9ad   : > { %v1683_v13 = vpop.permute.xlu2 %1682 }
 0x9ae   : > { %v1688_v15 = vsel %vm1413_vm3, %v1683_v13, 0 }
 0x9af   : > { %1697 = vmatpush.bf16.msra.mxu2 %v1688_v15 }
 0x9b2   : > { %2591 = vmatmul.msk.bf16.vlgmr.msra.gmra.mxu2 %vm1324_vm2, %v1680_v17 }
 0x9b5   : > { %v1704_v14 = vpop.permute.xlu2 %1703 }
 0x9b6   : > { %v1709_v16 = vsel %vm1413_vm3, %v1704_v14, 0 }
 0x9b7   : > { %1718 = vmatpush.bf16.msrb.mxu3 %v1709_v16 }
 0x9ba   : > { %2592 = vmatmul.msk.bf16.vlgmr.msrb.gmra.mxu3 %vm1324_vm2, %v1681_v18 }
 0x9c4   : > { %v1738_v5 = vpop.permute.xlu0 %1737  ;;  %v1736_v8 = vpop.permute.xlu1 %1735 }
 0x9c5   : > { %v1743_v7 = vsel %vm1324_vm2, %v1738_v5, 0 }
 0x9c6   : > { %1752 = vmatpush.bf16.xpose.msrb.mxu0 %v1743_v7 }
 0x9cc   : > { %v1761_v9 = vpop.permute.xlu0 %1760  ;;  %v1759_v11 = vpop.permute.xlu1 %1758 }
 0x9cd   : > { %2593 = vmatmul.msk.bf16.vlgmr.msrb.gmra.mxu0 %vm1324_vm2, %v1736_v8  ;;  %v1766_v10 = vsel %vm1324_vm2, %v1761_v9, 0 }
 0x9ce   : > { %1775 = vmatpush.bf16.xpose.msrb.mxu1 %v1766_v10 }
 0x9d5   : > { %2594 = vmatmul.msk.bf16.vlgmr.msrb.gmra.mxu1 %vm1324_vm2, %v1759_v11 }
 0xa35   : > { %v1699_v29 = vpop.f32.mrf.mxu2 }
 0xa3d   : > { %v1720_v30 = vpop.f32.mrf.mxu3 }
 0xa45   : > { %v1722_v31 = vpop.f32.mrf.mxu3 }
 0xa4a   : > { %v1754_v19 = vpop.f32.mrf.mxu0 }
 0xa4b   : > { %v1781_v20 = vmul.f32 0.35355338, %v1754_v19 }
 0xa4d   : > { %v1783_v21 = vadd.f32 %v3960_v6, %v1781_v20  ;;  %v1701_v6 = vpop.f32.mrf.mxu2 }
 0xa4f   : > { %v1785_v22 = vsel %vm1324_vm2, %v1783_v21, -inf }
 0xa50   : > { %1786 = vmax.xlane.f32.xlu0 %v1785_v22 }
 0xa52   : > { %v1756_v23 = vpop.f32.mrf.mxu0  ;;  %v1777_v24 = vpop.f32.mrf.mxu1 }
 0xa53   : > { %v1782_v25 = vmul.f32 0.35355338, %v1777_v24 }
 0xa55   : > { %v1784_v26 = vadd.f32 %v3965_v12, %v1782_v25 }
 0xa57   : > { %v1788_v27 = vsel %vm1324_vm2, %v1784_v26, -inf }
 0xa58   : > { %1789 = vmax.xlane.f32.xlu1 %v1788_v27 }
 0xa5a   : > { %v1779_v28 = vpop.f32.mrf.mxu1 }
 0xa64   : > { %1726 = vrot.lane.b32.xlu0 %v1699_v29, %s3448_s30 }
 0xa71   : > { %1728 = vrot.lane.b32.xlu1 %v1720_v30, %s3448_s30 }
 0xac3   : > { %v1787_v32 = vpop.xlane.xlu0 %1786 }
 0xac4   : > { %v1791_v33 = vsub.f32 %v1783_v21, %v1787_v32 }
 0xac6   : > { %v1793_v34 = vmul.f32 1.442695, %v1791_v33 }
 0xac8   : > { %2896 = vpow2.f32 %v1793_v34 }
 0xacb   : > { %v1790_v35 = vpop.xlane.xlu1 %1789 }
 0xacc   : > { %v1792_v36 = vsub.f32 %v1784_v26, %v1790_v35 }
 0xace   : > { %v2897_v12 = vpop.eup %2896  ;;  %v1795_v37 = vmul.f32 1.442695, %v1792_v36 }
 0xacf   : > { %v1797_v38 = vsel %vm1324_vm2, %v2897_v12, 0.0 }
 0xad0   : > { %2898 = vpow2.f32 %v1795_v37  ;;  %1798 = vadd.xlane.f32.xlu2 %v1797_v38 }
 0xad6   : > { %v2899_v39 = vpop.eup %2898  ;;  %v1727_v42 = vpop.permute.xlu0 %1726 }
 0xad7   : > { %v1800_v40 = vsel %vm1324_vm2, %v2899_v39, 0.0  ;;  %1733 = vst.msk [vmem:[#allocation3] sm:$0xff] %vm1732_vm7, %v1727_v42 }
 0xad8   : > { %1801 = vadd.xlane.f32.xlu2 %v1800_v40 }
 0xae3   : > { %v1729_v41 = vpop.permute.xlu1 %1728 }
 0xae4   : > { %1734 = vst.msk [vmem:[#allocation3 + $0x8] sm:$0xff] %vm1732_vm7, %v1729_v41 }
 0xb43   : > { %v1799_v43 = vpop.xlane.xlu2 %1798 }
 0xb44   : > { %2900 = vrcp.f32 %v1799_v43 }
 0xb4a   : > { %v2901_v44 = vpop.eup %2900 }
 0xb4b   : > { %v1805_v45 = vmul.f32 %v2901_v44, %v2897_v12  ;;  %v1802_v46 = vpop.xlane.xlu2 %1801 }
 0xb4c   : > { %2902 = vrcp.f32 %v1802_v46 }
 0xb4f   : > { %1809 = sbr.rel (%p2580_p5) target bundleno = 3024 (0xbd0), region = 168 }
 0xb52   : > { %v2903_v47 = vpop.eup %2902 }
 0xb53   : > { %v1806_v48 = vmul.f32 %v2903_v47, %v2899_v39 }
 0xb54   : > { %1812 = vrot.lane.b32.xlu0 %v1805_v45, %s3449_s26  ;;  %vm1818_vm8 = vcmask 261312  }
 0xb5c   : > { %1814 = vrot.lane.b32.xlu0 %v1806_v48, %s3449_s26 }
 0xbc6   : > { %v1813_v49 = vpop.permute.xlu0 %1812 }
 0xbc7   : > { %1819 = vst.msk [vmem:[%s3918_s9] sm:$0xff] %vm1818_vm8, %v1813_v49 }
 0xbce   : > { %v1815_v50 = vpop.permute.xlu0 %1814 }
 0xbcf   : > { %1820 = vst.msk [vmem:[%s3918_s9 + $0x8] sm:$0xff] %vm1818_vm8, %v1815_v50 }
 0xbd0 PF: > { %s3450_s27 = smov 40   ;;  %v1821_v55 = vpack.c.bf16 %v1805_v45, %v1805_v45  ;;  %v1822_v58 = vpack.c.bf16 %v1806_v48, %v1806_v48  ;;  %s3451_s23 = smov 24   ;;  %v2644_v61 = vld [vmem:[%s947_s1 + $0x8] sm:$0xff]  ;;  %v2643_v63 = vld [vmem:[%s947_s1] sm:$0xff]  ;;  %vm1873_vm9 = vcmask 261312   ;;  %v3452_v17 = vmov 32.0  }
 0xbd1   : > { %1823 = vrot.lane.b32.xlu0 %v3952_v0, %s3450_s27  ;;  %1908 = vmatpush.bf16.msra.mxu0 %v2644_v61  ;;  %s4341_s14 = sld [smem:[#allocation60_spill]]  ;;  %2911 = vrcp.f32 %v3452_v17  ;;  %v2646_v31 = vld [vmem:[%s957_s8 + $0x8] sm:$0xff]  ;;  %v2645_v32 = vld [vmem:[%s957_s8] sm:$0xff] }
 0xbd2   : > { %2011 = vmatpush.bf16.msra.mxu1 %v2646_v31  ;;  %v2648_v36 = vld [vmem:[%s967_s17 + $0x8] sm:$0xff] }
 0xbd5   : > { %1909 = vmatpush.bf16.msra.mxu0 %v2643_v63  ;;  %v2647_v63 = vld [vmem:[%s967_s17] sm:$0xff] }
 0xbd6   : > { %2012 = vmatpush.bf16.msra.mxu1 %v2645_v32 }
 0xbd7   : > { %s4342_s6 = scalar_lea.vmem %s4341_s14, %s3871_s13  ;;  %v2912_v18 = vpop.eup %2911 }
 0xbd8   : > { %v2904_v7 = vld [vmem:[%s4342_s6] ss:$0 sm:$0xff]  ;;  %v1925_v19 = vmul.f32 32.0, %v2912_v18  ;;  %vm1929_vm10 = vweird.f32 %v2912_v18 }
 0xbd9   : > { %1844 = vrot.lane.b32.xlu0 %v3949_v62, %s3450_s27 }
 0xbda   : > { %v1926_v20 = vsub.f32 1.0, %v1925_v19 }
 0xbdc   : > { %v1927_v21 = vmul.f32 %v2912_v18, %v1926_v20 }
 0xbde   : > { %v1928_v22 = vadd.f32 %v2912_v18, %v1927_v21 }
 0xc43   : > { %v1824_v53 = vpop.permute.xlu0 %1823 }
 0xc44   : > { %v1829_v54 = vsel %vm1413_vm3, %v1824_v53, 0 }
 0xc45   : > { %1838 = vmatpush.bf16.msrb.mxu2 %v1829_v54  ;;  %v2905_v54 = vld [vmem:[%s1119_s5] ss:$0 sm:$0xff] }
 0xc48   : > { %2596 = vmatmul.msk.bf16.vlgmr.msrb.gmra.mxu2 %vm1324_vm2, %v1821_v55 }
 0xc49   : > { %2051 = vmatpush.bf16.msra.mxu2 %v2648_v36 }
 0xc4b   : > { %v1845_v56 = vpop.permute.xlu0 %1844 }
 0xc4c   : > { %v1850_v57 = vsel %vm1413_vm3, %v1845_v56, 0 }
 0xc4d   : > { %1859 = vmatpush.bf16.msra.mxu3 %v1850_v57  ;;  %2052 = vmatpush.bf16.msra.mxu2 %v2647_v63 }
 0xc50   : > { %2597 = vmatmul.msk.bf16.vlgmr.msra.gmra.mxu3 %vm1324_vm2, %v1822_v58 }
 0xccb   : > { %v1840_v59 = vpop.f32.mrf.mxu2 }
 0xccc   : > { %1867 = vrot.lane.b32.xlu1 %v1840_v59, %s3451_s23  ;;  %v2906_v59 = vld [vmem:[%s1122_s2] ss:$0 sm:$0xff] }
 0xcd3   : > { %v1842_v62 = vpop.f32.mrf.mxu2  ;;  %v1861_v0 = vpop.f32.mrf.mxu3 }
 0xcd4   : > { %1869 = vrot.lane.b32.xlu1 %v1861_v0, %s3451_s23 }
 0xcdb   : > { %v1863_v60 = vpop.f32.mrf.mxu3 }
 0xd3e   : > { %v1868_v1 = vpop.permute.xlu1 %1867 }
 0xd3f   : > { %1874 = vst.msk [vmem:[#allocation3] sm:$0xff] %vm1873_vm9, %v1868_v1 }
 0xd46   : > { %v1870_v2 = vpop.permute.xlu1 %1869  ;;  %v1876_v3 = vld [vmem:[#allocation3] sm:$0xff] }
 0xd47   : > { %1875 = vst.msk [vmem:[#allocation3 + $0x8] sm:$0xff] %vm1873_vm9, %v1870_v2  ;;  %v2907_v2 = vld [vmem:[%s1125_s21] ss:$0 sm:$0xff] }
 0xd4e   : > { %v1877_v4 = vld [vmem:[#allocation3 + $0x8] sm:$0xff] }
 0xd4f   : > { %v1878_v5 = vpack.c.bf16 %v1877_v4, %v1876_v3 }
 0xd51   : > { %2606 = vmatmul.msk.bf16.vlgmr.msra.gmra.mxu0 %vm1299_vm1, %v1878_v5 }
 0xdce   : > { %v1911_v8 = vpop.f32.mrf.mxu0 }
 0xdcf   : > { %v1912_v9 = vadd.f32 %v2904_v7, %v1911_v8 }
 0xdd1   : > { %v1916_v10 = vadd.f32 %v1912_v9, %v3937_v51  ;;  %v4076_v51 = vsel %vm1929_vm10, %v2912_v18, %v1928_v22 }
 0xdd3   : > { %v1918_v11 = vsel %vm1299_vm1, %v1916_v10, 0.0 }
 0xdd4   : > { %1919 = vadd.xlane.f32.xlu2 %v1918_v11 }
 0xdd6   : > { %v1913_v13 = vpop.f32.mrf.mxu0 }
 0xdd7   : > { %v1914_v14 = vadd.f32 %v2904_v7, %v1913_v13 }
 0xdd9   : > { %v1917_v15 = vadd.f32 %v1914_v14, %v3939_v52 }
 0xddb   : > { %v1921_v16 = vsel %vm1299_vm1, %v1917_v15, 0.0 }
 0xddc   : > { %1922 = vadd.xlane.f32.xlu2 %v1921_v16 }
 0xe47   : > { %v1920_v23 = vpop.xlane.xlu2 %1919 }
 0xe48   : > { %v1931_v24 = vmul.f32 %v4076_v51, %v1920_v23 }
 0xe4a   : > { %v1933_v25 = vsub.f32 %v1916_v10, %v1931_v24  ;;  %v2908_v10 = vld [vmem:[%s1128_s18] ss:$0 sm:$0xff] }
 0xe4c   : > { %v1935_v52 = vmul.f32 %v1933_v25, %v1933_v25 }
 0xe4e   : > { %v1937_v26 = vsel %vm1299_vm1, %v1935_v52, 0.0 }
 0xe4f   : > { %1938 = vadd.xlane.f32.xlu0 %v1937_v26  ;;  %v1923_v27 = vpop.xlane.xlu2 %1922 }
 0xe50   : > { %v1932_v28 = vmul.f32 %v4076_v51, %v1923_v27 }
 0xe52   : > { %v1934_v29 = vsub.f32 %v1917_v15, %v1932_v28 }
 0xe54   : > { %v1936_v30 = vmul.f32 %v1934_v29, %v1934_v29 }
 0xe56   : > { %v1940_v6 = vsel %vm1299_vm1, %v1936_v30, 0.0 }
 0xe57   : > { %1941 = vadd.xlane.f32.xlu1 %v1940_v6 }
 0xec2   : > { %v1939_v33 = vpop.xlane.xlu0 %1938 }
 0xec3   : > { %v1943_v34 = vmul.f32 %v1939_v33, %v4076_v51 }
 0xec5   : > { %v1945_v35 = vadd.f32 1e-06, %v1943_v34 }
 0xec7   : > { %2913 = vrsqrt.f32 %v1945_v35  ;;  %vm1953_vm12 = vweird.f32 %v1945_v35 }
 0xeca   : > { %v1942_v12 = vpop.xlane.xlu1 %1941 }
 0xecb   : > { %v1944_v37 = vmul.f32 %v1942_v12, %v4076_v51 }
 0xecd   : > { %v2914_v38 = vpop.eup %2913  ;;  %v1946_v39 = vadd.f32 1e-06, %v1944_v37 }
 0xece   : > { %v1948_v40 = vmul.f32 %v2914_v38, %v1945_v35  ;;  %vm1954_vm11 = vweird.f32 %v2914_v38 }
 0xecf   : > { %2915 = vrsqrt.f32 %v1946_v39  ;;  %vm1955_vm13 = vmor %vm1953_vm12, %vm1954_vm11  ;;  %vm1963_vm15 = vweird.f32 %v1946_v39 }
 0xed0   : > { %v1949_v41 = vmul.f32 %v2914_v38, %v1948_v40 }
 0xed2   : > { %v1950_v42 = vmul.f32 0.5, %v1949_v41  ;;  %v2909_v41 = vld [vmem:[%s1131_s7] ss:$0 sm:$0xff] }
 0xed4   : > { %v1951_v43 = vsub.f32 1.5, %v1950_v42 }
 0xed5   : > { %v2916_v44 = vpop.eup %2915 }
 0xed6   : > { %v1952_v45 = vmul.f32 %v2914_v38, %v1951_v43  ;;  %v1958_v46 = vmul.f32 %v2916_v44, %v1946_v39  ;;  %vm1964_vm14 = vweird.f32 %v2916_v44  ;;  %v2910_v43 = vld [vmem:[%s3912_s20] ss:$0 sm:$0xff] }
 0xed7   : > { %vm1965_vm0 = vmor %vm1963_vm15, %vm1964_vm14 }
 0xed8   : > { %v1959_v47 = vmul.f32 %v2916_v44, %v1958_v46  ;;  %v1956_v49 = vsel %vm1955_vm13, %v2914_v38, %v1952_v45 }
 0xed9   : > { %v1967_v53 = vmul.f32 %v1956_v49, %v1933_v25 }
 0xeda   : > { %v1960_v48 = vmul.f32 0.5, %v1959_v47 }
 0xedb   : > { %v1973_v58 = vmul.f32 %v2905_v54, %v1967_v53 }
 0xedc   : > { %v1961_v50 = vsub.f32 1.5, %v1960_v48 }
 0xedd   : > { %v1979_v0 = vadd.f32 %v2906_v59, %v1973_v58 }
 0xede   : > { %v1962_v55 = vmul.f32 %v2916_v44, %v1961_v50 }
 0xee0   : > { %v1966_v56 = vsel %vm1965_vm0, %v2916_v44, %v1962_v55 }
 0xee1   : > { %v1968_v57 = vmul.f32 %v1966_v56, %v1934_v29 }
 0xee3   : > { %v1974_v62 = vmul.f32 %v2905_v54, %v1968_v57 }
 0xee5   : > { %v1980_v60 = vadd.f32 %v2906_v59, %v1974_v62 }
 0xee7   : > { %v1981_v61 = vpack.c.bf16 %v1980_v60, %v1979_v0 }
 0xee9   : > { %2615 = vmatmul.msk.bf16.vlgmr.msra.gmra.mxu1 %vm1299_vm1, %v1981_v61 }
 0xf66   : > { %v2014_v1 = vpop.f32.mrf.mxu1 }
 0xf67   : > { %v2015_v3 = vadd.f32 %v2907_v2, %v2014_v1 }
 0xf69   : > { %v2019_v7 = vmax.f32 %v2015_v3, 0.0 }
 0xf6e   : > { %v2016_v4 = vpop.f32.mrf.mxu1 }
 0xf6f   : > { %v2017_v5 = vadd.f32 %v2907_v2, %v2016_v4 }
 0xf71   : > { %v2020_v8 = vmax.f32 %v2017_v5, 0.0 }
 0xf73   : > { %v2021_v9 = vpack.c.bf16 %v2020_v8, %v2019_v7 }
 0xf75   : > { %2624 = vmatmul.msk.bf16.vlgmr.msra.gmra.mxu2 %vm1299_vm1, %v2021_v9 }
 0xff8   : > { %v2054_v11 = vpop.f32.mrf.mxu2 }
 0xff9   : > { %v2055_v13 = vadd.f32 %v2908_v10, %v2054_v11 }
 0xffb   : > { %v2059_v14 = vadd.f32 %v2055_v13, %v1979_v0 }
 0xffd   : > { %v2061_v15 = vsel %vm1299_vm1, %v2059_v14, 0.0 }
 0xffe   : > { %2062 = vadd.xlane.f32.xlu2 %v2061_v15 }
0x1000   : > { %v2056_v16 = vpop.f32.mrf.mxu2 }
0x1001   : > { %v2057_v17 = vadd.f32 %v2908_v10, %v2056_v16 }
0x1003   : > { %v2060_v18 = vadd.f32 %v2057_v17, %v1980_v60 }
0x1005   : > { %v2064_v19 = vsel %vm1299_vm1, %v2060_v18, 0.0 }
0x1006   : > { %2065 = vadd.xlane.f32.xlu2 %v2064_v19 }
0x1071   : > { %v2063_v20 = vpop.xlane.xlu2 %2062 }
0x1072   : > { %v2067_v21 = vmul.f32 %v2063_v20, %v4076_v51 }
0x1074   : > { %v2069_v22 = vsub.f32 %v2059_v14, %v2067_v21 }
0x1076   : > { %v2071_v23 = vmul.f32 %v2069_v22, %v2069_v22 }
0x1078   : > { %v2073_v24 = vsel %vm1299_vm1, %v2071_v23, 0.0 }
0x1079   : > { %2074 = vadd.xlane.f32.xlu2 %v2073_v24  ;;  %v2066_v25 = vpop.xlane.xlu2 %2065 }
0x107a   : > { %v2068_v52 = vmul.f32 %v2066_v25, %v4076_v51 }
0x107c   : > { %v2070_v26 = vsub.f32 %v2060_v18, %v2068_v52 }
0x107e   : > { %v2072_v27 = vmul.f32 %v2070_v26, %v2070_v26 }
0x1080   : > { %v2076_v28 = vsel %vm1299_vm1, %v2072_v27, 0.0 }
0x1081   : > { %2077 = vadd.xlane.f32.xlu2 %v2076_v28 }
0x10ec   : > { %v2075_v29 = vpop.xlane.xlu2 %2074 }
0x10ed   : > { %v2079_v30 = vmul.f32 %v2075_v29, %v4076_v51 }
0x10ef   : > { %v2081_v6 = vadd.f32 1e-06, %v2079_v30 }
0x10f1   : > { %2917 = vrsqrt.f32 %v2081_v6  ;;  %vm2089_vm3 = vweird.f32 %v2081_v6 }
0x10f4   : > { %v2078_v31 = vpop.xlane.xlu2 %2077 }
0x10f5   : > { %v2080_v32 = vmul.f32 %v2078_v31, %v4076_v51 }
0x10f7   : > { %v2918_v33 = vpop.eup %2917  ;;  %v2082_v34 = vadd.f32 1e-06, %v2080_v32 }
0x10f8   : > { %v2084_v35 = vmul.f32 %v2918_v33, %v2081_v6  ;;  %vm2090_vm2 = vweird.f32 %v2918_v33 }
0x10f9   : > { %2919 = vrsqrt.f32 %v2082_v34  ;;  %vm2091_vm4 = vmor %vm2089_vm3, %vm2090_vm2  ;;  %vm2099_vm6 = vweird.f32 %v2082_v34 }
0x10fa   : > { %v2085_v36 = vmul.f32 %v2918_v33, %v2084_v35 }
0x10fc   : > { %v2086_v12 = vmul.f32 0.5, %v2085_v36 }
0x10fe   : > { %v2087_v37 = vsub.f32 1.5, %v2086_v12 }
0x10ff   : > { %v2920_v38 = vpop.eup %2919 }
0x1100   : > { %v2088_v39 = vmul.f32 %v2918_v33, %v2087_v37  ;;  %v2094_v40 = vmul.f32 %v2920_v38, %v2082_v34  ;;  %vm2100_vm5 = vweird.f32 %v2920_v38 }
0x1101   : > { %vm2101_vm7 = vmor %vm2099_vm6, %vm2100_vm5 }
0x1102   : > { %v2092_v51 = vsel %vm2091_vm4, %v2918_v33, %v2088_v39  ;;  %v2095_v42 = vmul.f32 %v2920_v38, %v2094_v40 }
0x1103   : > { %v2103_v44 = vmul.f32 %v2092_v51, %v2069_v22 }
0x1104   : > { %v2096_v45 = vmul.f32 0.5, %v2095_v42 }
0x1105   : > { %v2109_v46 = vmul.f32 %v2909_v41, %v2103_v44 }
0x1106   : > { %v2097_v47 = vsub.f32 1.5, %v2096_v45 }
0x1107   : > { %v2115_v48 = vadd.f32 %v2910_v43, %v2109_v46 }
0x1108   : > { %v2098_v49 = vmul.f32 %v2920_v38, %v2097_v47 }
0x1109   : > { %2117 = vst.msk [vmem:[#allocation2] sm:$0xff] %vm1299_vm1, %v2115_v48 }
0x110a   : > { %v2102_v50 = vsel %vm2101_vm7, %v2920_v38, %v2098_v49 }
0x110b   : > { %v2104_v53 = vmul.f32 %v2102_v50, %v2070_v26 }
0x110d   : > { %v2110_v54 = vmul.f32 %v2909_v41, %v2104_v53  ;;  %2121 = sbr.rel (%p2580_p5) target bundleno = 4373 (0x1115), region = 172 }
0x110f   : > { %v2116_v55 = vadd.f32 %v2910_v43, %v2110_v54 }
0x1111   : > { %2118 = vst.msk [vmem:[#allocation2 + $0x8] sm:$0xff] %vm1299_vm1, %v2116_v55 }
0x1112   : > { %vm2122_vm8 = vcmask 253952  }
0x1113   : > { %2123 = vst.msk [vmem:[%s3916_s4] sm:$0x1] %vm2122_vm8, %v2115_v48 }
0x1114   : > { %2124 = vst.msk [vmem:[%s3916_s4 + $0x1] sm:$0x1] %vm2122_vm8, %v2116_v55 }
0x1115 PF: > { %s4349_s7 = sld [smem:[#allocation47_spill]]  ;;  %s2142_s29 = sshll.u32 %s3916_s4, 4  ;;  %s2143_s29 = int_to_ptr.vmem [resolvable:$true] %s2142_s29 }
0x1116   : > { %s4350_s27 = sld [smem:[#allocation69_spill]]  ;;  %s2126_s6 = scalar_lea.sflag [#allocation6], %s3832_s16 }
0x111c   : > { %s2141_s3 = scalar_lea.hbm %s4350_s27, %s4349_s7  ;;  %s3271_s10 = scalar_lea.hbm %s4350_s27, 4 }
0x111d   : > { %s2144_s14 = sshll.u32 %s2141_s3, 4  ;;  %s2145_s14 = int_to_ptr.hbm [resolvable:$true] %s2144_s14 }
0x111e   : > { %s3265_s8 = sshra.s32 %s2145_s14, 4  ;;  %s3266_s8 = int_to_ptr.hbm [resolvable:$true] %s3265_s8 }
0x111f   : > { %s3267_s1 = scalar_lea.hbm %s3266_s8, 2  ;;  %p3272_p3 = scmp.lt.s32.totalorder %s3266_s8, %s4350_s27 }
0x1120   : > { %p3268_p7 = scmp.ne.s32.totalorder %s3266_s8, %s3267_s1  ;;  %p3273_p9 = scmp.lt.s32.totalorder %s3271_s10, %s3267_s1 }
0x1122   : > { %p3269_p11 = pnand %p3268_p7, %p3673_p10  ;;  %p3274_p12 = por %p3273_p9, %p3272_p3 }
0x1124   : > { %p3270_p2 = pneg %p3269_p11 }
0x1126   : > { %p3275_p0 = pnand %p3274_p12, %p3270_p2 }
0x1128   : > { %3278 = shalt.err (!%p3275_p0)
}
0x1129   : > { %s3453_s4 = smov 1   ;;  %s4352_s11 = sld [smem:[#allocation36_spill]] }
0x112a   : > { %2682 = dma.vmem_to_hbm [thread:$0]  (%p3673_p10), %s2143_s29, 32, %s2145_s14, %s2126_s6, %s3448_s30, %s3448_s30, %s3453_s4  }
0x112b   : > { %s2159_s2 = sshll.u32 %s3918_s9, 4  ;;  %s4353_s24 = sld [smem:[#allocation70_spill]]  ;;  %s2160_s2 = int_to_ptr.vmem [resolvable:$true] %s2159_s2 }
0x112c   : > { %s2131_s7 = scalar_lea.sflag [#allocation22], %s3832_s16 }
0x112f   : > { %s2649_s19 = sshll.u32 %s4352_s11, 4 }
0x1131   : > { %s4354_s21 = smov %s4353_s24  ;;  %s2158_s18 = scalar_lea.hbm %s4353_s24, %s2649_s19 }
0x1132   : > { %s2161_s13 = sshll.u32 %s2158_s18, 4  ;;  %s3299_s30 = scalar_lea.hbm %s4354_s21, 32  ;;  %s2162_s13 = int_to_ptr.hbm [resolvable:$true] %s2161_s13 }
0x1133   : > { %s3293_s17 = sshra.s32 %s2162_s13, 4  ;;  %s3294_s17 = int_to_ptr.hbm [resolvable:$true] %s3293_s17 }
0x1134   : > { %s3295_s20 = scalar_lea.hbm %s3294_s17, 16  ;;  %p3300_p4 = scmp.lt.s32.totalorder %s3294_s17, %s4354_s21 }
0x1135   : > { %p3296_p1 = scmp.ne.s32.totalorder %s3294_s17, %s3295_s20  ;;  %p3301_p5 = scmp.lt.s32.totalorder %s3299_s30, %s3295_s20 }
0x1137   : > { %p3297_p6 = pnand %p3296_p1, %p3673_p10  ;;  %p3302_p7 = por %p3301_p5, %p3300_p4 }
0x1139   : > { %p3298_p8 = pneg %p3297_p6 }
0x113b   : > { %p3303_p11 = pnand %p3302_p7, %p3298_p8 }
0x113d   : > { %3306 = shalt.err (!%p3303_p11)
}
0x113e   : > { %s3454_s16 = smov 128  }
0x113f   : > { %2683 = dma.vmem_to_hbm [thread:$0]  (%p3673_p10), %s2160_s2, 256, %s2162_s13, %s2131_s7, %s3454_s16, %s3454_s16, %s3443_s28  }
0x1140 PF: > { %s4355_s14 = sld [smem:[#allocation39_spill]] }
0x1141   : > { %s4356_s6 = sld [smem:[#allocation32_spill]] }
0x1146   : > { %p2739_p2 = scmp.ge.s32.totalorder %s4355_s14, 2 }
0x1147   : > { %s2176_s25 = sand.u32 1, %s4356_s6  }
0x1148   : > { %p2722_p3 = pnand %p2739_p2, %p3683_p13  ;;  %s2177_s0 = scalar_lea.sflag [#allocation6], %s2176_s25 }
0x114a   : > { %p2723_p9 = pneg %p2722_p3 }
0x114c   : > { %3372 = dma.done.wait (%p2723_p9), %s2177_s0, 32  }
0x114d   : > { %3374 = vsyncadd (%p2723_p9), %s2177_s0, 4294967264  ;;  %s2187_s10 = scalar_lea.sflag [#allocation22], %s2176_s25 }
0x114e   : > { %3376 = dma.done.wait (%p2723_p9), %s2187_s10, 256  }
0x114f   : > { %3378 = vsyncadd (%p2723_p9), %s2187_s10, 4294967040  ;;  %s45_s6 = sadd.s32 1, %s4355_s14   ;;  %s4358_s3 = sld [smem:[#allocation30_spill]] }
0x1150   : > { %p42_p12 = scmp.ge.s32.totalorder %s45_s6, 6   ;;  %s4359_s28 = sld [smem:[#allocation31_spill]] }
0x1151   : > { %s4360_s29 = sld [smem:[#allocation45_spill]] }
0x1152   : > { %s4361_s30 = sld [smem:[#allocation33_spill]] }
0x1153   : > { %s4362_s4 = sld [smem:[#allocation34_spill]] }
0x1154   : > { %s4363_s0 = sld [smem:[#allocation43_spill]]  ;;  %44 = sbr.rel (!%p42_p12) target bundleno = 38 (0x26), region = 292 }
0x1155   : > { %s4364_s23 = sld [smem:[#allocation37_spill]] }
0x1156   : > { %s4365_s1 = sld [smem:[#allocation38_spill]] }
0x1157   : > { %s4366_s5 = sld [smem:[#allocation40_spill]] }
0x1158   : > { %s4367_s24 = sld [smem:[#allocation41_spill]] }
0x1159   :  { %2193 = vsyncpa [#allocation5], 1 }
0x115a   :  { %2195 = vsyncpa [#allocation5 + $0x1], 1 }
0x115b   :  { %2196 = vsyncpa [#allocation8], 1 }
0x115c   :  { %2197 = vsyncpa [#allocation11], 1 }
0x115d   :  { %2198 = vsyncpa [#allocation14], 1 }
0x115e   :  { %2199 = vsyncpa [#allocation6], 1 }
0x115f   :  { %2201 = vsyncpa [#allocation6 + $0x1], 1 }
0x1160   :  { %2202 = vsyncpa [#allocation22], 1 }
0x1161   :  { %2204 = vsyncpa [#allocation22 + $0x1], 1 }

</bundles_post_ra>
